<compile_context>
chip_gen: v7x
topology: tpu7x:2x2x1
jax: 0.10.0
libtpu: 0.0.40
codegen_flags: <defaults>
</compile_context>

<pallas_src>
import functools
import math

import jax
import jax.numpy as jnp
from jax.experimental import pallas as pl
from jax.experimental.pallas import tpu as pltpu

HIDDEN = 1024


def _gelu_exact(x):
    # Exact (erf-based) GELU, matching torch nn.GELU() default.
    # erf via Abramowitz & Stegun 7.1.26; the rational prefactor's divide is
    # pushed onto the EUP (pl.reciprocal approx) so it costs no VALU slots.
    z = x * 0.7071067811865476                       # x / sqrt(2)
    a = jnp.abs(z)
    t = pl.reciprocal(1.0 + 0.3275911 * a, approx=True)
    poly = t * (0.254829592 + t * (-0.284496736 + t * (1.421413741
             + t * (-1.453152027 + t * 1.061405429))))
    erf_abs = 1.0 - poly * jnp.exp(-a * a)
    erf = jnp.where(z >= 0.0, erf_abs, -erf_abs)
    return 0.5 * x * (1.0 + erf)


def _softplus(x):
    # Numerically stable softplus = max(x, 0) + log(1 + exp(-|x|)).
    return jnp.maximum(x, 0.0) + jnp.log(1.0 + jnp.exp(-jnp.abs(x)))


def _mi_kernel(x_ref, w1_ref, b1_ref, w2_ref, b2_ref, w3_ref, b3_ref,
               out1_ref, out2_ref, *, inv_batch, tile_b):
    # Per-core partial accumulators: init on the first step of the inner
    # ("arbitrary") axis; the output tile is resident across that axis.
    @pl.when(pl.program_id(1) == 0)
    def _():
        out1_ref[...] = jnp.zeros_like(out1_ref)
        out2_ref[...] = jnp.zeros_like(out2_ref)

    # pos rows stacked on top of neg rows (done in the wrapper), so every
    # layer is ONE MXU matmul for both branches.  bf16 operands, f32 accum.
    xin = x_ref[...]                                              # [2t, D_in] bf16

    h = _gelu_exact(jnp.dot(xin, w1_ref[...],
                            preferred_element_type=jnp.float32) + b1_ref[...])
    h = _gelu_exact(jnp.dot(h.astype(jnp.bfloat16), w2_ref[...],
                            preferred_element_type=jnp.float32) + b2_ref[...])
    scores = jnp.dot(h.astype(jnp.bfloat16), w3_ref[...],
                     preferred_element_type=jnp.float32) + b3_ref[...]   # [2t, 1]

    pos = scores[0:tile_b, :]
    neg = scores[tile_b:2 * tile_b, :]

    out1_ref[...] += -(jnp.sum(_softplus(-pos))
                       + jnp.sum(_softplus(neg))) * inv_batch
    # NOTE: jnp.exp(neg) can overflow for very large scores — same semantics
    # as the torch reference (neg.exp().mean()).
    out2_ref[...] += (jnp.sum(pos) - jnp.sum(jnp.exp(neg))) * inv_batch


def mi_estimator_forward(x1, x2, params):
    """Pallas-backed MIEstimator.forward(x1, x2) -> (scalar, scalar)."""
    w1, b1, w2, b2, w3, b3 = params
    B = x1.shape[0]
    d_in = x1.shape[1] + x2.shape[1]
    hidden = w1.shape[1]

    # --- batch tiling -------------------------------------------------------
    if B <= 512:
        tile_b = B
    else:
        tile_b = None
        for cand in (512, 256, 128):
            if B % cand == 0:
                tile_b = cand
                break
        # TODO(synk): mask a ragged final tile instead of requiring divisibility.
        assert tile_b is not None, "large batches must be a multiple of 128"
    num_tiles = B // tile_b

    # v7x has 2 TensorCores: split the tiles across a leading "parallel" axis
    # with per-core partial outputs.  Harmless (1 iteration) on v5e/v6e.
    n_cores = 2 if (num_tiles >= 2 and num_tiles % 2 == 0) else 1
    nt_per_core = num_tiles // n_cores

    # --- layout plumbing (wrapper only; every FLOP runs in the kernel) ------
    # TODO(synk): for large size2 the x2 @ w1[size1:, :] term could be shared
    # between the pos/neg branches; skipped here (d_in is tiny).
    x_pos = jnp.concatenate([x1, x2], axis=1)
    x_neg = jnp.concatenate([jnp.roll(x1, 1, axis=0), x2], axis=1)
    x_all = jnp.concatenate([x_pos.reshape(num_tiles, tile_b, d_in),
                             x_neg.reshape(num_tiles, tile_b, d_in)],
                            axis=1).astype(jnp.bfloat16)      # [nt, 2t, D_in]

    # bf16 feed for the MXU (single-pass); biases stay f32 for the f32 adds.
    w1b = w1.astype(jnp.bfloat16)
    w2b = w2.astype(jnp.bfloat16)
    w3b = w3.astype(jnp.bfloat16)

    kernel = functools.partial(_mi_kernel, inv_batch=1.0 / B, tile_b=tile_b)

    def resident_spec(shape):
        # Whole array VMEM-resident: constant index_map (loaded once) and a
        # single pipeline buffer (double-buffering a never-changing weight
        # would just burn VMEM).
        return pl.BlockSpec(shape, lambda c, i: (0, 0),
                            pipeline_mode=pl.Buffered(1))

    # (8,128)-clean per-core partial tiles -> unmasked stores; summed below.
    out_spec = pl.BlockSpec((1, 8, 128), lambda c, i: (c, 0, 0))

    vmem_limit = 48 * 1024 * 1024 if tile_b > 128 else None

    o1, o2 = pl.pallas_call(
        kernel,
        out_shape=(jax.ShapeDtypeStruct((n_cores, 8, 128), jnp.float32),
                   jax.ShapeDtypeStruct((n_cores, 8, 128), jnp.float32)),
        grid_spec=pltpu.PrefetchScalarGridSpec(
            num_scalar_prefetch=0,
            grid=(n_cores, nt_per_core),
            in_specs=[
                pl.BlockSpec((None, 2 * tile_b, d_in),
                             lambda c, i: (c * nt_per_core + i, 0, 0)),
                resident_spec((d_in, hidden)), resident_spec((1, hidden)),
                resident_spec((hidden, hidden)), resident_spec((1, hidden)),
                resident_spec((hidden, 1)), resident_spec((1, 1)),
            ],
            out_specs=(out_spec, out_spec),
        ),
        compiler_params=pltpu.CompilerParams(
            dimension_semantics=("parallel", "arbitrary"),
            vmem_limit_bytes=vmem_limit),
    )(x_all, w1b, b1, w2b, b2, w3b, b3)

    out1 = jnp.sum(o1[:, 0, 0])
    out2 = jnp.sum(o2[:, 0, 0]) + 1.0        # "+1" folded in the wrapper
    return out1, out2


def init_params(key, size1, size2, hidden=HIDDEN):
    """Deterministic nn.Linear-style init. Weights stored as (in, out)."""
    d_in = size1 + size2
    ks = jax.random.split(key, 6)

    def linear(kw, kb, fan_in, fan_out):
        bound = 1.0 / math.sqrt(fan_in)
        w = jax.random.uniform(kw, (fan_in, fan_out), jnp.float32, -bound, bound)
        b = jax.random.uniform(kb, (1, fan_out), jnp.float32, -bound, bound)
        return w, b

    w1, b1 = linear(ks[0], ks[1], d_in, hidden)
    w2, b2 = linear(ks[2], ks[3], hidden, hidden)
    w3, b3 = linear(ks[4], ks[5], hidden, 1)
    return (w1, b1, w2, b2, w3, b3)


def reference_forward(x1, x2, params):
    """Pure-JAX, torch-literal reference (exact erf GELU, via XLA)."""
    w1, b1, w2, b2, w3, b3 = params

    def net(z):
        h = jax.nn.gelu(z @ w1 + b1, approximate=False)
        h = jax.nn.gelu(h @ w2 + b2, approximate=False)
        return h @ w3 + b3

    pos = net(jnp.concatenate([x1, x2], axis=1))
    neg = net(jnp.concatenate([jnp.roll(x1, 1, axis=0), x2], axis=1))
    out1 = -jnp.mean(jax.nn.softplus(-pos)) - jnp.mean(jax.nn.softplus(neg))
    out2 = jnp.mean(pos) - jnp.mean(jnp.exp(neg)) + 1.0
    return out1, out2


if __name__ == "__main__":
    size1, size2, B = 16, 16, 8
    key = jax.random.PRNGKey(0)
    k1, k2, kp = jax.random.split(key, 3)
    x1 = jax.random.normal(k1, (B, size1), dtype=jnp.float32)
    x2 = jax.random.normal(k2, (B, size2), dtype=jnp.float32)
    params = init_params(kp, size1, size2)

    out = mi_estimator_forward(x1, x2, params)
    out = jax.block_until_ready(out)

    ref = reference_forward(x1, x2, params)
    # Tolerance budgets for the bf16 MXU path (bf16 rounding of inputs,
    # weights and inter-layer activations, f32 accumulation) plus the approx
    # EUP reciprocal inside the erf polynomial.
    for o, r in zip(out, ref):
        assert jnp.allclose(o, r, rtol=2e-2, atol=2e-2), (out, ref)
    print("KERNEL_OK")
</pallas_src>

<mosaic_0001>
module attributes {stable_mosaic.version = 11 : i64} {
  func.func @_mi_kernel(%arg0: i32, %arg1: i32, %arg2: memref<1x16x32xbf16, #tpu.memory_space<vmem>>, %arg3: memref<32x1024xbf16, #tpu.memory_space<vmem>>, %arg4: memref<1x1024xf32, #tpu.memory_space<vmem>>, %arg5: memref<1024x1024xbf16, #tpu.memory_space<vmem>>, %arg6: memref<1x1024xf32, #tpu.memory_space<vmem>>, %arg7: memref<1024x1xbf16, #tpu.memory_space<vmem>>, %arg8: memref<1x1xf32, #tpu.memory_space<vmem>>, %arg9: memref<1x8x128xf32, #tpu.memory_space<vmem>>, %arg10: memref<1x8x128xf32, #tpu.memory_space<vmem>>) attributes {dimension_semantics = [#tpu.dimension_semantics<parallel>, #tpu.dimension_semantics<arbitrary>], iteration_bounds = array<i64: 1, 1>, scalar_prefetch = 0 : i64, scratch_operands = 0 : i64, tpu.core_type = #tpu.core_type<tc>, window_params = [{transform_indices = @transform_0, window_bounds = array<i64: 1, 16, 32>}, {pipeline_mode = #tpu.pipeline_mode<synchronous>, transform_indices = @transform_1, window_bounds = array<i64: 32, 1024>}, {pipeline_mode = #tpu.pipeline_mode<synchronous>, transform_indices = @transform_2, window_bounds = array<i64: 1, 1024>}, {pipeline_mode = #tpu.pipeline_mode<synchronous>, transform_indices = @transform_3, window_bounds = array<i64: 1024, 1024>}, {pipeline_mode = #tpu.pipeline_mode<synchronous>, transform_indices = @transform_4, window_bounds = array<i64: 1, 1024>}, {pipeline_mode = #tpu.pipeline_mode<synchronous>, transform_indices = @transform_5, window_bounds = array<i64: 1024, 1>}, {pipeline_mode = #tpu.pipeline_mode<synchronous>, transform_indices = @transform_6, window_bounds = array<i64: 1, 1>}, {transform_indices = @transform_7, window_bounds = array<i64: 1, 8, 128>}, {transform_indices = @transform_8, window_bounds = array<i64: 1, 8, 128>}]} {
    %c0_i32 = arith.constant 0 : i32
    %0 = arith.cmpi eq, %arg1, %c0_i32 : i32
    %1 = arith.extui %0 : i1 to i32
    %c0_i32_0 = arith.constant 0 : i32
    %2 = arith.cmpi ne, %1, %c0_i32_0 : i32
    scf.if %2 {
      %cst_71 = arith.constant 0.000000e+00 : f32
      %154 = vector.broadcast %cst_71 : f32 to vector<1x8x128xf32>
      %c0_72 = arith.constant 0 : index
      %c0_73 = arith.constant 0 : index
      %c0_74 = arith.constant 0 : index
      %155 = vector.load %arg9[%c0_72, %c0_73, %c0_74] : memref<1x8x128xf32, #tpu.memory_space<vmem>>, vector<1x8x128xf32>
      tpu.vector_store %arg9[%c0_72, %c0_73, %c0_74], %154 {strides = array<i32>} : memref<1x8x128xf32, #tpu.memory_space<vmem>>, vector<1x8x128xf32>,
      %cst_75 = arith.constant 0.000000e+00 : f32
      %156 = vector.broadcast %cst_75 : f32 to vector<1x8x128xf32>
      %c0_76 = arith.constant 0 : index
      %c0_77 = arith.constant 0 : index
      %c0_78 = arith.constant 0 : index
      %157 = vector.load %arg10[%c0_76, %c0_77, %c0_78] : memref<1x8x128xf32, #tpu.memory_space<vmem>>, vector<1x8x128xf32>
      tpu.vector_store %arg10[%c0_76, %c0_77, %c0_78], %156 {strides = array<i32>} : memref<1x8x128xf32, #tpu.memory_space<vmem>>, vector<1x8x128xf32>,
    } else {
    }
    %c0 = arith.constant 0 : index
    %c0_1 = arith.constant 0 : index
    %c0_2 = arith.constant 0 : index
    %3 = vector.load %arg2[%c0, %c0_1, %c0_2] : memref<1x16x32xbf16, #tpu.memory_space<vmem>>, vector<1x16x32xbf16>
    %4 = vector.shape_cast %3 : vector<1x16x32xbf16> to vector<16x32xbf16>
    %c0_3 = arith.constant 0 : index
    %c0_4 = arith.constant 0 : index
    %5 = vector.load %arg3[%c0_3, %c0_4] : memref<32x1024xbf16, #tpu.memory_space<vmem>>, vector<32x1024xbf16>
    %cst = arith.constant dense<0.000000e+00> : vector<16x1024xf32>
    %6 = tpu.matmul %4, %5, %cst {dimension_numbers = #tpu.dot_dimension_numbers<[1], [0], [0], [1], [0, 0, 1, 1], [], []>} : vector<16x32xbf16>, vector<32x1024xbf16>, vector<16x1024xf32> -> vector<16x1024xf32>
    %c0_5 = arith.constant 0 : index
    %c0_6 = arith.constant 0 : index
    %7 = vector.load %arg4[%c0_5, %c0_6] : memref<1x1024xf32, #tpu.memory_space<vmem>>, vector<1x1024xf32>
    %8 = vector.broadcast %7 : vector<1x1024xf32> to vector<16x1024xf32>
    %9 = arith.addf %6, %8 : vector<16x1024xf32>
    %cst_7 = arith.constant 0.707106769 : f32
    %10 = vector.broadcast %cst_7 : f32 to vector<16x1024xf32>
    %11 = arith.mulf %9, %10 : vector<16x1024xf32>
    %12 = math.absf %11 : vector<16x1024xf32>
    %cst_8 = arith.constant 0.327591091 : f32
    %13 = vector.broadcast %cst_8 : f32 to vector<16x1024xf32>
    %14 = arith.mulf %13, %12 : vector<16x1024xf32>
    %cst_9 = arith.constant 1.000000e+00 : f32
    %15 = vector.broadcast %cst_9 : f32 to vector<16x1024xf32>
    %16 = arith.addf %15, %14 : vector<16x1024xf32>
    %17 = tpu.reciprocal %16 {approx = true} : vector<16x1024xf32> -> vector<16x1024xf32>
    %cst_10 = arith.constant 1.06140542 : f32
    %18 = vector.broadcast %cst_10 : f32 to vector<16x1024xf32>
    %19 = arith.mulf %17, %18 : vector<16x1024xf32>
    %cst_11 = arith.constant -1.45315206 : f32
    %20 = vector.broadcast %cst_11 : f32 to vector<16x1024xf32>
    %21 = arith.addf %20, %19 : vector<16x1024xf32>
    %22 = arith.mulf %17, %21 : vector<16x1024xf32>
    %cst_12 = arith.constant 1.42141378 : f32
    %23 = vector.broadcast %cst_12 : f32 to vector<16x1024xf32>
    %24 = arith.addf %23, %22 : vector<16x1024xf32>
    %25 = arith.mulf %17, %24 : vector<16x1024xf32>
    %cst_13 = arith.constant -0.284496725 : f32
    %26 = vector.broadcast %cst_13 : f32 to vector<16x1024xf32>
    %27 = arith.addf %26, %25 : vector<16x1024xf32>
    %28 = arith.mulf %17, %27 : vector<16x1024xf32>
    %cst_14 = arith.constant 0.254829586 : f32
    %29 = vector.broadcast %cst_14 : f32 to vector<16x1024xf32>
    %30 = arith.addf %29, %28 : vector<16x1024xf32>
    %31 = arith.mulf %17, %30 : vector<16x1024xf32>
    %cst_15 = arith.constant 0.000000e+00 : f32
    %32 = vector.broadcast %cst_15 : f32 to vector<16x1024xf32>
    %33 = arith.subf %32, %12 : vector<16x1024xf32>
    %34 = arith.mulf %33, %12 : vector<16x1024xf32>
    %35 = math.exp %34 : vector<16x1024xf32>
    %36 = arith.mulf %31, %35 : vector<16x1024xf32>
    %cst_16 = arith.constant 1.000000e+00 : f32
    %37 = vector.broadcast %cst_16 : f32 to vector<16x1024xf32>
    %38 = arith.subf %37, %36 : vector<16x1024xf32>
    %cst_17 = arith.constant 0.000000e+00 : f32
    %39 = vector.broadcast %cst_17 : f32 to vector<16x1024xf32>
    %40 = arith.cmpf oge, %11, %39 : vector<16x1024xf32>
    %cst_18 = arith.constant 0.000000e+00 : f32
    %41 = vector.broadcast %cst_18 : f32 to vector<16x1024xf32>
    %42 = arith.subf %41, %38 : vector<16x1024xf32>
    %43 = arith.select %40, %38, %42 : vector<16x1024xi1>, vector<16x1024xf32>
    %cst_19 = arith.constant 5.000000e-01 : f32
    %44 = vector.broadcast %cst_19 : f32 to vector<16x1024xf32>
    %45 = arith.mulf %44, %9 : vector<16x1024xf32>
    %cst_20 = arith.constant 1.000000e+00 : f32
    %46 = vector.broadcast %cst_20 : f32 to vector<16x1024xf32>
    %47 = arith.addf %46, %43 : vector<16x1024xf32>
    %48 = arith.mulf %45, %47 : vector<16x1024xf32>
    %49 = arith.truncf %48 : vector<16x1024xf32> to vector<16x1024xbf16>
    %c0_21 = arith.constant 0 : index
    %c0_22 = arith.constant 0 : index
    %50 = vector.load %arg5[%c0_21, %c0_22] : memref<1024x1024xbf16, #tpu.memory_space<vmem>>, vector<1024x1024xbf16>
    %cst_23 = arith.constant dense<0.000000e+00> : vector<16x1024xf32>
    %51 = tpu.matmul %49, %50, %cst_23 {dimension_numbers = #tpu.dot_dimension_numbers<[1], [0], [0], [1], [0, 0, 1, 1], [], []>} : vector<16x1024xbf16>, vector<1024x1024xbf16>, vector<16x1024xf32> -> vector<16x1024xf32>
    %c0_24 = arith.constant 0 : index
    %c0_25 = arith.constant 0 : index
    %52 = vector.load %arg6[%c0_24, %c0_25] : memref<1x1024xf32, #tpu.memory_space<vmem>>, vector<1x1024xf32>
    %53 = vector.broadcast %52 : vector<1x1024xf32> to vector<16x1024xf32>
    %54 = arith.addf %51, %53 : vector<16x1024xf32>
    %cst_26 = arith.constant 0.707106769 : f32
    %55 = vector.broadcast %cst_26 : f32 to vector<16x1024xf32>
    %56 = arith.mulf %54, %55 : vector<16x1024xf32>
    %57 = math.absf %56 : vector<16x1024xf32>
    %cst_27 = arith.constant 0.327591091 : f32
    %58 = vector.broadcast %cst_27 : f32 to vector<16x1024xf32>
    %59 = arith.mulf %58, %57 : vector<16x1024xf32>
    %cst_28 = arith.constant 1.000000e+00 : f32
    %60 = vector.broadcast %cst_28 : f32 to vector<16x1024xf32>
    %61 = arith.addf %60, %59 : vector<16x1024xf32>
    %62 = tpu.reciprocal %61 {approx = true} : vector<16x1024xf32> -> vector<16x1024xf32>
    %cst_29 = arith.constant 1.06140542 : f32
    %63 = vector.broadcast %cst_29 : f32 to vector<16x1024xf32>
    %64 = arith.mulf %62, %63 : vector<16x1024xf32>
    %cst_30 = arith.constant -1.45315206 : f32
    %65 = vector.broadcast %cst_30 : f32 to vector<16x1024xf32>
    %66 = arith.addf %65, %64 : vector<16x1024xf32>
    %67 = arith.mulf %62, %66 : vector<16x1024xf32>
    %cst_31 = arith.constant 1.42141378 : f32
    %68 = vector.broadcast %cst_31 : f32 to vector<16x1024xf32>
    %69 = arith.addf %68, %67 : vector<16x1024xf32>
    %70 = arith.mulf %62, %69 : vector<16x1024xf32>
    %cst_32 = arith.constant -0.284496725 : f32
    %71 = vector.broadcast %cst_32 : f32 to vector<16x1024xf32>
    %72 = arith.addf %71, %70 : vector<16x1024xf32>
    %73 = arith.mulf %62, %72 : vector<16x1024xf32>
    %cst_33 = arith.constant 0.254829586 : f32
    %74 = vector.broadcast %cst_33 : f32 to vector<16x1024xf32>
    %75 = arith.addf %74, %73 : vector<16x1024xf32>
    %76 = arith.mulf %62, %75 : vector<16x1024xf32>
    %cst_34 = arith.constant 0.000000e+00 : f32
    %77 = vector.broadcast %cst_34 : f32 to vector<16x1024xf32>
    %78 = arith.subf %77, %57 : vector<16x1024xf32>
    %79 = arith.mulf %78, %57 : vector<16x1024xf32>
    %80 = math.exp %79 : vector<16x1024xf32>
    %81 = arith.mulf %76, %80 : vector<16x1024xf32>
    %cst_35 = arith.constant 1.000000e+00 : f32
    %82 = vector.broadcast %cst_35 : f32 to vector<16x1024xf32>
    %83 = arith.subf %82, %81 : vector<16x1024xf32>
    %cst_36 = arith.constant 0.000000e+00 : f32
    %84 = vector.broadcast %cst_36 : f32 to vector<16x1024xf32>
    %85 = arith.cmpf oge, %56, %84 : vector<16x1024xf32>
    %cst_37 = arith.constant 0.000000e+00 : f32
    %86 = vector.broadcast %cst_37 : f32 to vector<16x1024xf32>
    %87 = arith.subf %86, %83 : vector<16x1024xf32>
    %88 = arith.select %85, %83, %87 : vector<16x1024xi1>, vector<16x1024xf32>
    %cst_38 = arith.constant 5.000000e-01 : f32
    %89 = vector.broadcast %cst_38 : f32 to vector<16x1024xf32>
    %90 = arith.mulf %89, %54 : vector<16x1024xf32>
    %cst_39 = arith.constant 1.000000e+00 : f32
    %91 = vector.broadcast %cst_39 : f32 to vector<16x1024xf32>
    %92 = arith.addf %91, %88 : vector<16x1024xf32>
    %93 = arith.mulf %90, %92 : vector<16x1024xf32>
    %94 = arith.truncf %93 : vector<16x1024xf32> to vector<16x1024xbf16>
    %c0_40 = arith.constant 0 : index
    %c0_41 = arith.constant 0 : index
    %95 = vector.load %arg7[%c0_40, %c0_41] : memref<1024x1xbf16, #tpu.memory_space<vmem>>, vector<1024x1xbf16>
    %cst_42 = arith.constant dense<0.000000e+00> : vector<16x1xf32>
    %96 = tpu.matmul %94, %95, %cst_42 {dimension_numbers = #tpu.dot_dimension_numbers<[1], [0], [0], [1], [0, 0, 1, 1], [], []>} : vector<16x1024xbf16>, vector<1024x1xbf16>, vector<16x1xf32> -> vector<16x1xf32>
    %c0_43 = arith.constant 0 : index
    %c0_44 = arith.constant 0 : index
    %97 = vector.load %arg8[%c0_43, %c0_44] : memref<1x1xf32, #tpu.memory_space<vmem>>, vector<1x1xf32>
    %98 = vector.broadcast %97 : vector<1x1xf32> to vector<16x1xf32>
    %99 = arith.addf %96, %98 : vector<16x1xf32>
    %100 = vector.extract_strided_slice %99 {offsets = [0, 0], sizes = [8, 1], strides = [1, 1]} : vector<16x1xf32> to vector<8x1xf32>
    %101 = vector.extract_strided_slice %99 {offsets = [8, 0], sizes = [8, 1], strides = [1, 1]} : vector<16x1xf32> to vector<8x1xf32>
    %c0_45 = arith.constant 0 : index
    %c0_46 = arith.constant 0 : index
    %c0_47 = arith.constant 0 : index
    %102 = vector.load %arg9[%c0_45, %c0_46, %c0_47] : memref<1x8x128xf32, #tpu.memory_space<vmem>>, vector<1x8x128xf32>
    %cst_48 = arith.constant 0.000000e+00 : f32
    %103 = vector.broadcast %cst_48 : f32 to vector<8x1xf32>
    %104 = arith.subf %103, %100 : vector<8x1xf32>
    %cst_49 = arith.constant 0.000000e+00 : f32
    %105 = vector.broadcast %cst_49 : f32 to vector<8x1xf32>
    %106 = arith.maximumf %104, %105 : vector<8x1xf32>
    %107 = math.absf %104 : vector<8x1xf32>
    %cst_50 = arith.constant 0.000000e+00 : f32
    %108 = vector.broadcast %cst_50 : f32 to vector<8x1xf32>
    %109 = arith.subf %108, %107 : vector<8x1xf32>
    %110 = math.exp %109 : vector<8x1xf32>
    %cst_51 = arith.constant 1.000000e+00 : f32
    %111 = vector.broadcast %cst_51 : f32 to vector<8x1xf32>
    %112 = arith.addf %111, %110 : vector<8x1xf32>
    %113 = math.log %112 : vector<8x1xf32>
    %114 = arith.addf %106, %113 : vector<8x1xf32>
    %115 = vector.shape_cast %114 : vector<8x1xf32> to vector<1x8x1xf32>
    %cst_52 = arith.constant dense<0.000000e+00> : vector<1xf32>
    %116 = vector.multi_reduction <add>, %115, %cst_52 [1, 2] : vector<1x8x1xf32> to vector<1xf32>
    %117 = vector.shape_cast %116 : vector<1xf32> to vector<1x1x1xf32>
    %118 = vector.extract %117[0, 0, 0] : f32 from vector<1x1x1xf32>
    %cst_53 = arith.constant 0.000000e+00 : f32
    %119 = vector.broadcast %cst_53 : f32 to vector<8x1xf32>
    %120 = arith.maximumf %101, %119 : vector<8x1xf32>
    %121 = math.absf %101 : vector<8x1xf32>
    %cst_54 = arith.constant 0.000000e+00 : f32
    %122 = vector.broadcast %cst_54 : f32 to vector<8x1xf32>
    %123 = arith.subf %122, %121 : vector<8x1xf32>
    %124 = math.exp %123 : vector<8x1xf32>
    %cst_55 = arith.constant 1.000000e+00 : f32
    %125 = vector.broadcast %cst_55 : f32 to vector<8x1xf32>
    %126 = arith.addf %125, %124 : vector<8x1xf32>
    %127 = math.log %126 : vector<8x1xf32>
    %128 = arith.addf %120, %127 : vector<8x1xf32>
    %129 = vector.shape_cast %128 : vector<8x1xf32> to vector<1x8x1xf32>
    %cst_56 = arith.constant dense<0.000000e+00> : vector<1xf32>
    %130 = vector.multi_reduction <add>, %129, %cst_56 [1, 2] : vector<1x8x1xf32> to vector<1xf32>
    %131 = vector.shape_cast %130 : vector<1xf32> to vector<1x1x1xf32>
    %132 = vector.extract %131[0, 0, 0] : f32 from vector<1x1x1xf32>
    %133 = arith.addf %118, %132 : f32
    %cst_57 = arith.constant 0.000000e+00 : f32
    %134 = arith.subf %cst_57, %133 : f32
    %cst_58 = arith.constant 1.250000e-01 : f32
    %135 = arith.mulf %134, %cst_58 : f32
    %136 = vector.broadcast %135 : f32 to vector<1x8x128xf32>
    %137 = arith.addf %102, %136 : vector<1x8x128xf32>
    %c0_59 = arith.constant 0 : index
    %c0_60 = arith.constant 0 : index
    %c0_61 = arith.constant 0 : index
    %138 = vector.load %arg9[%c0_59, %c0_60, %c0_61] : memref<1x8x128xf32, #tpu.memory_space<vmem>>, vector<1x8x128xf32>
    tpu.vector_store %arg9[%c0_59, %c0_60, %c0_61], %137 {strides = array<i32>} : memref<1x8x128xf32, #tpu.memory_space<vmem>>, vector<1x8x128xf32>,
    %c0_62 = arith.constant 0 : index
    %c0_63 = arith.constant 0 : index
    %c0_64 = arith.constant 0 : index
    %139 = vector.load %arg10[%c0_62, %c0_63, %c0_64] : memref<1x8x128xf32, #tpu.memory_space<vmem>>, vector<1x8x128xf32>
    %140 = vector.shape_cast %100 : vector<8x1xf32> to vector<1x8x1xf32>
    %cst_65 = arith.constant dense<0.000000e+00> : vector<1xf32>
    %141 = vector.multi_reduction <add>, %140, %cst_65 [1, 2] : vector<1x8x1xf32> to vector<1xf32>
    %142 = vector.shape_cast %141 : vector<1xf32> to vector<1x1x1xf32>
    %143 = vector.extract %142[0, 0, 0] : f32 from vector<1x1x1xf32>
    %144 = math.exp %101 : vector<8x1xf32>
    %145 = vector.shape_cast %144 : vector<8x1xf32> to vector<1x8x1xf32>
    %cst_66 = arith.constant dense<0.000000e+00> : vector<1xf32>
    %146 = vector.multi_reduction <add>, %145, %cst_66 [1, 2] : vector<1x8x1xf32> to vector<1xf32>
    %147 = vector.shape_cast %146 : vector<1xf32> to vector<1x1x1xf32>
    %148 = vector.extract %147[0, 0, 0] : f32 from vector<1x1x1xf32>
    %149 = arith.subf %143, %148 : f32
    %cst_67 = arith.constant 1.250000e-01 : f32
    %150 = arith.mulf %149, %cst_67 : f32
    %151 = vector.broadcast %150 : f32 to vector<1x8x128xf32>
    %152 = arith.addf %139, %151 : vector<1x8x128xf32>
    %c0_68 = arith.constant 0 : index
    %c0_69 = arith.constant 0 : index
    %c0_70 = arith.constant 0 : index
    %153 = vector.load %arg10[%c0_68, %c0_69, %c0_70] : memref<1x8x128xf32, #tpu.memory_space<vmem>>, vector<1x8x128xf32>
    tpu.vector_store %arg10[%c0_68, %c0_69, %c0_70], %152 {strides = array<i32>} : memref<1x8x128xf32, #tpu.memory_space<vmem>>, vector<1x8x128xf32>,
    return
  }
  func.func @transform_0(%arg0: i32, %arg1: i32) -> (i32, i32, i32) {
    %c1_i32 = arith.constant 1 : i32
    %0 = arith.muli %arg0, %c1_i32 : i32
    %1 = arith.addi %0, %arg1 : i32
    %c0_i32 = arith.constant 0 : i32
    %c0_i32_0 = arith.constant 0 : i32
    %c0_i32_1 = arith.constant 0 : i32
    return %1, %c0_i32, %c0_i32_0 : i32, i32, i32
  }
  func.func @transform_1(%arg0: i32, %arg1: i32) -> (i32, i32) {
    %c0_i32 = arith.constant 0 : i32
    %c0_i32_0 = arith.constant 0 : i32
    %c0_i32_1 = arith.constant 0 : i32
    return %c0_i32, %c0_i32_0 : i32, i32
  }
  func.func @transform_2(%arg0: i32, %arg1: i32) -> (i32, i32) {
    %c0_i32 = arith.constant 0 : i32
    %c0_i32_0 = arith.constant 0 : i32
    %c0_i32_1 = arith.constant 0 : i32
    return %c0_i32, %c0_i32_0 : i32, i32
  }
  func.func @transform_3(%arg0: i32, %arg1: i32) -> (i32, i32) {
    %c0_i32 = arith.constant 0 : i32
    %c0_i32_0 = arith.constant 0 : i32
    %c0_i32_1 = arith.constant 0 : i32
    return %c0_i32, %c0_i32_0 : i32, i32
  }
  func.func @transform_4(%arg0: i32, %arg1: i32) -> (i32, i32) {
    %c0_i32 = arith.constant 0 : i32
    %c0_i32_0 = arith.constant 0 : i32
    %c0_i32_1 = arith.constant 0 : i32
    return %c0_i32, %c0_i32_0 : i32, i32
  }
  func.func @transform_5(%arg0: i32, %arg1: i32) -> (i32, i32) {
    %c0_i32 = arith.constant 0 : i32
    %c0_i32_0 = arith.constant 0 : i32
    %c0_i32_1 = arith.constant 0 : i32
    return %c0_i32, %c0_i32_0 : i32, i32
  }
  func.func @transform_6(%arg0: i32, %arg1: i32) -> (i32, i32) {
    %c0_i32 = arith.constant 0 : i32
    %c0_i32_0 = arith.constant 0 : i32
    %c0_i32_1 = arith.constant 0 : i32
    return %c0_i32, %c0_i32_0 : i32, i32
  }
  func.func @transform_7(%arg0: i32, %arg1: i32) -> (i32, i32, i32) {
    %c0_i32 = arith.constant 0 : i32
    %c0_i32_0 = arith.constant 0 : i32
    %c0_i32_1 = arith.constant 0 : i32
    return %arg0, %c0_i32, %c0_i32_0 : i32, i32, i32
  }
  func.func @transform_8(%arg0: i32, %arg1: i32) -> (i32, i32, i32) {
    %c0_i32 = arith.constant 0 : i32
    %c0_i32_0 = arith.constant 0 : i32
    %c0_i32_1 = arith.constant 0 : i32
    return %arg0, %c0_i32, %c0_i32_0 : i32, i32, i32
  }
}

</mosaic_0001>

<bundles_post_ra>
// kernel: tpu_custom_call.1
= control target key start
LH: loop header
LB: loop body
LE: loop exit
PB: predicated region body
PF: predicated region fallthrough
CT: control target
= control target key end

     0   :  { %s8852_s0 = inlined_call_operand.hbm [shape: bf16[1,16,32], index: 0, kind: input, shape index: {}]   ;;  %s8853_s1 = inlined_call_operand.hbm [shape: bf16[32,1024], index: 1, kind: input, shape index: {}]   ;;  %s8854_s2 = inlined_call_operand.hbm [shape: f32[1,1024], index: 2, kind: input, shape index: {}]   ;;  %s8855_s3 = inlined_call_operand.hbm [shape: bf16[1024,1024], index: 3, kind: input, shape index: {}]   ;;  %s8856_s4 = inlined_call_operand.hbm [shape: f32[1,1024], index: 4, kind: input, shape index: {}]   ;;  %s8857_s5 = inlined_call_operand.vmem [shape: bf16[1024,1], index: 5, kind: input, shape index: {}]   ;;  %s8858_s6 = inlined_call_operand.<no memory space> [shape: f32[1,1], index: 6, kind: input, shape index: {}]   ;;  %s8859_s7 = inlined_call_operand.hbm [shape: f32[1,8,128], index: 7, kind: output, shape index: {0}]   ;;  %s8860_s8 = inlined_call_operand.hbm [shape: f32[1,8,128], index: 8, kind: output, shape index: {1}]  }
   0x1   :  { %v14_v0 = vstv %s8858_s6 }
   0x2   :  { %15 = vst [vmem:[#allocation2] sm:$0x1] %v14_v0 }
   0x3   :  { %16 = vsyncpa [#allocation4], 0 }
   0x4   :  { %17 = vsyncpa [#allocation7], 0 }
   0x5   :  { %18 = vsyncpa [#allocation10], 0 }
   0x6   :  { %19 = vsyncpa [#allocation5], 0 }
   0x7   :  { %20 = vsyncpa [#allocation14], 0  ;;  %s7007_s29 = smov [#allocation6]   ;;  %s6843_s11 = scalar_lea.hbm %s8853_s1, 2048 }
   0x8   :  { %s42_s30 = sshll.u32 %s7007_s29, 4  ;;  %p6844_p0 = scmp.ne.s32.totalorder %s8853_s1, %s6843_s11  ;;  %s43_s30 = int_to_ptr.vmem [resolvable:$true] %s42_s30 }
   0x9   :  { %p6847_p1 = scmp.lt.u32.totalorder %s6843_s11, %s8853_s1 }
   0xb   :  { %p6849_p2 = pnand %p6847_p1, %p6844_p0 }
   0xd   :  { %6852 = shalt.err (!%p6849_p2)
}
   0xe   :  { %s6853_s6 = scalar_lea.vmem %s43_s30, 2048  ;;  %p6858_p4 = scmp.lt.s32.totalorder %s43_s30, %s43_s30 }
   0xf   :  { %p6854_p3 = scmp.ne.s32.totalorder %s43_s30, %s6853_s6  ;;  %p6859_p5 = scmp.lt.s32.totalorder %s6853_s6, %s6853_s6 }
  0x11   :  { %p6860_p6 = por %p6859_p5, %p6858_p4 }
  0x13   :  { %p6861_p7 = pnand %p6860_p6, %p6854_p3 }
  0x15   :  { %6864 = shalt.err (!%p6861_p7)
}
  0x16   :  { %s7008_s16 = smov 512   ;;  %s7009_s17 = smov 32  }
  0x17   :  { %48 = dma.hbm_to_vmem [thread:$0]  %s8853_s1, 2048, %s43_s30, [#allocation7], %s7008_s16, %s7008_s16, %s7009_s17  }
  0x18   :  { %s7010_s20 = smov [#allocation9]   ;;  %s7011_s22 = smov [#allocation3]  }
  0x19   :  { %s64_s21 = sshll.u32 %s7010_s20, 4  ;;  %s30_s23 = sshll.u32 %s7011_s22, 4  ;;  %s65_s21 = int_to_ptr.vmem [resolvable:$true] %s64_s21  ;;  %s31_s23 = int_to_ptr.vmem [resolvable:$true] %s30_s23 }
  0x1a   :  { %s6865_s26 = scalar_lea.hbm %s8855_s3, 65536 }
  0x1b   :  { %p6866_p8 = scmp.ne.s32.totalorder %s8855_s3, %s6865_s26  ;;  %p6869_p9 = scmp.lt.u32.totalorder %s6865_s26, %s8855_s3 }
  0x1d   :  { %p6871_p10 = pnand %p6869_p9, %p6866_p8 }
  0x1f   :  { %6874 = shalt.err (!%p6871_p10)
}
  0x20   :  { %s6875_s1 = scalar_lea.vmem %s65_s21, 65536  ;;  %p6880_p12 = scmp.lt.s32.totalorder %s65_s21, %s65_s21 }
  0x21   :  { %p6876_p11 = scmp.ne.s32.totalorder %s65_s21, %s6875_s1  ;;  %p6881_p13 = scmp.lt.s32.totalorder %s6875_s1, %s6875_s1 }
  0x23   :  { %p6882_p0 = por %p6881_p13, %p6880_p12 }
  0x25   :  { %p6883_p1 = pnand %p6882_p0, %p6876_p11 }
  0x27   :  { %6886 = shalt.err (!%p6883_p1)
}
  0x28   :  { %70 = dma.hbm_to_vmem [thread:$0]  %s8855_s3, 65536, %s65_s21, [#allocation10], %s7008_s16, %s7008_s16, %s7009_s17  }
  0x29   :  { %s6887_s13 = scalar_lea.hbm %s8852_s0, 128 }
  0x2a   :  { %p6888_p2 = scmp.ne.s32.totalorder %s8852_s0, %s6887_s13  ;;  %p6891_p3 = scmp.lt.u32.totalorder %s6887_s13, %s8852_s0 }
  0x2c   :  { %p6893_p4 = pnand %p6891_p3, %p6888_p2 }
  0x2e   :  { %6896 = shalt.err (!%p6893_p4)
}
  0x2f   :  { %s6897_s19 = scalar_lea.vmem %s31_s23, 128  ;;  %p6902_p6 = scmp.lt.s32.totalorder %s31_s23, %s31_s23 }
  0x30   :  { %p6898_p5 = scmp.ne.s32.totalorder %s31_s23, %s6897_s19  ;;  %p6903_p7 = scmp.lt.s32.totalorder %s6897_s19, %s6897_s19 }
  0x32   :  { %p6904_p8 = por %p6903_p7, %p6902_p6 }
  0x34   :  { %p6905_p9 = pnand %p6904_p8, %p6898_p5 }
  0x36   :  { %6908 = shalt.err (!%p6905_p9)
}
  0x37   :  { %s7012_s3 = smov 64   ;;  %s7013_s16 = smov 4  }
  0x38   :  { %36 = dma.hbm_to_vmem [thread:$0]  %s8852_s0, 128, %s31_s23, [#allocation4], %s7012_s3, %s7012_s3, %s7013_s16  }
  0x39   :  { %s7014_s21 = smov [#allocation8]   ;;  %s7015_s24 = smov [#allocation11]  }
  0x3a   :  { %s55_s22 = sshll.u32 %s7014_s21, 4  ;;  %s77_s25 = sshll.u32 %s7015_s24, 4  ;;  %s56_s22 = int_to_ptr.vmem [resolvable:$true] %s55_s22  ;;  %s78_s25 = int_to_ptr.vmem [resolvable:$true] %s77_s25 }
  0x3b   :  { %s6909_s28 = scalar_lea.hbm %s8854_s2, 128 }
  0x3c   :  { %p6910_p10 = scmp.ne.s32.totalorder %s8854_s2, %s6909_s28  ;;  %p6913_p11 = scmp.lt.u32.totalorder %s6909_s28, %s8854_s2 }
  0x3e   :  { %p6915_p12 = pnand %p6913_p11, %p6910_p10 }
  0x40   :  { %6918 = shalt.err (!%p6915_p12)
}
  0x41   :  { %s6919_s0 = scalar_lea.vmem %s56_s22, 128  ;;  %p6924_p0 = scmp.lt.s32.totalorder %s56_s22, %s56_s22 }
  0x42   :  { %p6920_p13 = scmp.ne.s32.totalorder %s56_s22, %s6919_s0  ;;  %p6925_p1 = scmp.lt.s32.totalorder %s6919_s0, %s6919_s0 }
  0x44   :  { %p6926_p2 = por %p6925_p1, %p6924_p0 }
  0x46   :  { %p6927_p3 = pnand %p6926_p2, %p6920_p13 }
  0x48   :  { %6930 = shalt.err (!%p6927_p3)
}
  0x49   :  { %58 = dma.hbm_to_vmem [thread:$0]  %s8854_s2, 128, %s56_s22, [#allocation7]  }
  0x4a   :  { %s6931_s13 = scalar_lea.hbm %s8856_s4, 128 }
  0x4b   :  { %p6932_p4 = scmp.ne.s32.totalorder %s8856_s4, %s6931_s13  ;;  %p6935_p5 = scmp.lt.u32.totalorder %s6931_s13, %s8856_s4 }
  0x4d   :  { %p6937_p6 = pnand %p6935_p5, %p6932_p4 }
  0x4f   :  { %6940 = shalt.err (!%p6937_p6)
}
  0x50   :  { %s6941_s19 = scalar_lea.vmem %s78_s25, 128  ;;  %p6946_p8 = scmp.lt.s32.totalorder %s78_s25, %s78_s25 }
  0x51   :  { %p6942_p7 = scmp.ne.s32.totalorder %s78_s25, %s6941_s19  ;;  %p6947_p9 = scmp.lt.s32.totalorder %s6941_s19, %s6941_s19 }
  0x53   :  { %p6948_p10 = por %p6947_p9, %p6946_p8 }
  0x55   :  { %p6949_p11 = pnand %p6948_p10, %p6942_p7 }
  0x57   :  { %6952 = shalt.err (!%p6949_p11)
}
  0x58   :  { %80 = dma.hbm_to_vmem [thread:$0]  %s8856_s4, 128, %s78_s25, [#allocation10]  }
  0x59   :  { %6997 = dma.done.wait [#allocation4], 128  }
  0x5a   :  { %6998 = vsyncadd [#allocation4], 4294967168 }
  0x5b   :  { %6999 = dma.done.wait [#allocation7], 2176  }
  0x5c   :  { %7000 = vsyncadd [#allocation7], 4294965120 }
  0x5d   :  { %7001 = dma.done.wait [#allocation10], 65664  }
  0x5e   :  { %7002 = vsyncadd [#allocation10], 4294901632  ;;  %v7016_v1 = vmov 0   ;;  %v110_v2 = vld [vmem:[#allocation6] sm:$0xff]  ;;  %v111_v9 = vld [vmem:[#allocation6 + $0x8] sm:$0xff]  ;;  %vm253_vm0 = vcmask 261120  }
  0x5f   :  { %289 = vmatprep.mubr.bf16.mxu0 %v7016_v1  ;;  %332 = vmatprep.mubr.bf16.mxu1 %v7016_v1  ;;  %v114_v3 = vld [vmem:[#allocation6 + $0x20] sm:$0xff]  ;;  %v115_v10 = vld [vmem:[#allocation6 + $0x28] sm:$0xff]  ;;  %v112_v15 = vld [vmem:[#allocation6 + $0x10] sm:$0xff]  ;;  %s7017_s6 = smov [#allocation12]   ;;  %s7018_s2 = smov [#allocation13]  }
  0x60   :  { %v118_v4 = vld [vmem:[#allocation6 + $0x40] sm:$0xff]  ;;  %v5870_v5 = vcombine.high %v110_v2, %v114_v3  ;;  %v5869_v6 = vcombine.low %v110_v2, %v114_v3  ;;  %v5872_v11 = vcombine.high %v111_v9, %v115_v10  ;;  %v5871_v12 = vcombine.low %v111_v9, %v115_v10  ;;  %v119_v13 = vld [vmem:[#allocation6 + $0x48] sm:$0xff]  ;;  %v116_v18 = vld [vmem:[#allocation6 + $0x30] sm:$0xff]  ;;  %s5843_s18 = sshll.u32 %s7017_s6, 4  ;;  %s5853_s3 = sshll.u32 %s7018_s2, 4  ;;  %s5844_s18 = int_to_ptr.vmem [resolvable:$true] %s5843_s18  ;;  %s5854_s3 = int_to_ptr.vmem [resolvable:$true] %s5853_s3 }
  0x61   :  { %v122_v7 = vld [vmem:[#allocation6 + $0x60] sm:$0xff]  ;;  %v123_v14 = vld [vmem:[#allocation6 + $0x68] sm:$0xff]  ;;  %v5874_v19 = vcombine.high %v112_v15, %v116_v18  ;;  %v113_v20 = vld [vmem:[#allocation6 + $0x18] sm:$0xff]  ;;  %v5873_v27 = vcombine.low %v112_v15, %v116_v18  ;;  %s6953_s4 = scalar_lea.vmem %s5844_s18, 128  ;;  %p6958_p13 = scmp.lt.s32.totalorder %s5844_s18, %s5844_s18 }
  0x62   :  { %v5878_v8 = vcombine.high %v118_v4, %v122_v7  ;;  %257 = vmatprep.subr.bf16.mxu0 %v5870_v5  ;;  %v5877_v16 = vcombine.low %v118_v4, %v122_v7  ;;  %v5880_v17 = vcombine.high %v119_v13, %v123_v14  ;;  %300 = vmatprep.subr.bf16.mxu1 %v5872_v11  ;;  %v117_v21 = vld [vmem:[#allocation6 + $0x38] sm:$0xff]  ;;  %v120_v23 = vld [vmem:[#allocation6 + $0x50] sm:$0xff]  ;;  %v853_v30 = vld [vmem:[#allocation9] sm:$0xff]  ;;  %p6954_p12 = scmp.ne.s32.totalorder %s5844_s18, %s6953_s4  ;;  %p6959_p0 = scmp.lt.s32.totalorder %s6953_s4, %s6953_s4 }
  0x63   :  { %258 = vmatpush1.bf16.msra.mxu0 %v5869_v6  ;;  %301 = vmatpush1.bf16.msra.mxu1 %v5871_v12  ;;  %v5879_v22 = vcombine.low %v119_v13, %v123_v14  ;;  %v124_v24 = vld [vmem:[#allocation6 + $0x70] sm:$0xff]  ;;  %v6639_v25 = vld [vmem:[#allocation3] sm:$0xff]   ;;  %v5876_v26 = vcombine.high %v113_v20, %v117_v21  ;;  %v857_v32 = vld [vmem:[#allocation9 + $0x20] sm:$0xff]  ;;  %v5875_v33 = vcombine.low %v113_v20, %v117_v21 }
  0x64   :  { %259 = vmatprep.subr.bf16.mxu0 %v5878_v8  ;;  %302 = vmatprep.subr.bf16.mxu1 %v5880_v17  ;;  %v121_v28 = vld [vmem:[#allocation6 + $0x58] sm:$0xff]  ;;  %v5882_v31 = vcombine.high %v120_v23, %v124_v24  ;;  %v854_v34 = vld [vmem:[#allocation9 + $0x8] sm:$0xff]  ;;  %v5881_v37 = vcombine.low %v120_v23, %v124_v24  ;;  %v861_v38 = vld [vmem:[#allocation9 + $0x40] sm:$0xff]  ;;  %v5890_v40 = vcombine.high %v853_v30, %v857_v32  ;;  %p6960_p1 = por %p6959_p0, %p6958_p13 }
  0x65   :  { %v125_v29 = vld [vmem:[#allocation6 + $0x78] sm:$0xff]  ;;  %v858_v35 = vld [vmem:[#allocation9 + $0x28] sm:$0xff]  ;;  %v865_v39 = vld [vmem:[#allocation9 + $0x60] sm:$0xff]  ;;  %v5889_v45 = vcombine.low %v853_v30, %v857_v32 }
  0x66   :  { %v5884_v36 = vcombine.high %v121_v28, %v125_v29  ;;  %v5883_v41 = vcombine.low %v121_v28, %v125_v29  ;;  %v862_v42 = vld [vmem:[#allocation9 + $0x48] sm:$0xff]  ;;  %v5892_v44 = vcombine.high %v854_v34, %v858_v35  ;;  %v5898_v46 = vcombine.high %v861_v38, %v865_v39  ;;  %v869_v51 = vld [vmem:[#allocation9 + $0x80] sm:$0xff]  ;;  %p6961_p2 = pnand %p6960_p1, %p6954_p12 }
  0x67   :  { %260 = vmatpush1.bf16.msra.mxu0 %v5877_v16  ;;  %303 = vmatpush1.bf16.msra.mxu1 %v5879_v22  ;;  %v866_v43 = vld [vmem:[#allocation9 + $0x68] sm:$0xff]  ;;  %v5891_v47 = vcombine.low %v854_v34, %v858_v35  ;;  %v5897_v49 = vcombine.low %v861_v38, %v865_v39  ;;  %v873_v52 = vld [vmem:[#allocation9 + $0xa0] sm:$0xff] }
  0x68   :  { %343 = vmatprep.subr.bf16.mxu0 %v5874_v19  ;;  %386 = vmatprep.subr.bf16.mxu1 %v5876_v26  ;;  %v5900_v48 = vcombine.high %v862_v42, %v866_v43  ;;  %v5899_v50 = vcombine.low %v862_v42, %v866_v43  ;;  %v870_v53 = vld [vmem:[#allocation9 + $0x88] sm:$0xff]  ;;  %v5906_v54 = vcombine.high %v869_v51, %v873_v52  ;;  %v877_v59 = vld [vmem:[#allocation9 + $0xc0] sm:$0xff] }
  0x69   :  { %v874_v55 = vld [vmem:[#allocation9 + $0xa8] sm:$0xff]  ;;  %v5905_v56 = vcombine.low %v869_v51, %v873_v52  ;;  %v881_v60 = vld [vmem:[#allocation9 + $0xe0] sm:$0xff] }
  0x6a   :  { %5885 = vmatmul.mubr.msk.bf16.vlgmr.msra.gmra.mrb[0].mxu0 %vm253_vm0, %v6639_v25  ;;  %5886 = vmatmul.mubr.msk.bf16.vlgmr.msra.gmra.mrb[0].mxu1 %vm253_vm0, %v6639_v25  ;;  %v5907_v57 = vcombine.low %v870_v53, %v874_v55  ;;  %v5908_v58 = vcombine.high %v870_v53, %v874_v55  ;;  %v878_v61 = vld [vmem:[#allocation9 + $0xc8] sm:$0xff]  ;;  %v5914_v62 = vcombine.high %v877_v59, %v881_v60  ;;  %v885_v3 = vld [vmem:[#allocation9 + $0x100] sm:$0xff] }
  0x6b   :  { %344 = vmatpush1.bf16.msra.mxu0 %v5873_v27  ;;  %375 = vmatprep.mubr.bf16.mxu0 %v7016_v1  ;;  %v882_v63 = vld [vmem:[#allocation9 + $0xe8] sm:$0xff]  ;;  %v5913_v0 = vcombine.low %v877_v59, %v881_v60  ;;  %v889_v4 = vld [vmem:[#allocation9 + $0x120] sm:$0xff] }
  0x6c   :  { %345 = vmatprep.subr.bf16.mxu0 %v5882_v31  ;;  %387 = vmatpush1.bf16.msra.mxu1 %v5875_v33  ;;  %v5916_v2 = vcombine.high %v878_v61, %v882_v63  ;;  %v886_v5 = vld [vmem:[#allocation9 + $0x108] sm:$0xff]  ;;  %v5922_v6 = vcombine.high %v885_v3, %v889_v4  ;;  %v5921_v8 = vcombine.low %v885_v3, %v889_v4  ;;  %v893_v11 = vld [vmem:[#allocation9 + $0x140] sm:$0xff] }
  0x6d   :  { %418 = vmatprep.mubr.bf16.mxu1 %v7016_v1  ;;  %388 = vmatprep.subr.bf16.mxu1 %v5884_v36  ;;  %v5915_v1 = vcombine.low %v878_v61, %v882_v63  ;;  %v890_v7 = vld [vmem:[#allocation9 + $0x128] sm:$0xff]  ;;  %v897_v12 = vld [vmem:[#allocation9 + $0x160] sm:$0xff] }
  0x6e   :  { %v5923_v9 = vcombine.low %v886_v5, %v890_v7  ;;  %v5924_v10 = vcombine.high %v886_v5, %v890_v7  ;;  %v894_v13 = vld [vmem:[#allocation9 + $0x148] sm:$0xff]  ;;  %v5930_v14 = vcombine.high %v893_v11, %v897_v12  ;;  %v5929_v16 = vcombine.low %v893_v11, %v897_v12  ;;  %v901_v19 = vld [vmem:[#allocation9 + $0x180] sm:$0xff] }
  0x6f   :  { %346 = vmatpush1.bf16.msra.mxu0 %v5881_v37  ;;  %v898_v15 = vld [vmem:[#allocation9 + $0x168] sm:$0xff]  ;;  %v905_v20 = vld [vmem:[#allocation9 + $0x1a0] sm:$0xff] }
  0x70   :  { %3967 = vmatprep.subr.bf16.mxu0 %v5890_v40  ;;  %389 = vmatpush1.bf16.msra.mxu1 %v5883_v41  ;;  %v5931_v17 = vcombine.low %v894_v13, %v898_v15  ;;  %v5932_v18 = vcombine.high %v894_v13, %v898_v15  ;;  %v902_v21 = vld [vmem:[#allocation9 + $0x188] sm:$0xff]  ;;  %v5938_v22 = vcombine.high %v901_v19, %v905_v20  ;;  %v909_v27 = vld [vmem:[#allocation9 + $0x1c0] sm:$0xff] }
  0x71   :  { %4139 = vmatprep.subr.bf16.mxu1 %v5892_v44  ;;  %v906_v23 = vld [vmem:[#allocation9 + $0x1a8] sm:$0xff]  ;;  %v5937_v24 = vcombine.low %v901_v19, %v905_v20  ;;  %v913_v28 = vld [vmem:[#allocation9 + $0x1e0] sm:$0xff] }
  0x72   :  { %5887 = vmatmul.mubr.msk.bf16.vlgmr.msra.gmra.mrb[4].mxu0 %vm253_vm0, %v6639_v25  ;;  %v5940_v26 = vcombine.high %v902_v21, %v906_v23  ;;  %v910_v29 = vld [vmem:[#allocation9 + $0x1c8] sm:$0xff]  ;;  %v5946_v30 = vcombine.high %v909_v27, %v913_v28  ;;  %v5945_v32 = vcombine.low %v909_v27, %v913_v28  ;;  %v917_v35 = vld [vmem:[#allocation9 + $0x200] sm:$0xff] }
  0x73   :  { %3968 = vmatpush1.bf16.msra.mxu0 %v5889_v45  ;;  %5888 = vmatmul.mubr.msk.bf16.vlgmr.msra.gmra.mrb[4].mxu1 %vm253_vm0, %v6639_v25  ;;  %v5939_v25 = vcombine.low %v902_v21, %v906_v23  ;;  %v914_v31 = vld [vmem:[#allocation9 + $0x1e8] sm:$0xff]  ;;  %v921_v36 = vld [vmem:[#allocation9 + $0x220] sm:$0xff] }
  0x74   :  { %3969 = vmatprep.subr.bf16.mxu0 %v5898_v46  ;;  %4140 = vmatpush1.bf16.msra.mxu1 %v5891_v47  ;;  %v5947_v33 = vcombine.low %v910_v29, %v914_v31  ;;  %v5948_v34 = vcombine.high %v910_v29, %v914_v31  ;;  %v918_v37 = vld [vmem:[#allocation9 + $0x208] sm:$0xff]  ;;  %v5954_v38 = vcombine.high %v917_v35, %v921_v36  ;;  %v925_v43 = vld [vmem:[#allocation9 + $0x240] sm:$0xff] }
  0x75   :  { %4141 = vmatprep.subr.bf16.mxu1 %v5900_v48  ;;  %v922_v39 = vld [vmem:[#allocation9 + $0x228] sm:$0xff]  ;;  %v5953_v40 = vcombine.low %v917_v35, %v921_v36  ;;  %v929_v44 = vld [vmem:[#allocation9 + $0x260] sm:$0xff] }
  0x76   :  { %v5955_v41 = vcombine.low %v918_v37, %v922_v39  ;;  %v5956_v42 = vcombine.high %v918_v37, %v922_v39  ;;  %v926_v45 = vld [vmem:[#allocation9 + $0x248] sm:$0xff]  ;;  %v5962_v46 = vcombine.high %v925_v43, %v929_v44  ;;  %v5961_v48 = vcombine.low %v925_v43, %v929_v44  ;;  %v933_v51 = vld [vmem:[#allocation9 + $0x280] sm:$0xff] }
  0x77   :  { %3970 = vmatpush1.bf16.msra.mxu0 %v5897_v49  ;;  %v930_v47 = vld [vmem:[#allocation9 + $0x268] sm:$0xff]  ;;  %v937_v52 = vld [vmem:[#allocation9 + $0x2a0] sm:$0xff]  ;;  %v128_v43 = vlaneseq }
  0x78   :  { %4142 = vmatpush1.bf16.msra.mxu1 %v5899_v50  ;;  %3971 = vmatprep.subr.bf16.mxu0 %v5906_v54  ;;  %v5963_v49 = vcombine.low %v926_v45, %v930_v47  ;;  %v5964_v50 = vcombine.high %v926_v45, %v930_v47  ;;  %v934_v53 = vld [vmem:[#allocation9 + $0x288] sm:$0xff]  ;;  %v5970_v54 = vcombine.high %v933_v51, %v937_v52  ;;  %v941_v59 = vld [vmem:[#allocation9 + $0x2c0] sm:$0xff] }
  0x79   :  { %4143 = vmatprep.subr.bf16.mxu1 %v5908_v58  ;;  %v938_v55 = vld [vmem:[#allocation9 + $0x2a8] sm:$0xff]  ;;  %v945_v60 = vld [vmem:[#allocation9 + $0x2e0] sm:$0xff]  ;;  %v7147_v44 = vshrl.u32 %v128_v43, 7 }
  0x7a   :  { %v5972_v58 = vcombine.high %v934_v53, %v938_v55  ;;  %v942_v61 = vld [vmem:[#allocation9 + $0x2c8] sm:$0xff]  ;;  %v949_v3 = vld [vmem:[#allocation9 + $0x300] sm:$0xff] }
  0x7b   :  { %3972 = vmatpush1.bf16.msra.mxu0 %v5905_v56  ;;  %v5969_v56 = vcombine.low %v933_v51, %v937_v52  ;;  %v946_v63 = vld [vmem:[#allocation9 + $0x2e8] sm:$0xff]  ;;  %v953_v4 = vld [vmem:[#allocation9 + $0x320] sm:$0xff]  ;;  %8909 = vst [vmem:[#allocation20_spill] sm:$0xff] %v7147_v44  ;;  %v8864_v45 = vsub.s32 0, %v7147_v44  ;;  %v8862_v47 = vsub.s32 1, %v7147_v44 }
  0x7c   :  { %4144 = vmatpush1.bf16.msra.mxu1 %v5907_v57  ;;  %3973 = vmatprep.subr.bf16.mxu0 %v5914_v62  ;;  %v5971_v57 = vcombine.low %v934_v53, %v938_v55  ;;  %v5978_v62 = vcombine.high %v941_v59, %v945_v60  ;;  %v950_v5 = vld [vmem:[#allocation9 + $0x308] sm:$0xff]  ;;  %v957_v11 = vld [vmem:[#allocation9 + $0x340] sm:$0xff] }
  0x7d   :  { %4145 = vmatprep.subr.bf16.mxu1 %v5916_v2  ;;  %v5980_v2 = vcombine.high %v942_v61, %v946_v63  ;;  %v954_v7 = vld [vmem:[#allocation9 + $0x328] sm:$0xff]  ;;  %v961_v12 = vld [vmem:[#allocation9 + $0x360] sm:$0xff] }
  0x7e   :  { %v958_v13 = vld [vmem:[#allocation9 + $0x348] sm:$0xff]  ;;  %v965_v19 = vld [vmem:[#allocation9 + $0x380] sm:$0xff] }
  0x7f   :  { %3974 = vmatpush1.bf16.msra.mxu0 %v5913_v0  ;;  %v5977_v0 = vcombine.low %v941_v59, %v945_v60  ;;  %v962_v15 = vld [vmem:[#allocation9 + $0x368] sm:$0xff]  ;;  %v969_v20 = vld [vmem:[#allocation9 + $0x3a0] sm:$0xff] }
  0x80   :  { %4146 = vmatpush1.bf16.msra.mxu1 %v5915_v1  ;;  %3975 = vmatprep.subr.bf16.mxu0 %v5922_v6  ;;  %v5979_v1 = vcombine.low %v942_v61, %v946_v63  ;;  %v5986_v6 = vcombine.high %v949_v3, %v953_v4  ;;  %v966_v21 = vld [vmem:[#allocation9 + $0x388] sm:$0xff]  ;;  %v973_v27 = vld [vmem:[#allocation9 + $0x3c0] sm:$0xff] }
  0x81   :  { %4147 = vmatprep.subr.bf16.mxu1 %v5924_v10  ;;  %v5988_v10 = vcombine.high %v950_v5, %v954_v7  ;;  %v970_v23 = vld [vmem:[#allocation9 + $0x3a8] sm:$0xff]  ;;  %v977_v28 = vld [vmem:[#allocation9 + $0x3e0] sm:$0xff] }
  0x82   :  { %v974_v29 = vld [vmem:[#allocation9 + $0x3c8] sm:$0xff]  ;;  %v7131_v35 = vld [vmem:[#allocation9 + $0x400] sm:$0xff] }
  0x83   :  { %3976 = vmatpush1.bf16.msra.mxu0 %v5921_v8  ;;  %v5985_v8 = vcombine.low %v949_v3, %v953_v4  ;;  %v978_v31 = vld [vmem:[#allocation9 + $0x3e8] sm:$0xff]  ;;  %v7133_v36 = vld [vmem:[#allocation9 + $0x420] sm:$0xff] }
  0x84   :  { %4148 = vmatpush1.bf16.msra.mxu1 %v5923_v9  ;;  %3977 = vmatprep.subr.bf16.mxu0 %v5930_v14  ;;  %v5987_v9 = vcombine.low %v950_v5, %v954_v7  ;;  %v5994_v14 = vcombine.high %v957_v11, %v961_v12  ;;  %v7135_v37 = vld [vmem:[#allocation9 + $0x408] sm:$0xff]  ;;  %v7161_v52 = vld [vmem:[#allocation9 + $0x440] sm:$0xff] }
  0x85   :  { %4149 = vmatprep.subr.bf16.mxu1 %v5932_v18  ;;  %v5996_v18 = vcombine.high %v958_v13, %v962_v15  ;;  %v7139_v39 = vld [vmem:[#allocation9 + $0x428] sm:$0xff]  ;;  %v7163_v53 = vld [vmem:[#allocation9 + $0x460] sm:$0xff] }
  0x86   :  { %v7167_v55 = vld [vmem:[#allocation9 + $0x468] sm:$0xff]  ;;  %v7197_v7 = vld [vmem:[#allocation9 + $0x4c0] sm:$0xff] }
  0x87   :  { %3978 = vmatpush1.bf16.msra.mxu0 %v5929_v16  ;;  %v5993_v16 = vcombine.low %v957_v11, %v961_v12  ;;  %v7185_v63 = vld [vmem:[#allocation9 + $0x488] sm:$0xff]  ;;  %8915 = vst [vmem:[#allocation26_spill] sm:$0xff] %v7197_v7 }
  0x88   :  { %4150 = vmatpush1.bf16.msra.mxu1 %v5931_v17  ;;  %3979 = vmatprep.subr.bf16.mxu0 %v5938_v22  ;;  %v5995_v17 = vcombine.low %v958_v13, %v962_v15  ;;  %v6002_v22 = vcombine.high %v965_v19, %v969_v20  ;;  %8913 = vst [vmem:[#allocation24_spill] sm:$0xff] %v7185_v63  ;;  %v7210_v15 = vld [vmem:[#allocation9 + $0x4c8] sm:$0xff] }
  0x89   :  { %4151 = vmatprep.subr.bf16.mxu1 %v5940_v26  ;;  %v6004_v26 = vcombine.high %v966_v21, %v970_v23  ;;  %8917 = vst [vmem:[#allocation28_spill] sm:$0xff] %v7210_v15  ;;  %v7250_v43 = vld [vmem:[#allocation9 + $0x528] sm:$0xff] }
  0x8a   :  { %8922 = vst [vmem:[#allocation33_spill] sm:$0xff] %v7250_v43 }
  0x8b   :  { %3980 = vmatpush1.bf16.msra.mxu0 %v5937_v24  ;;  %v6001_v24 = vcombine.low %v965_v19, %v969_v20 }
  0x8c   :  { %4152 = vmatpush1.bf16.msra.mxu1 %v5939_v25  ;;  %3981 = vmatprep.subr.bf16.mxu0 %v5946_v30  ;;  %v6003_v25 = vcombine.low %v966_v21, %v970_v23  ;;  %v6010_v30 = vcombine.high %v973_v27, %v977_v28  ;;  %v7225_v23 = vld [vmem:[#allocation9 + $0x520] sm:$0xff] }
  0x8d   :  { %4153 = vmatprep.subr.bf16.mxu1 %v5948_v34  ;;  %v6012_v34 = vcombine.high %v974_v29, %v978_v31  ;;  %8920 = vst [vmem:[#allocation31_spill] sm:$0xff] %v7225_v23  ;;  %v7265_v21 = vld [vmem:[#allocation9 + $0x560] sm:$0xff] }
  0x8f   :  { %3982 = vmatpush1.bf16.msra.mxu0 %v5945_v32  ;;  %v6009_v32 = vcombine.low %v973_v27, %v977_v28 }
  0x90   :  { %4154 = vmatpush1.bf16.msra.mxu1 %v5947_v33  ;;  %3983 = vmatprep.subr.bf16.mxu0 %v5954_v38  ;;  %v6011_v33 = vcombine.low %v974_v29, %v978_v31  ;;  %v6018_v38 = vcombine.high %v7131_v35, %v7133_v36 }
  0x91   :  { %4155 = vmatprep.subr.bf16.mxu1 %v5956_v42  ;;  %v6020_v42 = vcombine.high %v7135_v37, %v7139_v39 }
  0x93   :  { %3984 = vmatpush1.bf16.msra.mxu0 %v5953_v40 }
  0x94   :  { %4156 = vmatpush1.bf16.msra.mxu1 %v5955_v41  ;;  %3985 = vmatprep.subr.bf16.mxu0 %v5962_v46  ;;  %v7150_v46 = vld [vmem:[#allocation8] sm:$0xff] }
  0x95   :  { %4157 = vmatprep.subr.bf16.mxu1 %v5964_v50  ;;  %8910 = vst [vmem:[#allocation21_spill] sm:$0xff] %v7150_v46  ;;  %v8861_v50 = vsub.s32 3, %v7147_v44  ;;  %v135_v51 = vrot.slane %v7150_v46, %v8862_v47 }
  0x97   :  { %3986 = vmatpush1.bf16.msra.mxu0 %v5961_v48  ;;  %v131_v48 = vrot.slane %v7150_v46, %v8864_v45 }
  0x98   :  { %4158 = vmatpush1.bf16.msra.mxu1 %v5963_v49  ;;  %3987 = vmatprep.subr.bf16.mxu0 %v5970_v54  ;;  %v8863_v49 = vsub.s32 2, %v7147_v44  ;;  %v7165_v54 = vld [vmem:[#allocation9 + $0x448] sm:$0xff] }
  0x99   :  { %4159 = vmatprep.subr.bf16.mxu1 %v5972_v58  ;;  %v7171_v58 = vld [vmem:[#allocation9 + $0x4a0] sm:$0xff] }
  0x9a   :  { %8912 = vst [vmem:[#allocation23_spill] sm:$0xff] %v7171_v58  ;;  %v7178_v61 = vrot.slane %v7150_v46, %v8863_v49 }
  0x9b   :  { %3988 = vmatpush1.bf16.msra.mxu0 %v5969_v56 }
  0x9c   :  { %4160 = vmatpush1.bf16.msra.mxu1 %v5971_v57  ;;  %3989 = vmatprep.subr.bf16.mxu0 %v5978_v62  ;;  %v7169_v57 = vld [vmem:[#allocation9 + $0x480] sm:$0xff]  ;;  %v7183_v62 = vrot.slane %v7150_v46, %v8861_v50 }
  0x9d   :  { %4161 = vmatprep.subr.bf16.mxu1 %v5980_v2  ;;  %8911 = vst [vmem:[#allocation22_spill] sm:$0xff] %v7169_v57 }
  0x9f   :  { %3990 = vmatpush1.bf16.msra.mxu0 %v5977_v0  ;;  %v7187_v0 = vld [vmem:[#allocation9 + $0x4a8] sm:$0xff] }
  0xa0   :  { %4162 = vmatpush1.bf16.msra.mxu1 %v5979_v1  ;;  %3991 = vmatprep.subr.bf16.mxu0 %v5986_v6  ;;  %8914 = vst [vmem:[#allocation25_spill] sm:$0xff] %v7187_v0 }
  0xa1   :  { %4163 = vmatprep.subr.bf16.mxu1 %v5988_v10 }
  0xa3   :  { %3992 = vmatpush1.bf16.msra.mxu0 %v5985_v8  ;;  %v7199_v8 = vld [vmem:[#allocation9 + $0x4e0] sm:$0xff] }
  0xa4   :  { %4164 = vmatpush1.bf16.msra.mxu1 %v5987_v9  ;;  %3993 = vmatprep.subr.bf16.mxu0 %v5994_v14  ;;  %8916 = vst [vmem:[#allocation27_spill] sm:$0xff] %v7199_v8 }
  0xa5   :  { %4165 = vmatprep.subr.bf16.mxu1 %v5996_v18 }
  0xa7   :  { %3994 = vmatpush1.bf16.msra.mxu0 %v5993_v16  ;;  %v7212_v16 = vld [vmem:[#allocation9 + $0x4e8] sm:$0xff] }
  0xa8   :  { %4166 = vmatpush1.bf16.msra.mxu1 %v5995_v17  ;;  %3995 = vmatprep.subr.bf16.mxu0 %v6002_v22  ;;  %8918 = vst [vmem:[#allocation29_spill] sm:$0xff] %v7212_v16  ;;  %v7223_v22 = vld [vmem:[#allocation9 + $0x500] sm:$0xff] }
  0xa9   :  { %4167 = vmatprep.subr.bf16.mxu1 %v6004_v26  ;;  %8919 = vst [vmem:[#allocation30_spill] sm:$0xff] %v7223_v22 }
  0xab   :  { %3996 = vmatpush1.bf16.msra.mxu0 %v6001_v24 }
  0xac   :  { %4168 = vmatpush1.bf16.msra.mxu1 %v6003_v25  ;;  %3997 = vmatprep.subr.bf16.mxu0 %v6010_v30 }
  0xad   :  { %4169 = vmatprep.subr.bf16.mxu1 %v6012_v34 }
  0xaf   :  { %3998 = vmatpush1.bf16.msra.mxu0 %v6009_v32 }
  0xb0   :  { %4170 = vmatpush1.bf16.msra.mxu1 %v6011_v33  ;;  %4010 = vmatprep.subr.bf16.mxu0 %v6018_v38  ;;  %v8866_v38 = vsub.s32 5, %v7147_v44 }
  0xb1   :  { %4182 = vmatprep.subr.bf16.mxu1 %v6020_v42  ;;  %v7248_v42 = vld [vmem:[#allocation9 + $0x508] sm:$0xff] }
  0xb2   :  { %8921 = vst [vmem:[#allocation32_spill] sm:$0xff] %v7248_v42 }
 0x13d   :  { %v291_v56 = vpop.f32.mrb[0].mxu0  ;;  %v334_v3 = vpop.f32.mrb[0].mxu1 }
 0x13e   :  { %v7173_v59 = vadd.f32 %v291_v56, %v131_v48  ;;  %v293_v60 = vpop.f32.mrb[1].mxu0  ;;  %v336_v12 = vpop.f32.mrb[1].mxu1  ;;  %v7257_v47 = vadd.f32 %v334_v3, %v7178_v61 }
 0x13f   :  { %v7189_v1 = vadd.f32 %v293_v60, %v135_v51  ;;  %v295_v2 = vpop.f32.mrb[2].mxu0  ;;  %v338_v19 = vpop.f32.mrb[2].mxu1  ;;  %v7253_v60 = vld [vmem:[#allocation9 + $0x540] sm:$0xff]  ;;  %v7263_v27 = vadd.f32 %v336_v12, %v7183_v62 }
 0x140   :  { %v7202_v9 = vmul.f32 0.70710677, %v7173_v59  ;;  %v7204_v10 = vadd.f32 %v295_v2, %v131_v48  ;;  %v297_v11 = vpop.f32.mrb[3].mxu0  ;;  %v8865_v2 = vsub.s32 4, %v7147_v44  ;;  %v340_v49 = vpop.f32.mrb[3].mxu1 }
 0x141   :  { %v7215_v17 = vmul.f32 0.70710677, %v7189_v1  ;;  %v7217_v18 = vadd.f32 %v297_v11, %v135_v51  ;;  %v7301_v12 = vmul.f32 0.5, %v7189_v1 }
 0x142   :  { %v445_v24 = vand.u32 2147483647, %v7202_v9  ;;  %v7229_v25 = vmul.f32 0.70710677, %v7204_v10  ;;  %v7287_v26 = vrot.slane %v7150_v46, %v8865_v2  ;;  %v7305_v2 = vadd.f32 %v338_v19, %v7178_v61 }
 0x143   :  { %v446_v28 = vand.u32 2147483647, %v7215_v17  ;;  %v7237_v29 = vmul.f32 0.70710677, %v7217_v18  ;;  %v7318_v19 = vmul.f32 0.5, %v7217_v18  ;;  %vm749_vm1 = vcmp.ge.f32.partialorder %v7202_v9, 0.0 }
 0x144   :  { %v461_v32 = vmul.f32 0.3275911, %v445_v24  ;;  %v453_v33 = vand.u32 2147483647, %v7229_v25  ;;  %v653_v48 = vsub.f32 0.0, %v445_v24  ;;  %vm750_vm2 = vcmp.ge.f32.partialorder %v7215_v17, 0.0 }
 0x145   :  { %v462_v51 = vmul.f32 0.3275911, %v446_v28  ;;  %v454_v56 = vand.u32 2147483647, %v7237_v29  ;;  %v7259_v45 = vpop.f32.mrb[4].mxu0  ;;  %v654_v30 = vsub.f32 0.0, %v446_v28 }
 0x146   :  { %v477_v11 = vadd.f32 1.0, %v461_v32  ;;  %v469_v50 = vmul.f32 0.3275911, %v453_v33  ;;  %v7267_v20 = vpop.f32.mrb[5].mxu0  ;;  %v661_v6 = vsub.f32 0.0, %v453_v33  ;;  %vm757_vm3 = vcmp.ge.f32.partialorder %v7229_v25, 0.0 }
 0x147   :  { %v478_v31 = vadd.f32 1.0, %v462_v51  ;;  %v470_v34 = vmul.f32 0.3275911, %v454_v56  ;;  %v7273_v14 = vpop.f32.mrb[6].mxu0  ;;  %v669_v51 = vmul.f32 %v653_v48, %v445_v24  ;;  %v7290_v24 = vmul.f32 0.5, %v7173_v59 }
 0x148   :  { %6704 = vrcp.f32 %v477_v11  ;;  %v485_v32 = vadd.f32 1.0, %v469_v50  ;;  %v7277_v4 = vpop.f32.mrb[7].mxu0  ;;  %v7280_v11 = vmul.f32 0.70710677, %v7257_v47  ;;  %v7293_v48 = vmul.f32 0.70710677, %v7263_v27 }
 0x149   :  { %6706 = vrcp.f32 %v478_v31  ;;  %v486_v13 = vadd.f32 1.0, %v470_v34  ;;  %v670_v31 = vmul.f32 %v654_v30, %v446_v28  ;;  %v7298_v34 = vrot.slane %v7150_v46, %v8866_v38 }
 0x14a   :  { %6708 = vrcp.f32 %v485_v32  ;;  %v447_v50 = vand.u32 2147483647, %v7280_v11  ;;  %v685_v59 = vmul.f32 1.442695, %v669_v51  ;;  %v677_v3 = vmul.f32 %v661_v6, %v453_v33 }
 0x14b   :  { %v448_v28 = vand.u32 2147483647, %v7293_v48  ;;  %v7309_v30 = vadd.f32 %v340_v49, %v7183_v62  ;;  %6710 = vrcp.f32 %v486_v13  ;;  %v662_v5 = vsub.f32 0.0, %v454_v56  ;;  %v7321_v62 = vpop.f32.mrb[4].mxu1 }
 0x14c   :  { %v463_v38 = vmul.f32 0.3275911, %v447_v50  ;;  %v7312_v41 = vmul.f32 0.70710677, %v7305_v2  ;;  %v687_v1 = vmul.f32 1.442695, %v670_v31  ;;  %6712 = vpow2.f32 %v685_v59 }
 0x14d   :  { %8923 = vst [vmem:[#allocation34_spill] sm:$0xff] %v7309_v30  ;;  %v7315_v32 = vmul.f32 0.5, %v7204_v10  ;;  %v655_v40 = vsub.f32 0.0, %v447_v50  ;;  %v464_v61 = vmul.f32 0.3275911, %v448_v28  ;;  %v656_v33 = vsub.f32 0.0, %v448_v28 }
 0x14e   :  { %v479_v6 = vadd.f32 1.0, %v463_v38  ;;  %v455_v49 = vand.u32 2147483647, %v7312_v41  ;;  %8924 = vst [vmem:[#allocation35_spill] sm:$0xff] %v7321_v62  ;;  %v701_v13 = vmul.f32 1.442695, %v677_v3  ;;  %v678_v10 = vmul.f32 %v662_v5, %v454_v56 }
 0x14f   :  { %v480_v51 = vadd.f32 1.0, %v464_v61  ;;  %v7324_v46 = vmul.f32 0.70710677, %v7309_v30  ;;  %v7328_v18 = vpop.f32.mrb[5].mxu1  ;;  %v671_v23 = vmul.f32 %v655_v40, %v447_v50  ;;  %v672_v61 = vmul.f32 %v656_v33, %v448_v28 }
 0x150   :  { %6714 = vrcp.f32 %v479_v6  ;;  %v471_v44 = vmul.f32 0.3275911, %v455_v49  ;;  %v663_v43 = vsub.f32 0.0, %v455_v49  ;;  %8925 = vst [vmem:[#allocation36_spill] sm:$0xff] %v7328_v18  ;;  %v7335_v22 = vpop.f32.mrb[6].mxu1  ;;  %v7338_v56 = vmul.f32 0.5, %v7257_v47 }
 0x151   :  { %6716 = vrcp.f32 %v480_v51  ;;  %v456_v3 = vand.u32 2147483647, %v7324_v46  ;;  %8926 = vst [vmem:[#allocation37_spill] sm:$0xff] %v7335_v22  ;;  %v7340_v18 = vpop.f32.mrb[7].mxu1  ;;  %v703_v50 = vmul.f32 1.442695, %v678_v10  ;;  %v7414_v17 = vadd.f32 %v7267_v20, %v7298_v34 }
 0x152   :  { %v7326_v31 = vpop.eup %6704  ;;  %6718 = vpow2.f32 %v687_v1  ;;  %v487_v62 = vadd.f32 1.0, %v471_v44  ;;  %8927 = vst [vmem:[#allocation38_spill] sm:$0xff] %v7340_v18  ;;  %v679_v51 = vmul.f32 %v663_v43, %v455_v49  ;;  %v689_v28 = vmul.f32 1.442695, %v671_v23 }
 0x153   :  { %v7330_v38 = vpop.eup %6706  ;;  %v509_v42 = vmul.f32 1.0614054, %v7326_v31  ;;  %6720 = vpow2.f32 %v701_v13  ;;  %v472_v6 = vmul.f32 0.3275911, %v456_v3  ;;  %v691_v13 = vmul.f32 1.442695, %v672_v61 }
 0x154   :  { %v510_v59 = vmul.f32 1.0614054, %v7330_v38  ;;  %v7342_v16 = vpop.eup %6708  ;;  %6722 = vrcp.f32 %v487_v62  ;;  %v664_v22 = vsub.f32 0.0, %v456_v3  ;;  %v7351_v18 = vadd.f32 %v7259_v45, %v7287_v26 }
 0x155   :  { %v525_v5 = vadd.f32 -1.4531521, %v509_v42  ;;  %v517_v44 = vmul.f32 1.0614054, %v7342_v16  ;;  %v488_v33 = vadd.f32 1.0, %v472_v6  ;;  %v7346_v42 = vpop.eup %6710  ;;  %vm758_vm4 = vcmp.ge.f32.partialorder %v7237_v29, 0.0 }
 0x156   :  { %v526_v40 = vadd.f32 -1.4531521, %v510_v59  ;;  %8928 = vst [vmem:[#allocation39_spill] sm:$0xff] %v7351_v18  ;;  %v518_v43 = vmul.f32 1.0614054, %v7346_v42  ;;  %vm751_vm5 = vcmp.ge.f32.partialorder %v7280_v11, 0.0 }
 0x157   :  { %v541_v1 = vmul.f32 %v7326_v31, %v525_v5  ;;  %v533_v10 = vadd.f32 -1.4531521, %v517_v44  ;;  %6724 = vrcp.f32 %v488_v33  ;;  %v705_v62 = vmul.f32 1.442695, %v679_v51  ;;  %v6713_v5 = vpop.eup %6712 }
 0x158   :  { %v542_v47 = vmul.f32 %v7330_v38, %v526_v40  ;;  %6726 = vpow2.f32 %v703_v50  ;;  %v7355_v23 = vmul.f32 0.70710677, %v7351_v18  ;;  %v534_v40 = vadd.f32 -1.4531521, %v518_v43 }
 0x159   :  { %v557_v59 = vadd.f32 1.4214138, %v541_v1  ;;  %v549_v61 = vmul.f32 %v7342_v16, %v533_v10  ;;  %6728 = vpow2.f32 %v689_v28  ;;  %v680_v44 = vmul.f32 %v664_v22, %v456_v3 }
 0x15a   :  { %v558_v49 = vadd.f32 1.4214138, %v542_v47  ;;  %8929 = vst [vmem:[#allocation40_spill] sm:$0xff] %v7355_v23  ;;  %v7359_v45 = vpop.eup %6714  ;;  %6730 = vpow2.f32 %v691_v13  ;;  %v7363_v33 = vand.u32 2147483647, %v7355_v23  ;;  %v550_v18 = vmul.f32 %v7346_v42, %v534_v40 }
 0x15b   :  { %v573_v6 = vmul.f32 %v7326_v31, %v557_v59  ;;  %v7365_v50 = vpop.eup %6716  ;;  %v565_v47 = vadd.f32 1.4214138, %v549_v61  ;;  %v511_v59 = vmul.f32 1.0614054, %v7359_v45  ;;  %6732 = vpow2.f32 %v705_v62 }
 0x15c   :  { %v574_v1 = vmul.f32 %v7330_v38, %v558_v49  ;;  %v6719_v10 = vpop.eup %6718  ;;  %v512_v28 = vmul.f32 1.0614054, %v7365_v50  ;;  %v465_v49 = vmul.f32 0.3275911, %v7363_v33  ;;  %v566_v23 = vadd.f32 1.4214138, %v550_v18 }
 0x15d   :  { %v589_v51 = vadd.f32 -0.28449672, %v573_v6  ;;  %v6721_v13 = vpop.eup %6720  ;;  %v581_v3 = vmul.f32 %v7342_v16, %v565_v47  ;;  %v527_v15 = vadd.f32 -1.4531521, %v511_v59  ;;  %v707_v8 = vmul.f32 1.442695, %v680_v44 }
 0x15e   :  { %v590_v43 = vadd.f32 -0.28449672, %v574_v1  ;;  %v7373_v6 = vpop.eup %6722  ;;  %v528_v40 = vadd.f32 -1.4531521, %v512_v28  ;;  %v481_v7 = vadd.f32 1.0, %v465_v49  ;;  %v582_v62 = vmul.f32 %v7346_v42, %v566_v23 }
 0x15f   :  { %v605_v22 = vmul.f32 %v7326_v31, %v589_v51  ;;  %v597_v0 = vadd.f32 -0.28449672, %v581_v3  ;;  %v543_v63 = vmul.f32 %v7359_v45, %v527_v15  ;;  %v519_v18 = vmul.f32 1.0614054, %v7373_v6 }
 0x160   :  { %v606_v61 = vmul.f32 %v7330_v38, %v590_v43  ;;  %v544_v47 = vmul.f32 %v7365_v50, %v528_v40  ;;  %6734 = vrcp.f32 %v481_v7  ;;  %v598_v28 = vadd.f32 -0.28449672, %v582_v62 }
 0x161   :  { %v621_v1 = vadd.f32 0.2548296, %v605_v22  ;;  %v7381_v59 = vpop.eup %6724  ;;  %v613_v44 = vmul.f32 %v7342_v16, %v597_v0  ;;  %v559_v23 = vadd.f32 1.4214138, %v543_v63  ;;  %v535_v3 = vadd.f32 -1.4531521, %v519_v18 }
 0x162   :  { %v622_v51 = vadd.f32 0.2548296, %v606_v61  ;;  %v6727_v49 = vpop.eup %6726  ;;  %v560_v22 = vadd.f32 1.4214138, %v544_v47  ;;  %v520_v61 = vmul.f32 1.0614054, %v7381_v59  ;;  %v614_v57 = vmul.f32 %v7346_v42, %v598_v28 }
 0x163   :  { %v637_v43 = vmul.f32 %v7326_v31, %v621_v1  ;;  %v6729_v40 = vpop.eup %6728  ;;  %v629_v7 = vadd.f32 0.2548296, %v613_v44  ;;  %v575_v31 = vmul.f32 %v7359_v45, %v559_v23  ;;  %v551_v0 = vmul.f32 %v7373_v6, %v535_v3 }
 0x164   :  { %v638_v15 = vmul.f32 %v7330_v38, %v622_v51  ;;  %v6731_v1 = vpop.eup %6730  ;;  %v576_v63 = vmul.f32 %v7365_v50, %v560_v22  ;;  %v536_v38 = vadd.f32 -1.4531521, %v520_v61  ;;  %v630_v47 = vadd.f32 0.2548296, %v614_v57 }
 0x165   :  { %v717_v58 = vmul.f32 %v6713_v5, %v637_v43  ;;  %v645_v51 = vmul.f32 %v7342_v16, %v629_v7  ;;  %v591_v18 = vadd.f32 -0.28449672, %v575_v31  ;;  %v6733_v5 = vpop.eup %6732  ;;  %v567_v28 = vadd.f32 1.4214138, %v551_v0 }
 0x166   :  { %v718_v30 = vmul.f32 %v6719_v10, %v638_v15  ;;  %v592_v44 = vadd.f32 -0.28449672, %v576_v63  ;;  %v552_v10 = vmul.f32 %v7381_v59, %v536_v38  ;;  %v646_v22 = vmul.f32 %v7346_v42, %v630_v47 }
 0x167   :  { %v733_v62 = vsub.f32 1.0, %v717_v58  ;;  %v725_v15 = vmul.f32 %v6721_v13, %v645_v51  ;;  %v607_v3 = vmul.f32 %v7359_v45, %v591_v18  ;;  %v583_v58 = vmul.f32 %v7373_v6, %v567_v28 }
 0x168   :  { %v734_v43 = vsub.f32 1.0, %v718_v30  ;;  %v608_v57 = vmul.f32 %v7365_v50, %v592_v44  ;;  %v568_v16 = vadd.f32 1.4214138, %v552_v10  ;;  %v726_v31 = vmul.f32 %v6727_v49, %v646_v22 }
 0x169   :  { %v765_v23 = vsub.f32 0.0, %v733_v62  ;;  %v741_v7 = vsub.f32 1.0, %v725_v15  ;;  %v623_v63 = vadd.f32 0.2548296, %v607_v3  ;;  %v599_v38 = vadd.f32 -0.28449672, %v583_v58 }
 0x16a   :  { %v766_v61 = vsub.f32 0.0, %v734_v43  ;;  %v7403_v0 = vpop.eup %6734  ;;  %v624_v13 = vadd.f32 0.2548296, %v608_v57  ;;  %6736 = vpow2.f32 %v707_v8  ;;  %v742_v18 = vsub.f32 1.0, %v726_v31 }
 0x16b   :  { %v781_v30 = vsel %vm749_vm1, %v733_v62, %v765_v23  ;;  %v773_v47 = vsub.f32 0.0, %v741_v7  ;;  %v639_v44 = vmul.f32 %v7359_v45, %v623_v63  ;;  %vm752_vm6 = vcmp.ge.f32.partialorder %v7293_v48, 0.0 }
 0x16c   :  { %v782_v42 = vsel %vm750_vm2, %v734_v43, %v766_v61  ;;  %v813_v51 = vadd.f32 1.0, %v781_v30  ;;  %v640_v28 = vmul.f32 %v7365_v50, %v624_v13  ;;  %v615_v9 = vmul.f32 %v7373_v6, %v599_v38 }
 0x16d   :  { %v584_v49 = vmul.f32 %v7381_v59, %v568_v16  ;;  %v814_v62 = vadd.f32 1.0, %v782_v42  ;;  %v789_v8 = vsel %vm757_vm3, %v741_v7, %v773_v47  ;;  %v774_v43 = vsub.f32 0.0, %v742_v18 }
 0x16e   :  { %v719_v10 = vmul.f32 %v6729_v40, %v639_v44  ;;  %v821_v23 = vadd.f32 1.0, %v789_v8  ;;  %v720_v45 = vmul.f32 %v6731_v1, %v640_v28  ;;  %v631_v15 = vadd.f32 0.2548296, %v615_v9 }
 0x16f   :  { %v600_v50 = vadd.f32 -0.28449672, %v584_v49  ;;  %v829_v22 = vmul.f32 %v813_v51, %v7290_v24  ;;  %v790_v3 = vsel %vm758_vm4, %v742_v18, %v774_v43  ;;  %v513_v57 = vmul.f32 1.0614054, %v7403_v0 }
 0x170   :  { %v735_v61 = vsub.f32 1.0, %v719_v10  ;;  %v837_v20 = vmul.f32 %v821_v23, %v7315_v32  ;;  %v822_v58 = vadd.f32 1.0, %v790_v3  ;;  %v736_v16 = vsub.f32 1.0, %v720_v45  ;;  %v7472_v10 = vld [vmem:[#allocation9 + $0x548] sm:$0xff] }
 0x171   :  { %v647_v25 = vmul.f32 %v7373_v6, %v631_v15  ;;  %v616_v40 = vmul.f32 %v7381_v59, %v600_v50  ;;  %v529_v1 = vadd.f32 -1.4531521, %v513_v57  ;;  %v7427_v7 = vadd.f32 %v7273_v14, %v7287_v26  ;;  %v7474_v23 = vld [vmem:[#allocation9 + $0x568] sm:$0xff]  ;;  %v7490_v15 = vld [vmem:[#allocation9 + $0x580] sm:$0xff] }
 0x172   :  { %v767_v30 = vsub.f32 0.0, %v735_v61  ;;  %v830_v29 = vmul.f32 %v814_v62, %v7301_v12  ;;  %v7430_v24 = vpack.c.bf16 %v837_v20, %v829_v22  ;;  %v838_v31 = vmul.f32 %v822_v58, %v7318_v19  ;;  %v7495_v57 = vld [vmem:[#allocation9 + $0x5a0] sm:$0xff]  ;;  %v7497_v20 = vld [vmem:[#allocation9 + $0x588] sm:$0xff] }
 0x173   :  { %v727_v63 = vmul.f32 %v6733_v5, %v647_v25  ;;  %v768_v42 = vsub.f32 0.0, %v736_v16  ;;  %v632_v6 = vadd.f32 0.2548296, %v616_v40  ;;  %v545_v13 = vmul.f32 %v7403_v0, %v529_v1  ;;  %v7499_v58 = vld [vmem:[#allocation9 + $0x5a8] sm:$0xff] }
 0x174   :  { %8930 = vst [vmem:[#allocation41_spill] sm:$0xff] %v7430_v24  ;;  %v783_v32 = vsel %vm751_vm5, %v735_v61, %v767_v30  ;;  %v6737_v38 = vpop.eup %6736  ;;  %v7436_v51 = vpack.c.bf16 %v838_v31, %v830_v29  ;;  %v657_v26 = vsub.f32 0.0, %v7363_v33  ;;  %vm759_vm7 = vcmp.ge.f32.partialorder %v7312_v41, 0.0 }
 0x175   :  { %v815_v47 = vadd.f32 1.0, %v783_v32  ;;  %v743_v14 = vsub.f32 1.0, %v727_v63  ;;  %v648_v12 = vmul.f32 %v7381_v59, %v632_v6  ;;  %v561_v19 = vadd.f32 1.4214138, %v545_v13  ;;  %v8940_v6 = vld [vmem:[#allocation23_spill] sm:$0xff] }
 0x176   :  { %8931 = vst [vmem:[#allocation42_spill] sm:$0xff] %v7436_v51  ;;  %v7442_v5 = vmul.f32 0.70710677, %v7414_v17  ;;  %v807_v18 = vmul.f32 0.5, %v7305_v2  ;;  %3999 = vmatprep.mubr.bf16.mxu0 %v7436_v51  ;;  %4171 = vmatprep.mubr.bf16.mxu1 %v7436_v51  ;;  %v6058_v44 = vcombine.high %v7253_v60, %v7265_v21  ;;  %v7450_v28 = vmul.f32 0.70710677, %v7427_v7 }
 0x177   :  { %v775_v11 = vsub.f32 0.0, %v743_v14  ;;  %v784_v59 = vsel %vm752_vm6, %v736_v16, %v768_v42  ;;  %v728_v9 = vmul.f32 %v6737_v38, %v648_v12  ;;  %4000 = vmatmul.mubr.bf16.vlgmr.msra.gmra.mrb[8].mxu0 %v7430_v24  ;;  %4172 = vmatmul.mubr.bf16.vlgmr.msra.gmra.mrb[8].mxu1 %v7430_v24  ;;  %v7461_v49 = vadd.f32 %v7277_v4, %v7298_v34  ;;  %v8939_v42 = vld [vmem:[#allocation22_spill] sm:$0xff]  ;;  %v7675_v12 = vld [vmem:[#allocation9 + $0x720] sm:$0xff] }
 0x178   :  { %v7457_v2 = vand.u32 2147483647, %v7442_v5  ;;  %v831_v62 = vmul.f32 %v815_v47, %v7338_v56  ;;  %v8932_v48 = vcombine.low %v7131_v35, %v7133_v36  ;;  %v8933_v43 = vcombine.low %v7135_v37, %v7139_v39 }
 0x179   :  { %v791_v8 = vsel %vm759_vm7, %v743_v14, %v775_v11  ;;  %v673_v4 = vmul.f32 %v657_v26, %v7363_v33  ;;  %v7478_v34 = vand.u32 2147483647, %v7450_v28  ;;  %v744_v41 = vsub.f32 1.0, %v728_v9  ;;  %v7523_v26 = vld [vmem:[#allocation9 + $0x5c0] sm:$0xff]  ;;  %v7538_v9 = vld [vmem:[#allocation9 + $0x5e8] sm:$0xff] }
 0x17a   :  { %4011 = vmatpush1.bf16.msra.mxu0 %v8932_v48  ;;  %4183 = vmatpush1.bf16.msra.mxu1 %v8933_v43  ;;  %v823_v56 = vadd.f32 1.0, %v791_v8  ;;  %v8934_v45 = vcombine.high %v7161_v52, %v7163_v53  ;;  %v8935_v35 = vcombine.high %v7165_v54, %v7167_v55  ;;  %v577_v36 = vmul.f32 %v7403_v0, %v561_v19 }
 0x17b   :  { %v466_v37 = vmul.f32 0.3275911, %v7457_v2  ;;  %v800_v39 = vmul.f32 0.5, %v7263_v27  ;;  %v816_v33 = vadd.f32 1.0, %v784_v59  ;;  %vm760_vm8 = vcmp.ge.f32.partialorder %v7324_v46, 0.0  ;;  %v8936_v27 = vld [vmem:[#allocation34_spill] sm:$0xff] }
 0x17c   :  { %4012 = vmatprep.subr.bf16.mxu0 %v8934_v45  ;;  %4184 = vmatprep.subr.bf16.mxu1 %v8935_v35  ;;  %v473_v50 = vmul.f32 0.3275911, %v7478_v34  ;;  %v839_v22 = vmul.f32 %v823_v56, %v807_v18  ;;  %v776_v3 = vsub.f32 0.0, %v744_v41  ;;  %v808_v25 = vmul.f32 0.5, %v8936_v27  ;;  %v7525_v46 = vld [vmem:[#allocation9 + $0x5e0] sm:$0xff]  ;;  %v7536_v59 = vld [vmem:[#allocation9 + $0x5c8] sm:$0xff] }
 0x17d   :  { %v482_v16 = vadd.f32 1.0, %v466_v37  ;;  %v8937_v30 = vcombine.low %v7161_v52, %v7163_v53  ;;  %v8938_v40 = vcombine.low %v7165_v54, %v7167_v55  ;;  %v693_v1 = vmul.f32 1.442695, %v673_v4  ;;  %v8942_v52 = vld [vmem:[#allocation24_spill] sm:$0xff]  ;;  %v8943_v53 = vld [vmem:[#allocation25_spill] sm:$0xff]  ;;  %v7553_v45 = vld [vmem:[#allocation9 + $0x608] sm:$0xff] }
 0x17e   :  { %v489_v29 = vadd.f32 1.0, %v473_v50  ;;  %v7509_v31 = vmul.f32 0.70710677, %v7461_v49  ;;  %v7511_v63 = vpack.c.bf16 %v839_v22, %v831_v62  ;;  %v792_v32 = vsel %vm760_vm8, %v744_v41, %v776_v3  ;;  %v7540_v62 = vld [vmem:[#allocation9 + $0x600] sm:$0xff]  ;;  %v7555_v35 = vld [vmem:[#allocation9 + $0x628] sm:$0xff]  ;;  %v8948_v37 = vld [vmem:[#allocation27_spill] sm:$0xff] }
 0x17f   :  { %4013 = vmatpush1.bf16.msra.mxu0 %v8937_v30  ;;  %4185 = vmatpush1.bf16.msra.mxu1 %v8938_v40  ;;  %v8941_v13 = vcombine.high %v8939_v42, %v8940_v6  ;;  %v8944_v38 = vcombine.high %v8942_v52, %v8943_v53  ;;  %v593_v54 = vadd.f32 -0.28449672, %v577_v36  ;;  %6738 = vrcp.f32 %v482_v16  ;;  %v7551_v41 = vld [vmem:[#allocation9 + $0x620] sm:$0xff]  ;;  %v8947_v36 = vld [vmem:[#allocation26_spill] sm:$0xff]  ;;  %v8966_v4 = vld [vmem:[#allocation35_spill] sm:$0xff] }
 0x180   :  { %v832_v55 = vmul.f32 %v816_v33, %v800_v39  ;;  %v824_v47 = vadd.f32 1.0, %v792_v32  ;;  %v6060_v14 = vcombine.high %v7472_v10, %v7474_v23  ;;  %6740 = vrcp.f32 %v489_v29  ;;  %v8950_v33 = vld [vmem:[#allocation28_spill] sm:$0xff]  ;;  %v8951_v50 = vld [vmem:[#allocation29_spill] sm:$0xff] }
 0x181   :  { %4014 = vmatprep.subr.bf16.mxu0 %v8941_v13  ;;  %4186 = vmatprep.subr.bf16.mxu1 %v8944_v38  ;;  %v7534_v18 = vand.u32 2147483647, %v7509_v31  ;;  %v8945_v48 = vcombine.low %v8939_v42, %v8940_v6  ;;  %v8946_v43 = vcombine.low %v8942_v52, %v8943_v53  ;;  %6742 = vpow2.f32 %v693_v1  ;;  %v7569_v30 = vld [vmem:[#allocation9 + $0x640] sm:$0xff]  ;;  %v7586_v38 = vld [vmem:[#allocation9 + $0x648] sm:$0xff] }
 0x182   :  { %v840_v8 = vmul.f32 %v824_v47, %v808_v25  ;;  %v658_v56 = vsub.f32 0.0, %v7457_v2  ;;  %v8949_v39 = vcombine.high %v8947_v36, %v8948_v37  ;;  %v8952_v22 = vcombine.high %v8950_v33, %v8951_v50  ;;  %v7571_v40 = vld [vmem:[#allocation9 + $0x660] sm:$0xff]  ;;  %v7607_v53 = vld [vmem:[#allocation9 + $0x6a8] sm:$0xff] }
 0x183   :  { %4015 = vmatpush1.bf16.msra.mxu0 %v8945_v48  ;;  %4187 = vmatpush1.bf16.msra.mxu1 %v8946_v43  ;;  %v609_v3 = vmul.f32 %v7403_v0, %v593_v54  ;;  %v474_v16 = vmul.f32 0.3275911, %v7534_v18  ;;  %v665_v29 = vsub.f32 0.0, %v7478_v34  ;;  %v7588_v54 = vld [vmem:[#allocation9 + $0x668] sm:$0xff]  ;;  %v8954_v47 = vcombine.low %v8947_v36, %v8948_v37  ;;  %v8957_v37 = vld [vmem:[#allocation31_spill] sm:$0xff]  ;;  %v7619_v13 = vld [vmem:[#allocation9 + $0x6e0] sm:$0xff] }
 0x184   :  { %4016 = vmatprep.subr.bf16.mxu0 %v8949_v39  ;;  %4188 = vmatprep.subr.bf16.mxu1 %v8952_v22  ;;  %v7573_v1 = vpack.c.bf16 %v840_v8, %v832_v55  ;;  %v7590_v55 = vld [vmem:[#allocation9 + $0x680] sm:$0xff]  ;;  %v8955_v8 = vcombine.low %v8950_v33, %v8951_v50  ;;  %v674_v48 = vmul.f32 %v658_v56, %v7457_v2  ;;  %v8956_v36 = vld [vmem:[#allocation30_spill] sm:$0xff]  ;;  %v8959_v33 = vld [vmem:[#allocation32_spill] sm:$0xff]  ;;  %v666_v32 = vsub.f32 0.0, %v7534_v18 }
 0x185   :  { %v490_v6 = vadd.f32 1.0, %v474_v16  ;;  %v7603_v22 = vld [vmem:[#allocation9 + $0x6a0] sm:$0xff]  ;;  %v7605_v16 = vld [vmem:[#allocation9 + $0x688] sm:$0xff]  ;;  %v625_v2 = vadd.f32 0.2548296, %v609_v3  ;;  %v8962_v43 = vld [vmem:[#allocation20_spill] sm:$0xff]  ;;  %v8963_v3 = vcombine.low %v8956_v36, %v8957_v37 }
 0x186   :  { %8953 = vst [vmem:[#allocation34_spill] sm:$0xff] %v7573_v1  ;;  %v8960_v50 = vld [vmem:[#allocation33_spill] sm:$0xff]  ;;  %v8899_v52 = vsub.s32 6, %v8962_v43  ;;  %4042 = vmatprep.mubr.bf16.mxu0 %v7573_v1  ;;  %4214 = vmatprep.mubr.bf16.mxu1 %v7573_v1  ;;  %v695_v11 = vmul.f32 1.442695, %v674_v48  ;;  %v7662_v48 = vld [vmem:[#allocation9 + $0x6e8] sm:$0xff] }
 0x187   :  { %4017 = vmatpush1.bf16.msra.mxu0 %v8954_v47  ;;  %4189 = vmatpush1.bf16.msra.mxu1 %v8955_v8  ;;  %v8958_v47 = vcombine.high %v8956_v36, %v8957_v37  ;;  %v8961_v8 = vcombine.high %v8959_v33, %v8960_v50  ;;  %6744 = vrcp.f32 %v490_v6  ;;  %v7617_v39 = vld [vmem:[#allocation9 + $0x6c0] sm:$0xff]  ;;  %v8900_v6 = vsub.s32 7, %v8962_v43  ;;  %v7660_v37 = vld [vmem:[#allocation9 + $0x6c8] sm:$0xff] }
 0x188   :  { %v8964_v25 = vcombine.low %v8959_v33, %v8960_v50  ;;  %v641_v36 = vmul.f32 %v7403_v0, %v625_v2  ;;  %v8965_v33 = vld [vmem:[#allocation21_spill] sm:$0xff]  ;;  %6746 = vpow2.f32 %v695_v11  ;;  %vm754_vm10 = vcmp.ge.f32.partialorder %v7442_v5, 0.0 }
 0x189   :  { %4018 = vmatprep.subr.bf16.mxu0 %v8958_v47  ;;  %4190 = vmatprep.subr.bf16.mxu1 %v8961_v8  ;;  %v681_v47 = vmul.f32 %v665_v29, %v7478_v34  ;;  %v7629_v8 = vpop.eup %6738  ;;  %v155_v50 = vrot.slane %v8965_v33, %v8899_v52  ;;  %v7673_v27 = vld [vmem:[#allocation9 + $0x700] sm:$0xff]  ;;  %v8967_v52 = vld [vmem:[#allocation36_spill] sm:$0xff]  ;;  %vm761_vm11 = vcmp.ge.f32.partialorder %v7450_v28, 0.0  ;;  %vm762_vm12 = vcmp.ge.f32.partialorder %v7509_v31, 0.0 }
 0x18a   :  { %v7639_v29 = vpop.eup %6740  ;;  %v514_v56 = vmul.f32 1.0614054, %v7629_v8  ;;  %v7756_v0 = vld [vmem:[#allocation9 + $0x740] sm:$0xff]  ;;  %v8997_v5 = vcombine.low %v7660_v37, %v7662_v48 }
 0x18b   :  { %4019 = vmatpush1.bf16.msra.mxu0 %v8963_v3  ;;  %4191 = vmatpush1.bf16.msra.mxu1 %v8964_v25  ;;  %v521_v25 = vmul.f32 1.0614054, %v7639_v29  ;;  %v6743_v3 = vpop.eup %6742  ;;  %v709_v34 = vmul.f32 1.442695, %v681_v47  ;;  %v7678_v19 = vadd.f32 %v8966_v4, %v155_v50  ;;  %v8971_v47 = vcombine.high %v7490_v15, %v7495_v57  ;;  %v1105_v31 = vld [vmem:[#allocation9 + $0x7e0] sm:$0xff] }
 0x18c   :  { %4020 = vmatprep.subr.bf16.mxu0 %v6058_v44  ;;  %4192 = vmatprep.subr.bf16.mxu1 %v6060_v14  ;;  %v159_v44 = vrot.slane %v8965_v33, %v8900_v6  ;;  %v530_v42 = vadd.f32 -1.4531521, %v514_v56  ;;  %v682_v14 = vmul.f32 %v666_v32, %v7534_v18  ;;  %v8968_v33 = vld [vmem:[#allocation37_spill] sm:$0xff]  ;;  %v8969_v18 = vcombine.low %v7253_v60, %v7265_v21 }
 0x18d   :  { %v537_v2 = vadd.f32 -1.4531521, %v521_v25  ;;  %v7684_v6 = vadd.f32 %v8968_v33, %v155_v50  ;;  %v8970_v32 = vcombine.low %v7472_v10, %v7474_v23  ;;  %v8972_v21 = vcombine.high %v7497_v20, %v7499_v58  ;;  %v7714_v50 = vld [vmem:[#allocation9 + $0x708] sm:$0xff] }
 0x18e   :  { %v7681_v61 = vadd.f32 %v8967_v52, %v159_v44  ;;  %v546_v56 = vmul.f32 %v7629_v8, %v530_v42  ;;  %v7703_v60 = vmul.f32 %v6743_v3, %v641_v36  ;;  %v7707_v23 = vmul.f32 0.70710677, %v7678_v19  ;;  %v7716_v33 = vld [vmem:[#allocation9 + $0x728] sm:$0xff] }
 0x18f   :  { %4021 = vmatpush1.bf16.msra.mxu0 %v8969_v18  ;;  %4193 = vmatpush1.bf16.msra.mxu1 %v8970_v32  ;;  %v553_v10 = vmul.f32 %v7639_v29, %v537_v2  ;;  %6748 = vpow2.f32 %v709_v34  ;;  %v7719_v36 = vmul.f32 0.70710677, %v7684_v6  ;;  %v711_v18 = vmul.f32 1.442695, %v682_v14  ;;  %v8977_v52 = vld [vmem:[#allocation38_spill] sm:$0xff] }
 0x190   :  { %4022 = vmatprep.subr.bf16.mxu0 %v8971_v47  ;;  %4194 = vmatprep.subr.bf16.mxu1 %v8972_v21  ;;  %v7710_v11 = vmul.f32 0.70710677, %v7681_v61  ;;  %v562_v42 = vadd.f32 1.4214138, %v546_v56  ;;  %v7726_v56 = vand.u32 2147483647, %v7707_v23  ;;  %v8973_v34 = vcombine.low %v7490_v15, %v7495_v57 }
 0x191   :  { %v7721_v3 = vpop.eup %6744  ;;  %v569_v2 = vadd.f32 1.4214138, %v553_v10  ;;  %v8974_v47 = vcombine.low %v7497_v20, %v7499_v58  ;;  %v7740_v10 = vand.u32 2147483647, %v7719_v36  ;;  %v737_v32 = vsub.f32 1.0, %v7703_v60 }
 0x192   :  { %v578_v21 = vmul.f32 %v7629_v8, %v562_v42  ;;  %v522_v25 = vmul.f32 1.0614054, %v7721_v3  ;;  %v7737_v14 = vand.u32 2147483647, %v7710_v11  ;;  %v8975_v15 = vcombine.high %v7523_v26, %v7525_v46 }
 0x193   :  { %4023 = vmatpush1.bf16.msra.mxu0 %v8973_v34  ;;  %4195 = vmatpush1.bf16.msra.mxu1 %v8974_v47  ;;  %v585_v4 = vmul.f32 %v7639_v29, %v569_v2  ;;  %v8976_v57 = vcombine.high %v7536_v59, %v7538_v9  ;;  %v467_v58 = vmul.f32 0.3275911, %v7726_v56  ;;  %6750 = vpow2.f32 %v711_v18  ;;  %v7771_v18 = vld [vmem:[#allocation9 + $0x748] sm:$0xff] }
 0x194   :  { %4024 = vmatprep.subr.bf16.mxu0 %v8975_v15  ;;  %v594_v42 = vadd.f32 -0.28449672, %v578_v21  ;;  %v538_v34 = vadd.f32 -1.4531521, %v522_v25  ;;  %v468_v2 = vmul.f32 0.3275911, %v7737_v14  ;;  %v7759_v43 = vadd.f32 %v8977_v52, %v159_v44 }
 0x195   :  { %4196 = vmatprep.subr.bf16.mxu1 %v8976_v57  ;;  %v601_v47 = vadd.f32 -0.28449672, %v585_v4  ;;  %v483_v15 = vadd.f32 1.0, %v467_v58  ;;  %v8978_v25 = vcombine.low %v7523_v26, %v7525_v46  ;;  %v8979_v21 = vcombine.low %v7536_v59, %v7538_v9  ;;  %v7769_v4 = vld [vmem:[#allocation9 + $0x760] sm:$0xff]  ;;  %v7773_v58 = vld [vmem:[#allocation9 + $0x768] sm:$0xff]  ;;  %v6747_v59 = vpop.eup %6746 }
 0x196   :  { %v610_v57 = vmul.f32 %v7629_v8, %v594_v42  ;;  %v554_v20 = vmul.f32 %v7721_v3, %v538_v34  ;;  %v484_v44 = vadd.f32 1.0, %v468_v2  ;;  %v475_v52 = vmul.f32 0.3275911, %v7740_v10  ;;  %v8980_v42 = vld [vmem:[#allocation40_spill] sm:$0xff] }
 0x197   :  { %4025 = vmatpush1.bf16.msra.mxu0 %v8978_v25  ;;  %4197 = vmatpush1.bf16.msra.mxu1 %v8979_v21  ;;  %vm753_vm9 = vcmp.ge.f32.partialorder %v8980_v42, 0.0  ;;  %v769_v34 = vsub.f32 0.0, %v737_v32  ;;  %v617_v60 = vmul.f32 %v7639_v29, %v601_v47  ;;  %v8981_v26 = vcombine.high %v7540_v62, %v7551_v41 }
 0x198   :  { %v8982_v46 = vcombine.high %v7553_v45, %v7555_v35  ;;  %6752 = vrcp.f32 %v483_v15  ;;  %v626_v9 = vadd.f32 0.2548296, %v610_v57  ;;  %v570_v25 = vadd.f32 1.4214138, %v554_v20 }
 0x199   :  { %4026 = vmatprep.subr.bf16.mxu0 %v8981_v26  ;;  %6754 = vrcp.f32 %v484_v44  ;;  %v491_v2 = vadd.f32 1.0, %v475_v52  ;;  %v633_v21 = vadd.f32 0.2548296, %v617_v60  ;;  %v6121_v1 = vcombine.low %v7756_v0, %v7769_v4  ;;  %v6749_v24 = vpop.eup %6748 }
 0x19a   :  { %4198 = vmatprep.subr.bf16.mxu1 %v8982_v46  ;;  %v6122_v47 = vcombine.high %v7756_v0, %v7769_v4  ;;  %v6123_v26 = vcombine.low %v7771_v18, %v7773_v58  ;;  %v642_v51 = vmul.f32 %v7629_v8, %v626_v9  ;;  %v586_v15 = vmul.f32 %v7721_v3, %v570_v25  ;;  %v1110_v4 = vld [vmem:[#allocation9 + $0x808] sm:$0xff] }
 0x19b   :  { %v8983_v20 = vcombine.low %v7540_v62, %v7551_v41  ;;  %v8984_v60 = vcombine.low %v7553_v45, %v7555_v35  ;;  %6756 = vrcp.f32 %v491_v2  ;;  %v7799_v57 = vmul.f32 0.70710677, %v7759_v43 }
 0x19c   :  { %v785_v44 = vsel %vm753_vm9, %v737_v32, %v769_v34  ;;  %v649_v52 = vmul.f32 %v7639_v29, %v633_v21  ;;  %v8985_v8 = vcombine.high %v7569_v30, %v7571_v40  ;;  %v8986_v62 = vcombine.high %v7586_v38, %v7588_v54  ;;  %v8987_v29 = vld [vmem:[#allocation39_spill] sm:$0xff] }
 0x19d   :  { %4027 = vmatpush1.bf16.msra.mxu0 %v8983_v20  ;;  %4199 = vmatpush1.bf16.msra.mxu1 %v8984_v60  ;;  %v659_v41 = vsub.f32 0.0, %v7726_v56  ;;  %v660_v45 = vsub.f32 0.0, %v7737_v14  ;;  %v722_v35 = vmul.f32 %v6747_v59, %v642_v51  ;;  %v602_v46 = vadd.f32 -0.28449672, %v586_v15 }
 0x19e   :  { %4028 = vmatprep.subr.bf16.mxu0 %v8985_v8  ;;  %4200 = vmatprep.subr.bf16.mxu1 %v8986_v62  ;;  %v6124_v42 = vcombine.high %v7771_v18, %v7773_v58  ;;  %v7815_v32 = vand.u32 2147483647, %v7799_v57  ;;  %v801_v34 = vmul.f32 0.5, %v8987_v29  ;;  %v7819_v9 = vmul.f32 0.5, %v7414_v17  ;;  %v6751_v8 = vpop.eup %6750 }
 0x19f   :  { %v729_v25 = vmul.f32 %v6749_v24, %v649_v52  ;;  %v667_v2 = vsub.f32 0.0, %v7740_v10  ;;  %v817_v21 = vadd.f32 1.0, %v785_v44  ;;  %v738_v20 = vsub.f32 1.0, %v722_v35 }
 0x1a0   :  { %v618_v60 = vmul.f32 %v7721_v3, %v602_v46  ;;  %v8988_v51 = vcombine.low %v7569_v30, %v7571_v40  ;;  %v8989_v59 = vcombine.low %v7586_v38, %v7588_v54  ;;  %v476_v15 = vmul.f32 0.3275911, %v7815_v32 }
 0x1a1   :  { %v745_v17 = vsub.f32 1.0, %v729_v25  ;;  %v8990_v24 = vcombine.high %v7590_v55, %v7603_v22  ;;  %v8991_v44 = vcombine.high %v7605_v16, %v7607_v53  ;;  %v675_v30 = vmul.f32 %v659_v41, %v7726_v56 }
 0x1a2   :  { %4029 = vmatpush1.bf16.msra.mxu0 %v8988_v51  ;;  %4201 = vmatpush1.bf16.msra.mxu1 %v8989_v59  ;;  %v676_v40 = vmul.f32 %v660_v45, %v7737_v14  ;;  %v770_v38 = vsub.f32 0.0, %v738_v20  ;;  %v634_v54 = vadd.f32 0.2548296, %v618_v60  ;;  %v492_v52 = vadd.f32 1.0, %v476_v15  ;;  %v7840_v62 = vpop.eup %6752  ;;  %v7854_v45 = vld [vmem:[#allocation9 + $0x780] sm:$0xff] }
 0x1a3   :  { %4030 = vmatprep.subr.bf16.mxu0 %v8990_v24  ;;  %4202 = vmatprep.subr.bf16.mxu1 %v8991_v44  ;;  %v777_v35 = vsub.f32 0.0, %v745_v17  ;;  %v809_v46 = vmul.f32 0.5, %v7427_v7  ;;  %v683_v29 = vmul.f32 %v667_v2, %v7740_v10  ;;  %v7845_v25 = vpop.eup %6754  ;;  %v833_v51 = vmul.f32 %v817_v21, %v801_v34  ;;  %v7856_v7 = vld [vmem:[#allocation9 + $0x7a0] sm:$0xff] }
 0x1a4   :  { %v650_v56 = vmul.f32 %v7721_v3, %v634_v54  ;;  %v8992_v14 = vcombine.low %v7590_v55, %v7603_v22  ;;  %v8993_v41 = vcombine.low %v7605_v16, %v7607_v53  ;;  %v515_v60 = vmul.f32 1.0614054, %v7840_v62 }
 0x1a5   :  { %6758 = vrcp.f32 %v492_v52  ;;  %v793_v10 = vsel %vm761_vm11, %v745_v17, %v777_v35  ;;  %v8994_v3 = vcombine.high %v7617_v39, %v7619_v13  ;;  %v8995_v55 = vcombine.high %v7660_v37, %v7662_v48  ;;  %v7868_v34 = vpop.eup %6756 }
 0x1a6   :  { %4031 = vmatpush1.bf16.msra.mxu0 %v8992_v14  ;;  %4203 = vmatpush1.bf16.msra.mxu1 %v8993_v41  ;;  %v697_v53 = vmul.f32 1.442695, %v675_v30  ;;  %v516_v22 = vmul.f32 1.0614054, %v7845_v25  ;;  %v699_v16 = vmul.f32 1.442695, %v676_v40  ;;  %v786_v2 = vsel %vm754_vm10, %v738_v20, %v770_v38 }
 0x1a7   :  { %4032 = vmatprep.subr.bf16.mxu0 %v8994_v3  ;;  %4204 = vmatprep.subr.bf16.mxu1 %v8995_v55  ;;  %v825_v21 = vadd.f32 1.0, %v793_v10  ;;  %v730_v28 = vmul.f32 %v6751_v8, %v650_v56  ;;  %v531_v59 = vadd.f32 -1.4531521, %v515_v60  ;;  %v6130_v15 = vcombine.high %v7854_v45, %v7856_v7  ;;  %v7881_v20 = vld [vmem:[#allocation9 + $0x788] sm:$0xff] }
 0x1a8   :  { %v532_v17 = vadd.f32 -1.4531521, %v516_v22  ;;  %v523_v24 = vmul.f32 1.0614054, %v7868_v34  ;;  %v713_v44 = vmul.f32 1.442695, %v683_v29  ;;  %v8996_v40 = vcombine.low %v7617_v39, %v7619_v13 }
 0x1a9   :  { %v841_v54 = vmul.f32 %v825_v21, %v809_v46  ;;  %v746_v30 = vsub.f32 1.0, %v730_v28  ;;  %v7883_v8 = vld [vmem:[#allocation9 + $0x7a8] sm:$0xff]  ;;  %v547_v38 = vmul.f32 %v7840_v62, %v531_v59  ;;  %v668_v52 = vsub.f32 0.0, %v7815_v32 }
 0x1aa   :  { %4033 = vmatpush1.bf16.msra.mxu0 %v8996_v40  ;;  %4205 = vmatpush1.bf16.msra.mxu1 %v8997_v5  ;;  %v818_v35 = vadd.f32 1.0, %v786_v2  ;;  %v8998_v46 = vcombine.high %v7673_v27, %v7675_v12  ;;  %v8999_v13 = vcombine.high %v7714_v50, %v7716_v33  ;;  %6760 = vpow2.f32 %v697_v53  ;;  %v7908_v53 = vld [vmem:[#allocation9 + $0x7c0] sm:$0xff] }
 0x1ab   :  { %v548_v39 = vmul.f32 %v7845_v25, %v532_v17  ;;  %v539_v37 = vadd.f32 -1.4531521, %v523_v24  ;;  %v7894_v48 = vpack.c.bf16 %v841_v54, %v833_v51  ;;  %v778_v29 = vsub.f32 0.0, %v746_v30  ;;  %v1113_v40 = vld [vmem:[#allocation9 + $0x820] sm:$0xff] }
 0x1ac   :  { %4034 = vmatprep.subr.bf16.mxu0 %v8998_v46  ;;  %4206 = vmatprep.subr.bf16.mxu1 %v8999_v13  ;;  %v563_v56 = vadd.f32 1.4214138, %v547_v38  ;;  %6762 = vpow2.f32 %v699_v16  ;;  %v810_v14 = vmul.f32 0.5, %v7461_v49  ;;  %v6132_v41 = vcombine.high %v7881_v20, %v7883_v8  ;;  %v7942_v13 = vld [vmem:[#allocation9 + $0x840] sm:$0xff] }
 0x1ad   :  { %v564_v60 = vadd.f32 1.4214138, %v548_v39  ;;  %v555_v10 = vmul.f32 %v7868_v34, %v539_v37  ;;  %v794_v3 = vsel %vm762_vm12, %v746_v30, %v778_v29  ;;  %v9000_v55 = vcombine.low %v7673_v27, %v7675_v12  ;;  %v1102_v12 = vld [vmem:[#allocation9 + $0x7c8] sm:$0xff]  ;;  %v1109_v30 = vld [vmem:[#allocation9 + $0x800] sm:$0xff] }
 0x1ae   :  { %v9001_v51 = vcombine.low %v7714_v50, %v7716_v33  ;;  %v579_v49 = vmul.f32 %v7840_v62, %v563_v56  ;;  %6764 = vpow2.f32 %v713_v44  ;;  %v684_v22 = vmul.f32 %v668_v52, %v7815_v32  ;;  %v1106_v27 = vld [vmem:[#allocation9 + $0x7e8] sm:$0xff]  ;;  %v7944_v39 = vld [vmem:[#allocation9 + $0x860] sm:$0xff] }
 0x1af   :  { %4035 = vmatpush1.bf16.msra.mxu0 %v9000_v55  ;;  %v834_v16 = vmul.f32 %v818_v35, %v7819_v9  ;;  %v826_v2 = vadd.f32 1.0, %v794_v3  ;;  %v580_v50 = vmul.f32 %v7845_v25, %v564_v60  ;;  %v571_v33 = vadd.f32 1.4214138, %v555_v10  ;;  %v7920_v21 = vpop.eup %6758  ;;  %v1118_v56 = vld [vmem:[#allocation9 + $0x848] sm:$0xff] }
 0x1b0   :  { %4207 = vmatpush1.bf16.msra.mxu1 %v9001_v51  ;;  %4036 = vmatprep.subr.bf16.mxu0 %v6122_v47  ;;  %v6129_v32 = vcombine.low %v7854_v45, %v7856_v7  ;;  %v6131_v9 = vcombine.low %v7881_v20, %v7883_v8  ;;  %v595_v28 = vadd.f32 -0.28449672, %v579_v49  ;;  %v6138_v45 = vcombine.high %v7908_v53, %v1105_v31  ;;  %v1114_v20 = vld [vmem:[#allocation9 + $0x828] sm:$0xff] }
 0x1b1   :  { %4208 = vmatprep.subr.bf16.mxu1 %v6124_v42  ;;  %v842_v47 = vmul.f32 %v826_v2, %v810_v14  ;;  %v596_v59 = vadd.f32 -0.28449672, %v580_v50  ;;  %v587_v17 = vmul.f32 %v7868_v34, %v571_v33  ;;  %v524_v42 = vmul.f32 1.0614054, %v7920_v21  ;;  %v1122_v14 = vld [vmem:[#allocation9 + $0x868] sm:$0xff] }
 0x1b2   :  { %v6140_v7 = vcombine.high %v1102_v12, %v1106_v27  ;;  %v611_v24 = vmul.f32 %v7840_v62, %v595_v28  ;;  %v715_v44 = vmul.f32 1.442695, %v684_v22  ;;  %v6146_v46 = vcombine.high %v1109_v30, %v1113_v40  ;;  %v1130_v50 = vld [vmem:[#allocation9 + $0x8a8] sm:$0xff] }
 0x1b3   :  { %4037 = vmatpush1.bf16.msra.mxu0 %v6121_v1  ;;  %v7936_v54 = vpack.c.bf16 %v842_v47, %v834_v16  ;;  %v612_v5 = vmul.f32 %v7845_v25, %v596_v59  ;;  %v603_v0 = vadd.f32 -0.28449672, %v587_v17  ;;  %v540_v1 = vadd.f32 -1.4531521, %v524_v42 }
 0x1b4   :  { %4209 = vmatpush1.bf16.msra.mxu1 %v6123_v26  ;;  %4038 = vmatprep.subr.bf16.mxu0 %v6130_v15  ;;  %v627_v18 = vadd.f32 0.2548296, %v611_v24  ;;  %v6761_v58 = vpop.eup %6760  ;;  %v6137_v26 = vcombine.low %v7908_v53, %v1105_v31  ;;  %v6139_v15 = vcombine.low %v1102_v12, %v1106_v27  ;;  %6766 = vpow2.f32 %v715_v44  ;;  %v1125_v31 = vld [vmem:[#allocation9 + $0x880] sm:$0xff]  ;;  %v1126_v27 = vld [vmem:[#allocation9 + $0x888] sm:$0xff] }
 0x1b5   :  { %4210 = vmatprep.subr.bf16.mxu1 %v6132_v41  ;;  %v628_v8 = vadd.f32 0.2548296, %v612_v5  ;;  %v619_v38 = vmul.f32 %v7868_v34, %v603_v0  ;;  %v556_v52 = vmul.f32 %v7920_v21, %v540_v1  ;;  %v6148_v29 = vcombine.high %v1110_v4, %v1114_v20 }
 0x1b6   :  { %v6763_v35 = vpop.eup %6762  ;;  %v643_v37 = vmul.f32 %v7840_v62, %v627_v18  ;;  %v6145_v51 = vcombine.low %v1109_v30, %v1113_v40  ;;  %v6147_v62 = vcombine.low %v1110_v4, %v1114_v20  ;;  %v6154_v16 = vcombine.high %v7942_v13, %v7944_v39  ;;  %v1137_v30 = vld [vmem:[#allocation9 + $0x8e0] sm:$0xff]  ;;  %v1134_v20 = vld [vmem:[#allocation9 + $0x8c8] sm:$0xff] }
 0x1b7   :  { %4039 = vmatpush1.bf16.msra.mxu0 %v6129_v32  ;;  %v644_v41 = vmul.f32 %v7845_v25, %v628_v8  ;;  %v635_v60 = vadd.f32 0.2548296, %v619_v38  ;;  %v572_v10 = vadd.f32 1.4214138, %v556_v52  ;;  %v6156_v2 = vcombine.high %v1118_v56, %v1122_v14  ;;  %v1129_v25 = vld [vmem:[#allocation9 + $0x8a0] sm:$0xff]  ;;  %v1138_v18 = vld [vmem:[#allocation9 + $0x8e8] sm:$0xff] }
 0x1b8   :  { %4211 = vmatpush1.bf16.msra.mxu1 %v6131_v9  ;;  %4040 = vmatprep.subr.bf16.mxu0 %v6138_v45  ;;  %v6765_v3 = vpop.eup %6764  ;;  %v723_v55 = vmul.f32 %v6761_v58, %v643_v37  ;;  %vm755_vm13 = vcmp.ge.f32.partialorder %v7707_v23, 0.0  ;;  %v6153_v9 = vcombine.low %v7942_v13, %v7944_v39  ;;  %v6155_v47 = vcombine.low %v1118_v56, %v1122_v14  ;;  %v1145_v39 = vld [vmem:[#allocation9 + $0x920] sm:$0xff]  ;;  %v1146_v37 = vld [vmem:[#allocation9 + $0x928] sm:$0xff] }
 0x1b9   :  { %4212 = vmatprep.subr.bf16.mxu1 %v6140_v7  ;;  %v7948_v53 = vmul.f32 %v6763_v35, %v644_v41  ;;  %v651_v49 = vmul.f32 %v7868_v34, %v635_v60  ;;  %v588_v22 = vmul.f32 %v7920_v21, %v572_v10  ;;  %v6162_v59 = vcombine.high %v1125_v31, %v1129_v25  ;;  %v1133_v7 = vld [vmem:[#allocation9 + $0x8c0] sm:$0xff] }
 0x1ba   :  { %v739_v12 = vsub.f32 1.0, %v723_v55  ;;  %v6164_v45 = vcombine.high %v1126_v27, %v1130_v50  ;;  %v803_v44 = vmul.f32 0.5, %v7678_v19  ;;  %vm763_vm14 = vcmp.ge.f32.partialorder %v7719_v36, 0.0  ;;  %v1149_v55 = vld [vmem:[#allocation9 + $0x940] sm:$0xff] }
 0x1bb   :  { %4041 = vmatpush1.bf16.msra.mxu0 %v6137_v26  ;;  %v740_v34 = vsub.f32 1.0, %v7948_v53  ;;  %v731_v33 = vmul.f32 %v6765_v3, %v651_v49  ;;  %v604_v32 = vadd.f32 -0.28449672, %v588_v22  ;;  %vm756_vm15 = vcmp.ge.f32.partialorder %v7710_v11, 0.0  ;;  %v1153_v53 = vld [vmem:[#allocation9 + $0x960] sm:$0xff]  ;;  %v1150_v49 = vld [vmem:[#allocation9 + $0x948] sm:$0xff] }
 0x1bc   :  { %4213 = vmatpush1.bf16.msra.mxu1 %v6139_v15  ;;  %4053 = vmatprep.subr.bf16.mxu0 %v6146_v46  ;;  %v771_v28 = vsub.f32 0.0, %v739_v12  ;;  %v811_v19 = vmul.f32 0.5, %v7684_v6  ;;  %v6161_v23 = vcombine.low %v1125_v31, %v1129_v25  ;;  %v6163_v8 = vcombine.low %v1126_v27, %v1130_v50  ;;  %v1141_v46 = vld [vmem:[#allocation9 + $0x900] sm:$0xff]  ;;  %v1142_v6 = vld [vmem:[#allocation9 + $0x908] sm:$0xff] }
 0x1bd   :  { %4225 = vmatprep.subr.bf16.mxu1 %v6148_v29  ;;  %v747_v17 = vsub.f32 1.0, %v731_v33  ;;  %v620_v42 = vmul.f32 %v7920_v21, %v604_v32  ;;  %v772_v5 = vsub.f32 0.0, %v740_v34  ;;  %v6170_v38 = vcombine.high %v1133_v7, %v1137_v30  ;;  %v1154_v22 = vld [vmem:[#allocation9 + $0x968] sm:$0xff]  ;;  %v1157_v27 = vld [vmem:[#allocation9 + $0x980] sm:$0xff] }
 0x1be   :  { %4043 = vmatmul.mubr.bf16.vlgmr.msra.gmra.mrb[8].mxu0 %v7511_v63  ;;  %v787_v24 = vsel %vm755_vm13, %v739_v12, %v771_v28  ;;  %v6767_v4 = vpop.eup %6766  ;;  %v6172_v15 = vcombine.high %v1134_v20, %v1138_v18  ;;  %v6169_v36 = vcombine.low %v1133_v7, %v1137_v30  ;;  %v6171_v56 = vcombine.low %v1134_v20, %v1138_v18  ;;  %v1161_v50 = vld [vmem:[#allocation9 + $0x9a0] sm:$0xff]  ;;  %v1162_v33 = vld [vmem:[#allocation9 + $0x9a8] sm:$0xff] }
 0x1bf   :  { %4215 = vmatmul.mubr.bf16.vlgmr.msra.gmra.mrb[8].mxu1 %v7511_v63  ;;  %4054 = vmatpush1.bf16.msra.mxu0 %v6145_v51  ;;  %v819_v40 = vadd.f32 1.0, %v787_v24  ;;  %v779_v0 = vsub.f32 0.0, %v747_v17  ;;  %v636_v1 = vadd.f32 0.2548296, %v620_v42  ;;  %v788_v13 = vsel %vm756_vm15, %v740_v34, %v772_v5  ;;  %v1158_v34 = vld [vmem:[#allocation9 + $0x988] sm:$0xff]  ;;  %v1169_v42 = vld [vmem:[#allocation9 + $0x9e0] sm:$0xff] }
 0x1c0   :  { %4226 = vmatpush1.bf16.msra.mxu1 %v6147_v62  ;;  %4055 = vmatprep.subr.bf16.mxu0 %v6154_v16  ;;  %v820_v41 = vadd.f32 1.0, %v788_v13  ;;  %vm764_vm0 = vcmp.ge.f32.partialorder %v7799_v57, 0.0  ;;  %v6178_v10 = vcombine.high %v1141_v46, %v1145_v39  ;;  %v6180_v3 = vcombine.high %v1142_v6, %v1146_v37  ;;  %v1170_v7 = vld [vmem:[#allocation9 + $0x9e8] sm:$0xff]  ;;  %v1173_v5 = vld [vmem:[#allocation9 + $0xa00] sm:$0xff] }
 0x1c1   :  { %4227 = vmatprep.subr.bf16.mxu1 %v6156_v2  ;;  %4085 = vmatprep.mubr.bf16.mxu0 %v7936_v54  ;;  %v795_v58 = vsel %vm763_vm14, %v747_v17, %v779_v0  ;;  %v652_v26 = vmul.f32 %v7920_v21, %v636_v1  ;;  %v835_v52 = vmul.f32 %v819_v40, %v803_v44  ;;  %v804_v21 = vmul.f32 0.5, %v7681_v61  ;;  %v1165_v17 = vld [vmem:[#allocation9 + $0x9c0] sm:$0xff]  ;;  %v1174_v1 = vld [vmem:[#allocation9 + $0xa08] sm:$0xff] }
 0x1c2   :  { %4257 = vmatprep.mubr.bf16.mxu1 %v7936_v54  ;;  %v827_v35 = vadd.f32 1.0, %v795_v58  ;;  %v812_v62 = vmul.f32 0.5, %v7759_v43  ;;  %v6177_v61 = vcombine.low %v1141_v46, %v1145_v39  ;;  %v6179_v2 = vcombine.low %v1142_v6, %v1146_v37  ;;  %v1177_v0 = vld [vmem:[#allocation9 + $0xa20] sm:$0xff]  ;;  %v1190_v39 = vld [vmem:[#allocation9 + $0xa88] sm:$0xff] }
 0x1c3   :  { %4056 = vmatpush1.bf16.msra.mxu0 %v6153_v9  ;;  %v732_v11 = vmul.f32 %v6767_v4, %v652_v26  ;;  %v836_v31 = vmul.f32 %v820_v41, %v804_v21  ;;  %v6186_v57 = vcombine.high %v1149_v55, %v1153_v53  ;;  %v6188_v12 = vcombine.high %v1150_v49, %v1154_v22  ;;  %v1178_v4 = vld [vmem:[#allocation9 + $0xa28] sm:$0xff]  ;;  %v1181_v58 = vld [vmem:[#allocation9 + $0xa40] sm:$0xff] }
 0x1c4   :  { %4228 = vmatpush1.bf16.msra.mxu1 %v6155_v47  ;;  %4057 = vmatprep.subr.bf16.mxu0 %v6162_v59  ;;  %v843_v29 = vmul.f32 %v827_v35, %v811_v19  ;;  %v6185_v9 = vcombine.low %v1149_v55, %v1153_v53  ;;  %v6187_v43 = vcombine.low %v1150_v49, %v1154_v22  ;;  %v1185_v26 = vld [vmem:[#allocation9 + $0xa60] sm:$0xff]  ;;  %v1194_v6 = vld [vmem:[#allocation9 + $0xaa8] sm:$0xff] }
 0x1c5   :  { %4229 = vmatprep.subr.bf16.mxu1 %v6164_v45  ;;  %v748_v14 = vsub.f32 1.0, %v732_v11  ;;  %v6194_v47 = vcombine.high %v1157_v27, %v1161_v50  ;;  %v6196_v59 = vcombine.high %v1158_v34, %v1162_v33  ;;  %v1166_v45 = vld [vmem:[#allocation9 + $0x9c8] sm:$0xff]  ;;  %v6193_v24 = vcombine.low %v1157_v27, %v1161_v50  ;;  %v1189_v13 = vld [vmem:[#allocation9 + $0xa80] sm:$0xff] }
 0x1c6   :  { %v7973_v60 = vpack.c.bf16 %v843_v29, %v835_v52  ;;  %v6195_v44 = vcombine.low %v1158_v34, %v1162_v33  ;;  %v6202_v30 = vcombine.high %v1165_v17, %v1169_v42  ;;  %v6204_v40 = vcombine.high %v1166_v45, %v1170_v7  ;;  %v1193_v11 = vld [vmem:[#allocation9 + $0xaa0] sm:$0xff]  ;;  %v1198_v41 = vld [vmem:[#allocation9 + $0xac8] sm:$0xff] }
 0x1c7   :  { %4058 = vmatpush1.bf16.msra.mxu0 %v6161_v23  ;;  %v780_v51 = vsub.f32 0.0, %v748_v14  ;;  %v6201_v20 = vcombine.low %v1165_v17, %v1169_v42  ;;  %v6203_v18 = vcombine.low %v1166_v45, %v1170_v7  ;;  %v6210_v19 = vcombine.high %v1173_v5, %v1177_v0  ;;  %v1201_v21 = vld [vmem:[#allocation9 + $0xae0] sm:$0xff]  ;;  %v1214_v27 = vld [vmem:[#allocation9 + $0xb48] sm:$0xff] }
 0x1c8   :  { %4230 = vmatpush1.bf16.msra.mxu1 %v6163_v8  ;;  %4059 = vmatprep.subr.bf16.mxu0 %v6170_v38  ;;  %v6212_v23 = vcombine.high %v1174_v1, %v1178_v4  ;;  %v1182_v8 = vld [vmem:[#allocation9 + $0xa48] sm:$0xff]  ;;  %v6209_v52 = vcombine.low %v1173_v5, %v1177_v0  ;;  %v6211_v35 = vcombine.low %v1174_v1, %v1178_v4  ;;  %v1205_v49 = vld [vmem:[#allocation9 + $0xb00] sm:$0xff] }
 0x1c9   :  { %4231 = vmatprep.subr.bf16.mxu1 %v6172_v15  ;;  %v796_v16 = vsel %vm764_vm0, %v748_v14, %v780_v51  ;;  %v1186_v38 = vld [vmem:[#allocation9 + $0xa68] sm:$0xff]  ;;  %v6218_v15 = vcombine.high %v1181_v58, %v1185_v26  ;;  %v6217_v37 = vcombine.low %v1181_v58, %v1185_v26  ;;  %v1197_v14 = vld [vmem:[#allocation9 + $0xac0] sm:$0xff]  ;;  %v6227_v55 = vcombine.low %v1190_v39, %v1194_v6 }
 0x1ca   :  { %v828_v25 = vadd.f32 1.0, %v796_v16  ;;  %v6220_v46 = vcombine.high %v1182_v8, %v1186_v38  ;;  %v6219_v29 = vcombine.low %v1182_v8, %v1186_v38  ;;  %v6234_v51 = vcombine.high %v1197_v14, %v1201_v21  ;;  %v1209_v22 = vld [vmem:[#allocation9 + $0xb20] sm:$0xff]  ;;  %v1210_v16 = vld [vmem:[#allocation9 + $0xb28] sm:$0xff] }
 0x1cb   :  { %4060 = vmatpush1.bf16.msra.mxu0 %v6169_v36  ;;  %v6226_v36 = vcombine.high %v1189_v13, %v1193_v11  ;;  %v1218_v50 = vld [vmem:[#allocation9 + $0xb68] sm:$0xff]  ;;  %v6241_v34 = vcombine.low %v1205_v49, %v1209_v22 }
 0x1cc   :  { %4232 = vmatpush1.bf16.msra.mxu1 %v6171_v56  ;;  %4061 = vmatprep.subr.bf16.mxu0 %v6178_v10  ;;  %v844_v32 = vmul.f32 %v828_v25, %v812_v62  ;;  %v6228_v56 = vcombine.high %v1190_v39, %v1194_v6  ;;  %v1202_v10 = vld [vmem:[#allocation9 + $0xae8] sm:$0xff]  ;;  %v6251_v45 = vcombine.low %v1214_v27, %v1218_v50 }
 0x1cd   :  { %4233 = vmatprep.subr.bf16.mxu1 %v6180_v3  ;;  %v6225_v3 = vcombine.low %v1189_v13, %v1193_v11  ;;  %v6236_v53 = vcombine.high %v1198_v41, %v1202_v10  ;;  %v1206_v62 = vld [vmem:[#allocation9 + $0xb08] sm:$0xff] }
 0x1ce   :  { %v7977_v28 = vpack.c.bf16 %v844_v32, %v836_v31  ;;  %v6242_v31 = vcombine.high %v1205_v49, %v1209_v22  ;;  %v6244_v25 = vcombine.high %v1206_v62, %v1210_v16  ;;  %v6243_v33 = vcombine.low %v1206_v62, %v1210_v16  ;;  %v1226_v17 = vld [vmem:[#allocation9 + $0xba8] sm:$0xff] }
 0x1cf   :  { %4062 = vmatpush1.bf16.msra.mxu0 %v6177_v61  ;;  %v6233_v61 = vcombine.low %v1197_v14, %v1201_v21  ;;  %v1234_v5 = vld [vmem:[#allocation9 + $0xbe8] sm:$0xff] }
 0x1d0   :  { %4234 = vmatpush1.bf16.msra.mxu1 %v6179_v2  ;;  %4063 = vmatprep.subr.bf16.mxu0 %v6186_v57  ;;  %v6235_v2 = vcombine.low %v1198_v41, %v1202_v10  ;;  %v1213_v57 = vld [vmem:[#allocation9 + $0xb40] sm:$0xff]  ;;  %v1242_v58 = vld [vmem:[#allocation9 + $0xc28] sm:$0xff] }
 0x1d1   :  { %4235 = vmatprep.subr.bf16.mxu1 %v6188_v12  ;;  %v1217_v12 = vld [vmem:[#allocation9 + $0xb60] sm:$0xff]  ;;  %v1250_v13 = vld [vmem:[#allocation9 + $0xc68] sm:$0xff] }
 0x1d2   :  { %v6250_v32 = vcombine.high %v1213_v57, %v1217_v12  ;;  %v6249_v42 = vcombine.low %v1213_v57, %v1217_v12  ;;  %v1258_v14 = vld [vmem:[#allocation9 + $0xca8] sm:$0xff] }
 0x1d3   :  { %4064 = vmatpush1.bf16.msra.mxu0 %v6185_v9  ;;  %v6252_v9 = vcombine.high %v1214_v27, %v1218_v50  ;;  %v1266_v49 = vld [vmem:[#allocation9 + $0xce8] sm:$0xff] }
 0x1d4   :  { %4236 = vmatpush1.bf16.msra.mxu1 %v6187_v43  ;;  %4065 = vmatprep.subr.bf16.mxu0 %v6194_v47  ;;  %v1221_v43 = vld [vmem:[#allocation9 + $0xb80] sm:$0xff]  ;;  %v1274_v57 = vld [vmem:[#allocation9 + $0xd28] sm:$0xff] }
 0x1d5   :  { %4237 = vmatprep.subr.bf16.mxu1 %v6196_v59  ;;  %v1225_v47 = vld [vmem:[#allocation9 + $0xba0] sm:$0xff]  ;;  %v1222_v59 = vld [vmem:[#allocation9 + $0xb88] sm:$0xff] }
 0x1d6   :  { %v6258_v7 = vcombine.high %v1221_v43, %v1225_v47  ;;  %v6257_v0 = vcombine.low %v1221_v43, %v1225_v47  ;;  %v6259_v1 = vcombine.low %v1222_v59, %v1226_v17  ;;  %v1282_v43 = vld [vmem:[#allocation9 + $0xd68] sm:$0xff] }
 0x1d7   :  { %4066 = vmatpush1.bf16.msra.mxu0 %v6193_v24  ;;  %v6260_v24 = vcombine.high %v1222_v59, %v1226_v17 }
 0x1d8   :  { %4238 = vmatpush1.bf16.msra.mxu1 %v6195_v44  ;;  %4067 = vmatprep.subr.bf16.mxu0 %v6202_v30  ;;  %v1229_v44 = vld [vmem:[#allocation9 + $0xbc0] sm:$0xff] }
 0x1d9   :  { %4239 = vmatprep.subr.bf16.mxu1 %v6204_v40  ;;  %v1233_v30 = vld [vmem:[#allocation9 + $0xbe0] sm:$0xff]  ;;  %v1230_v40 = vld [vmem:[#allocation9 + $0xbc8] sm:$0xff] }
 0x1da   :  { %v6266_v4 = vcombine.high %v1229_v44, %v1233_v30  ;;  %v6265_v26 = vcombine.low %v1229_v44, %v1233_v30  ;;  %v6267_v8 = vcombine.low %v1230_v40, %v1234_v5  ;;  %v1290_v44 = vld [vmem:[#allocation9 + $0xda8] sm:$0xff] }
 0x1db   :  { %4068 = vmatpush1.bf16.msra.mxu0 %v6201_v20  ;;  %v6268_v20 = vcombine.high %v1230_v40, %v1234_v5 }
 0x1dc   :  { %4240 = vmatpush1.bf16.msra.mxu1 %v6203_v18  ;;  %4069 = vmatprep.subr.bf16.mxu0 %v6210_v19  ;;  %v1237_v18 = vld [vmem:[#allocation9 + $0xc00] sm:$0xff] }
 0x1dd   :  { %4241 = vmatprep.subr.bf16.mxu1 %v6212_v23  ;;  %v1241_v19 = vld [vmem:[#allocation9 + $0xc20] sm:$0xff]  ;;  %v1238_v23 = vld [vmem:[#allocation9 + $0xc08] sm:$0xff] }
 0x1de   :  { %v6274_v38 = vcombine.high %v1237_v18, %v1241_v19  ;;  %v6273_v11 = vcombine.low %v1237_v18, %v1241_v19  ;;  %v6275_v39 = vcombine.low %v1238_v23, %v1242_v58  ;;  %v1298_v18 = vld [vmem:[#allocation9 + $0xde8] sm:$0xff] }
 0x1df   :  { %4070 = vmatpush1.bf16.msra.mxu0 %v6209_v52  ;;  %v6276_v52 = vcombine.high %v1238_v23, %v1242_v58 }
 0x1e0   :  { %4242 = vmatpush1.bf16.msra.mxu1 %v6211_v35  ;;  %4071 = vmatprep.subr.bf16.mxu0 %v6218_v15  ;;  %v1245_v35 = vld [vmem:[#allocation9 + $0xc40] sm:$0xff] }
 0x1e1   :  { %4243 = vmatprep.subr.bf16.mxu1 %v6220_v46  ;;  %v1249_v15 = vld [vmem:[#allocation9 + $0xc60] sm:$0xff]  ;;  %v1246_v46 = vld [vmem:[#allocation9 + $0xc48] sm:$0xff] }
 0x1e2   :  { %v6282_v6 = vcombine.high %v1245_v35, %v1249_v15  ;;  %v6281_v21 = vcombine.low %v1245_v35, %v1249_v15  ;;  %v6283_v41 = vcombine.low %v1246_v46, %v1250_v13  ;;  %v1306_v35 = vld [vmem:[#allocation9 + $0xe28] sm:$0xff] }
 0x1e3   :  { %4072 = vmatpush1.bf16.msra.mxu0 %v6217_v37  ;;  %v6284_v37 = vcombine.high %v1246_v46, %v1250_v13 }
 0x1e4   :  { %4244 = vmatpush1.bf16.msra.mxu1 %v6219_v29  ;;  %4073 = vmatprep.subr.bf16.mxu0 %v6226_v36  ;;  %v1253_v29 = vld [vmem:[#allocation9 + $0xc80] sm:$0xff] }
 0x1e5   :  { %4245 = vmatprep.subr.bf16.mxu1 %v6228_v56  ;;  %v1257_v36 = vld [vmem:[#allocation9 + $0xca0] sm:$0xff]  ;;  %v1254_v56 = vld [vmem:[#allocation9 + $0xc88] sm:$0xff] }
 0x1e6   :  { %v6290_v10 = vcombine.high %v1253_v29, %v1257_v36  ;;  %v6289_v22 = vcombine.low %v1253_v29, %v1257_v36  ;;  %v6291_v62 = vcombine.low %v1254_v56, %v1258_v14  ;;  %v1314_v29 = vld [vmem:[#allocation9 + $0xe68] sm:$0xff] }
 0x1e7   :  { %4074 = vmatpush1.bf16.msra.mxu0 %v6225_v3  ;;  %v6292_v3 = vcombine.high %v1254_v56, %v1258_v14 }
 0x1e8   :  { %4246 = vmatpush1.bf16.msra.mxu1 %v6227_v55  ;;  %4075 = vmatprep.subr.bf16.mxu0 %v6234_v51  ;;  %v1261_v55 = vld [vmem:[#allocation9 + $0xcc0] sm:$0xff] }
 0x1e9   :  { %4247 = vmatprep.subr.bf16.mxu1 %v6236_v53  ;;  %v1265_v51 = vld [vmem:[#allocation9 + $0xce0] sm:$0xff]  ;;  %v1262_v53 = vld [vmem:[#allocation9 + $0xcc8] sm:$0xff] }
 0x1ea   :  { %v6298_v16 = vcombine.high %v1261_v55, %v1265_v51  ;;  %v6297_v12 = vcombine.low %v1261_v55, %v1265_v51  ;;  %v6299_v27 = vcombine.low %v1262_v53, %v1266_v49  ;;  %v1322_v55 = vld [vmem:[#allocation9 + $0xea8] sm:$0xff] }
 0x1eb   :  { %4076 = vmatpush1.bf16.msra.mxu0 %v6233_v61  ;;  %v6300_v61 = vcombine.high %v1262_v53, %v1266_v49 }
 0x1ec   :  { %4248 = vmatpush1.bf16.msra.mxu1 %v6235_v2  ;;  %4077 = vmatprep.subr.bf16.mxu0 %v6242_v31  ;;  %v1269_v2 = vld [vmem:[#allocation9 + $0xd00] sm:$0xff] }
 0x1ed   :  { %4249 = vmatprep.subr.bf16.mxu1 %v6244_v25  ;;  %v1273_v31 = vld [vmem:[#allocation9 + $0xd20] sm:$0xff]  ;;  %v1270_v25 = vld [vmem:[#allocation9 + $0xd08] sm:$0xff] }
 0x1ee   :  { %v6306_v50 = vcombine.high %v1269_v2, %v1273_v31  ;;  %v6305_v47 = vcombine.low %v1269_v2, %v1273_v31  ;;  %v6307_v59 = vcombine.low %v1270_v25, %v1274_v57  ;;  %v1330_v2 = vld [vmem:[#allocation9 + $0xee8] sm:$0xff] }
 0x1ef   :  { %4078 = vmatpush1.bf16.msra.mxu0 %v6241_v34  ;;  %v6308_v34 = vcombine.high %v1270_v25, %v1274_v57 }
 0x1f0   :  { %4250 = vmatpush1.bf16.msra.mxu1 %v6243_v33  ;;  %4079 = vmatprep.subr.bf16.mxu0 %v6250_v32  ;;  %v1277_v33 = vld [vmem:[#allocation9 + $0xd40] sm:$0xff] }
 0x1f1   :  { %4251 = vmatprep.subr.bf16.mxu1 %v6252_v9  ;;  %v1281_v32 = vld [vmem:[#allocation9 + $0xd60] sm:$0xff]  ;;  %v1278_v9 = vld [vmem:[#allocation9 + $0xd48] sm:$0xff] }
 0x1f2   :  { %v6314_v17 = vcombine.high %v1277_v33, %v1281_v32  ;;  %v6313_v30 = vcombine.low %v1277_v33, %v1281_v32  ;;  %v6315_v40 = vcombine.low %v1278_v9, %v1282_v43  ;;  %v1338_v33 = vld [vmem:[#allocation9 + $0xf28] sm:$0xff] }
 0x1f3   :  { %4080 = vmatpush1.bf16.msra.mxu0 %v6249_v42  ;;  %v6316_v42 = vcombine.high %v1278_v9, %v1282_v43 }
 0x1f4   :  { %4252 = vmatpush1.bf16.msra.mxu1 %v6251_v45  ;;  %4081 = vmatprep.subr.bf16.mxu0 %v6258_v7  ;;  %v1285_v45 = vld [vmem:[#allocation9 + $0xd80] sm:$0xff] }
 0x1f5   :  { %4253 = vmatprep.subr.bf16.mxu1 %v6260_v24  ;;  %v1289_v7 = vld [vmem:[#allocation9 + $0xda0] sm:$0xff]  ;;  %v1286_v24 = vld [vmem:[#allocation9 + $0xd88] sm:$0xff] }
 0x1f6   :  { %v6322_v5 = vcombine.high %v1285_v45, %v1289_v7  ;;  %v6321_v19 = vcombine.low %v1285_v45, %v1289_v7  ;;  %v6323_v23 = vcombine.low %v1286_v24, %v1290_v44  ;;  %v1346_v45 = vld [vmem:[#allocation9 + $0xf68] sm:$0xff] }
 0x1f7   :  { %4082 = vmatpush1.bf16.msra.mxu0 %v6257_v0  ;;  %v6324_v0 = vcombine.high %v1286_v24, %v1290_v44 }
 0x1f8   :  { %4254 = vmatpush1.bf16.msra.mxu1 %v6259_v1  ;;  %4083 = vmatprep.subr.bf16.mxu0 %v6266_v4  ;;  %v1293_v1 = vld [vmem:[#allocation9 + $0xdc0] sm:$0xff] }
 0x1f9   :  { %4255 = vmatprep.subr.bf16.mxu1 %v6268_v20  ;;  %v1297_v4 = vld [vmem:[#allocation9 + $0xde0] sm:$0xff]  ;;  %v1294_v20 = vld [vmem:[#allocation9 + $0xdc8] sm:$0xff] }
 0x1fa   :  { %v6330_v58 = vcombine.high %v1293_v1, %v1297_v4  ;;  %v6329_v15 = vcombine.low %v1293_v1, %v1297_v4  ;;  %v6331_v46 = vcombine.low %v1294_v20, %v1298_v18  ;;  %v1354_v1 = vld [vmem:[#allocation9 + $0xfa8] sm:$0xff] }
 0x1fb   :  { %4084 = vmatpush1.bf16.msra.mxu0 %v6265_v26  ;;  %v6332_v26 = vcombine.high %v1294_v20, %v1298_v18 }
 0x1fc   :  { %4256 = vmatpush1.bf16.msra.mxu1 %v6267_v8  ;;  %4096 = vmatprep.subr.bf16.mxu0 %v6274_v38  ;;  %v1301_v8 = vld [vmem:[#allocation9 + $0xe00] sm:$0xff] }
 0x1fd   :  { %4268 = vmatprep.subr.bf16.mxu1 %v6276_v52  ;;  %v1305_v38 = vld [vmem:[#allocation9 + $0xe20] sm:$0xff]  ;;  %v1302_v52 = vld [vmem:[#allocation9 + $0xe08] sm:$0xff] }
 0x1fe   :  { %4086 = vmatmul.mubr.bf16.vlgmr.msra.gmra.mrb[8].mxu0 %v7894_v48  ;;  %v6338_v13 = vcombine.high %v1301_v8, %v1305_v38  ;;  %v6337_v36 = vcombine.low %v1301_v8, %v1305_v38  ;;  %v6339_v56 = vcombine.low %v1302_v52, %v1306_v35  ;;  %v1362_v8 = vld [vmem:[#allocation9 + $0xfe8] sm:$0xff] }
 0x1ff   :  { %4258 = vmatmul.mubr.bf16.vlgmr.msra.gmra.mrb[8].mxu1 %v7894_v48  ;;  %4097 = vmatpush1.bf16.msra.mxu0 %v6273_v11  ;;  %v6340_v11 = vcombine.high %v1302_v52, %v1306_v35 }
 0x200   :  { %4269 = vmatpush1.bf16.msra.mxu1 %v6275_v39  ;;  %4098 = vmatprep.subr.bf16.mxu0 %v6282_v6  ;;  %v1309_v39 = vld [vmem:[#allocation9 + $0xe40] sm:$0xff] }
 0x201   :  { %4270 = vmatprep.subr.bf16.mxu1 %v6284_v37  ;;  %4128 = vmatprep.mubr.bf16.mxu0 %v7977_v28  ;;  %v1313_v6 = vld [vmem:[#allocation9 + $0xe60] sm:$0xff]  ;;  %v1310_v37 = vld [vmem:[#allocation9 + $0xe48] sm:$0xff] }
 0x202   :  { %4300 = vmatprep.mubr.bf16.mxu1 %v7977_v28  ;;  %v6346_v14 = vcombine.high %v1309_v39, %v1313_v6  ;;  %v6345_v51 = vcombine.low %v1309_v39, %v1313_v6  ;;  %v6347_v53 = vcombine.low %v1310_v37, %v1314_v29  ;;  %v860_v39 = vld [vmem:[#allocation9 + $0x38] sm:$0xff] }
 0x203   :  { %4099 = vmatpush1.bf16.msra.mxu0 %v6281_v21  ;;  %v6348_v21 = vcombine.high %v1310_v37, %v1314_v29 }
 0x204   :  { %4271 = vmatpush1.bf16.msra.mxu1 %v6283_v41  ;;  %4100 = vmatprep.subr.bf16.mxu0 %v6290_v10  ;;  %v1317_v41 = vld [vmem:[#allocation9 + $0xe80] sm:$0xff] }
 0x205   :  { %4272 = vmatprep.subr.bf16.mxu1 %v6292_v3  ;;  %v1321_v10 = vld [vmem:[#allocation9 + $0xea0] sm:$0xff]  ;;  %v1318_v3 = vld [vmem:[#allocation9 + $0xe88] sm:$0xff] }
 0x206   :  { %v6354_v49 = vcombine.high %v1317_v41, %v1321_v10  ;;  %v6353_v31 = vcombine.low %v1317_v41, %v1321_v10  ;;  %v6355_v25 = vcombine.low %v1318_v3, %v1322_v55  ;;  %v868_v41 = vld [vmem:[#allocation9 + $0x78] sm:$0xff] }
 0x207   :  { %4101 = vmatpush1.bf16.msra.mxu0 %v6289_v22  ;;  %v6356_v22 = vcombine.high %v1318_v3, %v1322_v55 }
 0x208   :  { %4273 = vmatpush1.bf16.msra.mxu1 %v6291_v62  ;;  %4102 = vmatprep.subr.bf16.mxu0 %v6298_v16  ;;  %v1325_v62 = vld [vmem:[#allocation9 + $0xec0] sm:$0xff] }
 0x209   :  { %4274 = vmatprep.subr.bf16.mxu1 %v6300_v61  ;;  %v1329_v16 = vld [vmem:[#allocation9 + $0xee0] sm:$0xff]  ;;  %v1326_v61 = vld [vmem:[#allocation9 + $0xec8] sm:$0xff] }
 0x20a   :  { %v6362_v57 = vcombine.high %v1325_v62, %v1329_v16  ;;  %v6361_v32 = vcombine.low %v1325_v62, %v1329_v16  ;;  %v6363_v9 = vcombine.low %v1326_v61, %v1330_v2  ;;  %v876_v62 = vld [vmem:[#allocation9 + $0xb8] sm:$0xff]  ;;  %v9002_v16 = vld [vmem:[#allocation42_spill] sm:$0xff] }
 0x20b   :  { %4103 = vmatpush1.bf16.msra.mxu0 %v6297_v12  ;;  %v6364_v12 = vcombine.high %v1326_v61, %v1330_v2 }
 0x20c   :  { %4275 = vmatpush1.bf16.msra.mxu1 %v6299_v27  ;;  %4104 = vmatprep.subr.bf16.mxu0 %v6306_v50  ;;  %v1333_v27 = vld [vmem:[#allocation9 + $0xf00] sm:$0xff] }
 0x20d   :  { %4276 = vmatprep.subr.bf16.mxu1 %v6308_v34  ;;  %v1337_v50 = vld [vmem:[#allocation9 + $0xf20] sm:$0xff]  ;;  %v1334_v34 = vld [vmem:[#allocation9 + $0xf08] sm:$0xff] }
 0x20e   :  { %v6370_v43 = vcombine.high %v1333_v27, %v1337_v50  ;;  %v6369_v7 = vcombine.low %v1333_v27, %v1337_v50  ;;  %v6371_v24 = vcombine.low %v1334_v34, %v1338_v33  ;;  %v880_v27 = vld [vmem:[#allocation9 + $0xd8] sm:$0xff] }
 0x20f   :  { %4105 = vmatpush1.bf16.msra.mxu0 %v6305_v47  ;;  %v6372_v47 = vcombine.high %v1334_v34, %v1338_v33  ;;  %v884_v50 = vld [vmem:[#allocation9 + $0xf8] sm:$0xff] }
 0x210   :  { %4277 = vmatpush1.bf16.msra.mxu1 %v6307_v59  ;;  %4106 = vmatprep.subr.bf16.mxu0 %v6314_v17  ;;  %v1341_v59 = vld [vmem:[#allocation9 + $0xf40] sm:$0xff] }
 0x211   :  { %4278 = vmatprep.subr.bf16.mxu1 %v6316_v42  ;;  %v1345_v17 = vld [vmem:[#allocation9 + $0xf60] sm:$0xff]  ;;  %v1342_v42 = vld [vmem:[#allocation9 + $0xf48] sm:$0xff] }
 0x212   :  { %v6378_v44 = vcombine.high %v1341_v59, %v1345_v17  ;;  %v6377_v4 = vcombine.low %v1341_v59, %v1345_v17  ;;  %v6379_v20 = vcombine.low %v1342_v42, %v1346_v45  ;;  %v888_v59 = vld [vmem:[#allocation9 + $0x118] sm:$0xff] }
 0x213   :  { %4107 = vmatpush1.bf16.msra.mxu0 %v6313_v30  ;;  %v6380_v30 = vcombine.high %v1342_v42, %v1346_v45  ;;  %v892_v17 = vld [vmem:[#allocation9 + $0x138] sm:$0xff]  ;;  %v5919_v45 = vcombine.low %v880_v27, %v884_v50 }
 0x214   :  { %4279 = vmatpush1.bf16.msra.mxu1 %v6315_v40  ;;  %4108 = vmatprep.subr.bf16.mxu0 %v6322_v5  ;;  %v1349_v40 = vld [vmem:[#allocation9 + $0xf80] sm:$0xff] }
 0x215   :  { %4280 = vmatprep.subr.bf16.mxu1 %v6324_v0  ;;  %v1353_v5 = vld [vmem:[#allocation9 + $0xfa0] sm:$0xff]  ;;  %v1350_v0 = vld [vmem:[#allocation9 + $0xf88] sm:$0xff] }
 0x216   :  { %v6386_v18 = vcombine.high %v1349_v40, %v1353_v5  ;;  %v6385_v38 = vcombine.low %v1349_v40, %v1353_v5  ;;  %v6387_v52 = vcombine.low %v1350_v0, %v1354_v1  ;;  %v896_v40 = vld [vmem:[#allocation9 + $0x158] sm:$0xff] }
 0x217   :  { %4109 = vmatpush1.bf16.msra.mxu0 %v6321_v19  ;;  %v6388_v19 = vcombine.high %v1350_v0, %v1354_v1  ;;  %v900_v5 = vld [vmem:[#allocation9 + $0x178] sm:$0xff]  ;;  %v5927_v1 = vcombine.low %v888_v59, %v892_v17 }
 0x218   :  { %4281 = vmatpush1.bf16.msra.mxu1 %v6323_v23  ;;  %4110 = vmatprep.subr.bf16.mxu0 %v6330_v58  ;;  %v1357_v23 = vld [vmem:[#allocation9 + $0xfc0] sm:$0xff] }
 0x219   :  { %4282 = vmatprep.subr.bf16.mxu1 %v6332_v26  ;;  %v1361_v58 = vld [vmem:[#allocation9 + $0xfe0] sm:$0xff]  ;;  %v1358_v26 = vld [vmem:[#allocation9 + $0xfc8] sm:$0xff] }
 0x21a   :  { %v6394_v35 = vcombine.high %v1357_v23, %v1361_v58  ;;  %v6393_v6 = vcombine.low %v1357_v23, %v1361_v58  ;;  %v6395_v37 = vcombine.low %v1358_v26, %v1362_v8  ;;  %v904_v23 = vld [vmem:[#allocation9 + $0x198] sm:$0xff] }
 0x21b   :  { %4111 = vmatpush1.bf16.msra.mxu0 %v6329_v15  ;;  %v6396_v15 = vcombine.high %v1358_v26, %v1362_v8  ;;  %v908_v58 = vld [vmem:[#allocation9 + $0x1b8] sm:$0xff]  ;;  %v5935_v8 = vcombine.low %v896_v40, %v900_v5 }
 0x21c   :  { %4283 = vmatpush1.bf16.msra.mxu1 %v6331_v46  ;;  %4112 = vmatprep.subr.bf16.mxu0 %v6338_v13  ;;  %v855_v46 = vld [vmem:[#allocation9 + $0x10] sm:$0xff] }
 0x21d   :  { %4284 = vmatprep.subr.bf16.mxu1 %v6340_v11  ;;  %v859_v13 = vld [vmem:[#allocation9 + $0x30] sm:$0xff]  ;;  %v856_v11 = vld [vmem:[#allocation9 + $0x18] sm:$0xff] }
 0x21e   :  { %v5894_v29 = vcombine.high %v855_v46, %v859_v13  ;;  %v5893_v10 = vcombine.low %v855_v46, %v859_v13  ;;  %v5895_v3 = vcombine.low %v856_v11, %v860_v39  ;;  %v912_v46 = vld [vmem:[#allocation9 + $0x1d8] sm:$0xff] }
 0x21f   :  { %4113 = vmatpush1.bf16.msra.mxu0 %v6337_v36  ;;  %v5896_v36 = vcombine.high %v856_v11, %v860_v39  ;;  %v916_v13 = vld [vmem:[#allocation9 + $0x1f8] sm:$0xff]  ;;  %v5943_v39 = vcombine.low %v904_v23, %v908_v58 }
 0x220   :  { %4285 = vmatpush1.bf16.msra.mxu1 %v6339_v56  ;;  %4114 = vmatprep.subr.bf16.mxu0 %v6346_v14  ;;  %v863_v56 = vld [vmem:[#allocation9 + $0x50] sm:$0xff] }
 0x221   :  { %4286 = vmatprep.subr.bf16.mxu1 %v6348_v21  ;;  %v867_v14 = vld [vmem:[#allocation9 + $0x70] sm:$0xff]  ;;  %v864_v21 = vld [vmem:[#allocation9 + $0x58] sm:$0xff] }
 0x222   :  { %v5902_v55 = vcombine.high %v863_v56, %v867_v14  ;;  %v5901_v61 = vcombine.low %v863_v56, %v867_v14  ;;  %v5903_v2 = vcombine.low %v864_v21, %v868_v41  ;;  %v920_v56 = vld [vmem:[#allocation9 + $0x218] sm:$0xff] }
 0x223   :  { %4115 = vmatpush1.bf16.msra.mxu0 %v6345_v51  ;;  %v5904_v51 = vcombine.high %v864_v21, %v868_v41  ;;  %v924_v14 = vld [vmem:[#allocation9 + $0x238] sm:$0xff]  ;;  %v5951_v41 = vcombine.low %v912_v46, %v916_v13 }
 0x224   :  { %4287 = vmatpush1.bf16.msra.mxu1 %v6347_v53  ;;  %4116 = vmatprep.subr.bf16.mxu0 %v6354_v49  ;;  %v871_v53 = vld [vmem:[#allocation9 + $0x90] sm:$0xff] }
 0x225   :  { %4288 = vmatprep.subr.bf16.mxu1 %v6356_v22  ;;  %v875_v49 = vld [vmem:[#allocation9 + $0xb0] sm:$0xff]  ;;  %v872_v22 = vld [vmem:[#allocation9 + $0x98] sm:$0xff] }
 0x226   :  { %v5909_v34 = vcombine.low %v871_v53, %v875_v49  ;;  %v5911_v33 = vcombine.low %v872_v22, %v876_v62 }
 0x227   :  { %4117 = vmatpush1.bf16.msra.mxu0 %v6353_v31  ;;  %v5910_v31 = vcombine.high %v871_v53, %v875_v49  ;;  %v928_v53 = vld [vmem:[#allocation9 + $0x258] sm:$0xff] }
 0x228   :  { %4289 = vmatpush1.bf16.msra.mxu1 %v6355_v25  ;;  %4118 = vmatprep.subr.bf16.mxu0 %v6362_v57  ;;  %v5912_v25 = vcombine.high %v872_v22, %v876_v62  ;;  %v879_v57 = vld [vmem:[#allocation9 + $0xd0] sm:$0xff]  ;;  %v932_v49 = vld [vmem:[#allocation9 + $0x278] sm:$0xff]  ;;  %v5959_v62 = vcombine.low %v920_v56, %v924_v14 }
 0x229   :  { %4290 = vmatprep.subr.bf16.mxu1 %v6364_v12  ;;  %v883_v12 = vld [vmem:[#allocation9 + $0xf0] sm:$0xff] }
 0x22a   :  { %v5917_v42 = vcombine.low %v879_v57, %v883_v12 }
 0x22b   :  { %4119 = vmatpush1.bf16.msra.mxu0 %v6361_v32  ;;  %v5918_v32 = vcombine.high %v879_v57, %v883_v12  ;;  %v940_v57 = vld [vmem:[#allocation9 + $0x2b8] sm:$0xff] }
 0x22c   :  { %4291 = vmatpush1.bf16.msra.mxu1 %v6363_v9  ;;  %4120 = vmatprep.subr.bf16.mxu0 %v6370_v43  ;;  %v5920_v9 = vcombine.high %v880_v27, %v884_v50  ;;  %v887_v43 = vld [vmem:[#allocation9 + $0x110] sm:$0xff]  ;;  %v5967_v27 = vcombine.low %v928_v53, %v932_v49 }
 0x22d   :  { %4292 = vmatprep.subr.bf16.mxu1 %v6372_v47  ;;  %v891_v47 = vld [vmem:[#allocation9 + $0x130] sm:$0xff] }
 0x22e   :  { %v5925_v0 = vcombine.low %v887_v43, %v891_v47 }
 0x22f   :  { %4121 = vmatpush1.bf16.msra.mxu0 %v6369_v7  ;;  %v5926_v7 = vcombine.high %v887_v43, %v891_v47  ;;  %v948_v43 = vld [vmem:[#allocation9 + $0x2f8] sm:$0xff] }
 0x230   :  { %4293 = vmatpush1.bf16.msra.mxu1 %v6371_v24  ;;  %4122 = vmatprep.subr.bf16.mxu0 %v6378_v44  ;;  %v5928_v24 = vcombine.high %v888_v59, %v892_v17  ;;  %v895_v44 = vld [vmem:[#allocation9 + $0x150] sm:$0xff] }
 0x231   :  { %4294 = vmatprep.subr.bf16.mxu1 %v6380_v30  ;;  %v899_v30 = vld [vmem:[#allocation9 + $0x170] sm:$0xff] }
 0x232   :  { %v5933_v26 = vcombine.low %v895_v44, %v899_v30 }
 0x233   :  { %4123 = vmatpush1.bf16.msra.mxu0 %v6377_v4  ;;  %v5934_v4 = vcombine.high %v895_v44, %v899_v30  ;;  %v956_v44 = vld [vmem:[#allocation9 + $0x338] sm:$0xff] }
 0x234   :  { %4295 = vmatpush1.bf16.msra.mxu1 %v6379_v20  ;;  %4124 = vmatprep.subr.bf16.mxu0 %v6386_v18  ;;  %v5936_v20 = vcombine.high %v896_v40, %v900_v5  ;;  %v903_v18 = vld [vmem:[#allocation9 + $0x190] sm:$0xff] }
 0x235   :  { %4296 = vmatprep.subr.bf16.mxu1 %v6388_v19  ;;  %v907_v19 = vld [vmem:[#allocation9 + $0x1b0] sm:$0xff] }
 0x236   :  { %v5941_v11 = vcombine.low %v903_v18, %v907_v19 }
 0x237   :  { %4125 = vmatpush1.bf16.msra.mxu0 %v6385_v38  ;;  %v5942_v38 = vcombine.high %v903_v18, %v907_v19  ;;  %v964_v18 = vld [vmem:[#allocation9 + $0x378] sm:$0xff] }
 0x238   :  { %4297 = vmatpush1.bf16.msra.mxu1 %v6387_v52  ;;  %4126 = vmatprep.subr.bf16.mxu0 %v6394_v35  ;;  %v5944_v52 = vcombine.high %v904_v23, %v908_v58  ;;  %v911_v35 = vld [vmem:[#allocation9 + $0x1d0] sm:$0xff] }
 0x239   :  { %4298 = vmatprep.subr.bf16.mxu1 %v6396_v15  ;;  %v915_v15 = vld [vmem:[#allocation9 + $0x1f0] sm:$0xff] }
 0x23a   :  { %v5949_v21 = vcombine.low %v911_v35, %v915_v15 }
 0x23b   :  { %4127 = vmatpush1.bf16.msra.mxu0 %v6393_v6  ;;  %v5950_v6 = vcombine.high %v911_v35, %v915_v15  ;;  %v972_v35 = vld [vmem:[#allocation9 + $0x3b8] sm:$0xff] }
 0x23c   :  { %4299 = vmatpush1.bf16.msra.mxu1 %v6395_v37  ;;  %4311 = vmatprep.subr.bf16.mxu0 %v5894_v29  ;;  %v5952_v37 = vcombine.high %v912_v46, %v916_v13  ;;  %v919_v29 = vld [vmem:[#allocation9 + $0x210] sm:$0xff] }
 0x23d   :  { %4483 = vmatprep.subr.bf16.mxu1 %v5896_v36  ;;  %v923_v36 = vld [vmem:[#allocation9 + $0x230] sm:$0xff] }
 0x23e   :  { %4129 = vmatmul.mubr.bf16.vlgmr.msra.gmra.mrb[8].mxu0 %v7973_v60  ;;  %v5957_v22 = vcombine.low %v919_v29, %v923_v36 }
 0x23f   :  { %4301 = vmatmul.mubr.bf16.vlgmr.msra.gmra.mrb[8].mxu1 %v7973_v60  ;;  %4312 = vmatpush1.bf16.msra.mxu0 %v5893_v10  ;;  %v5958_v10 = vcombine.high %v919_v29, %v923_v36  ;;  %v980_v29 = vld [vmem:[#allocation9 + $0x3f8] sm:$0xff] }
 0x240   :  { %4343 = vmatprep.mubr.bf16.mxu0 %v9002_v16  ;;  %4484 = vmatpush1.bf16.msra.mxu1 %v5895_v3  ;;  %v5960_v3 = vcombine.high %v920_v56, %v924_v14 }
 0x241   :  { %4515 = vmatprep.mubr.bf16.mxu1 %v9002_v16  ;;  %4313 = vmatprep.subr.bf16.mxu0 %v5902_v55  ;;  %v927_v55 = vld [vmem:[#allocation9 + $0x250] sm:$0xff] }
 0x242   :  { %4485 = vmatprep.subr.bf16.mxu1 %v5904_v51  ;;  %v931_v51 = vld [vmem:[#allocation9 + $0x270] sm:$0xff] }
 0x243   :  { %4314 = vmatpush1.bf16.msra.mxu0 %v5901_v61  ;;  %v5966_v16 = vcombine.high %v927_v55, %v931_v51  ;;  %v5968_v61 = vcombine.high %v928_v53, %v932_v49  ;;  %v5965_v12 = vcombine.low %v927_v55, %v931_v51  ;;  %v988_v55 = vld [vmem:[#allocation9 + $0x438] sm:$0xff] }
 0x244   :  { %4486 = vmatpush1.bf16.msra.mxu1 %v5903_v2  ;;  %4315 = vmatprep.subr.bf16.mxu0 %v5910_v31  ;;  %v935_v2 = vld [vmem:[#allocation9 + $0x290] sm:$0xff] }
 0x245   :  { %4487 = vmatprep.subr.bf16.mxu1 %v5912_v25  ;;  %v939_v31 = vld [vmem:[#allocation9 + $0x2b0] sm:$0xff]  ;;  %v936_v25 = vld [vmem:[#allocation9 + $0x298] sm:$0xff] }
 0x246   :  { %v5974_v50 = vcombine.high %v935_v2, %v939_v31  ;;  %v5973_v47 = vcombine.low %v935_v2, %v939_v31  ;;  %v5975_v59 = vcombine.low %v936_v25, %v940_v57  ;;  %v992_v2 = vld [vmem:[#allocation9 + $0x458] sm:$0xff] }
 0x247   :  { %4316 = vmatpush1.bf16.msra.mxu0 %v5909_v34  ;;  %v5976_v34 = vcombine.high %v936_v25, %v940_v57  ;;  %v996_v31 = vld [vmem:[#allocation9 + $0x478] sm:$0xff] }
 0x248   :  { %4488 = vmatpush1.bf16.msra.mxu1 %v5911_v33  ;;  %4317 = vmatprep.subr.bf16.mxu0 %v5918_v32  ;;  %v943_v33 = vld [vmem:[#allocation9 + $0x2d0] sm:$0xff] }
 0x249   :  { %4489 = vmatprep.subr.bf16.mxu1 %v5920_v9  ;;  %v947_v32 = vld [vmem:[#allocation9 + $0x2f0] sm:$0xff]  ;;  %v944_v9 = vld [vmem:[#allocation9 + $0x2d8] sm:$0xff] }
 0x24a   :  { %v5982_v17 = vcombine.high %v943_v33, %v947_v32  ;;  %v5981_v30 = vcombine.low %v943_v33, %v947_v32  ;;  %v5983_v40 = vcombine.low %v944_v9, %v948_v43  ;;  %v1000_v33 = vld [vmem:[#allocation9 + $0x498] sm:$0xff] }
 0x24b   :  { %4318 = vmatpush1.bf16.msra.mxu0 %v5917_v42  ;;  %v5984_v42 = vcombine.high %v944_v9, %v948_v43  ;;  %v1004_v32 = vld [vmem:[#allocation9 + $0x4b8] sm:$0xff]  ;;  %v9004_v43 = vld [vmem:[#allocation34_spill] sm:$0xff] }
 0x24c   :  { %4490 = vmatpush1.bf16.msra.mxu1 %v5919_v45  ;;  %4319 = vmatprep.subr.bf16.mxu0 %v5926_v7  ;;  %v951_v45 = vld [vmem:[#allocation9 + $0x310] sm:$0xff] }
 0x24d   :  { %4491 = vmatprep.subr.bf16.mxu1 %v5928_v24  ;;  %v955_v7 = vld [vmem:[#allocation9 + $0x330] sm:$0xff]  ;;  %v952_v24 = vld [vmem:[#allocation9 + $0x318] sm:$0xff] }
 0x24e   :  { %v5990_v5 = vcombine.high %v951_v45, %v955_v7  ;;  %v5989_v19 = vcombine.low %v951_v45, %v955_v7  ;;  %v5991_v23 = vcombine.low %v952_v24, %v956_v44  ;;  %v1011_v45 = vld [vmem:[#allocation9 + $0x4f0] sm:$0xff]  ;;  %v1008_v7 = vld [vmem:[#allocation9 + $0x4d8] sm:$0xff] }
 0x24f   :  { %4320 = vmatpush1.bf16.msra.mxu0 %v5925_v0  ;;  %v5992_v0 = vcombine.high %v952_v24, %v956_v44  ;;  %v1012_v24 = vld [vmem:[#allocation9 + $0x4f8] sm:$0xff] }
 0x250   :  { %4492 = vmatpush1.bf16.msra.mxu1 %v5927_v1  ;;  %4321 = vmatprep.subr.bf16.mxu0 %v5934_v4  ;;  %v959_v1 = vld [vmem:[#allocation9 + $0x350] sm:$0xff] }
 0x251   :  { %4493 = vmatprep.subr.bf16.mxu1 %v5936_v20  ;;  %v963_v4 = vld [vmem:[#allocation9 + $0x370] sm:$0xff]  ;;  %v960_v20 = vld [vmem:[#allocation9 + $0x358] sm:$0xff] }
 0x252   :  { %v5998_v58 = vcombine.high %v959_v1, %v963_v4  ;;  %v5997_v15 = vcombine.low %v959_v1, %v963_v4  ;;  %v5999_v46 = vcombine.low %v960_v20, %v964_v18  ;;  %v1019_v1 = vld [vmem:[#allocation9 + $0x530] sm:$0xff]  ;;  %v1016_v4 = vld [vmem:[#allocation9 + $0x518] sm:$0xff] }
 0x253   :  { %4322 = vmatpush1.bf16.msra.mxu0 %v5933_v26  ;;  %v6000_v26 = vcombine.high %v960_v20, %v964_v18  ;;  %v1020_v20 = vld [vmem:[#allocation9 + $0x538] sm:$0xff] }
 0x254   :  { %4494 = vmatpush1.bf16.msra.mxu1 %v5935_v8  ;;  %4323 = vmatprep.subr.bf16.mxu0 %v5942_v38  ;;  %v967_v8 = vld [vmem:[#allocation9 + $0x390] sm:$0xff] }
 0x255   :  { %4495 = vmatprep.subr.bf16.mxu1 %v5944_v52  ;;  %v971_v38 = vld [vmem:[#allocation9 + $0x3b0] sm:$0xff]  ;;  %v968_v52 = vld [vmem:[#allocation9 + $0x398] sm:$0xff] }
 0x256   :  { %v6006_v13 = vcombine.high %v967_v8, %v971_v38  ;;  %v6005_v36 = vcombine.low %v967_v8, %v971_v38  ;;  %v6007_v56 = vcombine.low %v968_v52, %v972_v35  ;;  %v1027_v8 = vld [vmem:[#allocation9 + $0x570] sm:$0xff]  ;;  %v1024_v38 = vld [vmem:[#allocation9 + $0x558] sm:$0xff] }
 0x257   :  { %4324 = vmatpush1.bf16.msra.mxu0 %v5941_v11  ;;  %v6008_v11 = vcombine.high %v968_v52, %v972_v35  ;;  %v1028_v52 = vld [vmem:[#allocation9 + $0x578] sm:$0xff] }
 0x258   :  { %4496 = vmatpush1.bf16.msra.mxu1 %v5943_v39  ;;  %4325 = vmatprep.subr.bf16.mxu0 %v5950_v6  ;;  %v975_v39 = vld [vmem:[#allocation9 + $0x3d0] sm:$0xff] }
 0x259   :  { %4497 = vmatprep.subr.bf16.mxu1 %v5952_v37  ;;  %v979_v6 = vld [vmem:[#allocation9 + $0x3f0] sm:$0xff]  ;;  %v976_v37 = vld [vmem:[#allocation9 + $0x3d8] sm:$0xff] }
 0x25a   :  { %v6014_v14 = vcombine.high %v975_v39, %v979_v6  ;;  %v6013_v51 = vcombine.low %v975_v39, %v979_v6  ;;  %v6015_v53 = vcombine.low %v976_v37, %v980_v29  ;;  %v1035_v39 = vld [vmem:[#allocation9 + $0x5b0] sm:$0xff]  ;;  %v1032_v6 = vld [vmem:[#allocation9 + $0x598] sm:$0xff] }
 0x25b   :  { %4326 = vmatpush1.bf16.msra.mxu0 %v5949_v21  ;;  %v6016_v21 = vcombine.high %v976_v37, %v980_v29  ;;  %v1036_v37 = vld [vmem:[#allocation9 + $0x5b8] sm:$0xff] }
 0x25c   :  { %4498 = vmatpush1.bf16.msra.mxu1 %v5951_v41  ;;  %4327 = vmatprep.subr.bf16.mxu0 %v5958_v10  ;;  %v983_v41 = vld [vmem:[#allocation9 + $0x410] sm:$0xff] }
 0x25d   :  { %4499 = vmatprep.subr.bf16.mxu1 %v5960_v3  ;;  %v987_v10 = vld [vmem:[#allocation9 + $0x430] sm:$0xff]  ;;  %v984_v3 = vld [vmem:[#allocation9 + $0x418] sm:$0xff] }
 0x25e   :  { %v6022_v49 = vcombine.high %v983_v41, %v987_v10  ;;  %v6023_v25 = vcombine.low %v984_v3, %v988_v55 }
 0x25f   :  { %4328 = vmatpush1.bf16.msra.mxu0 %v5957_v22  ;;  %v6024_v22 = vcombine.high %v984_v3, %v988_v55  ;;  %v1044_v3 = vld [vmem:[#allocation9 + $0x5f8] sm:$0xff] }
 0x260   :  { %4500 = vmatpush1.bf16.msra.mxu1 %v5959_v62  ;;  %4329 = vmatprep.subr.bf16.mxu0 %v5966_v16  ;;  %v991_v62 = vld [vmem:[#allocation9 + $0x450] sm:$0xff] }
 0x261   :  { %4501 = vmatprep.subr.bf16.mxu1 %v5968_v61  ;;  %v995_v16 = vld [vmem:[#allocation9 + $0x470] sm:$0xff]  ;;  %v6021_v61 = vcombine.low %v983_v41, %v987_v10  ;;  %v1040_v10 = vld [vmem:[#allocation9 + $0x5d8] sm:$0xff] }
 0x262   :  { %v6030_v57 = vcombine.high %v991_v62, %v995_v16  ;;  %v6029_v9 = vcombine.low %v991_v62, %v995_v16  ;;  %v1043_v41 = vld [vmem:[#allocation9 + $0x5f0] sm:$0xff]  ;;  %v1048_v16 = vld [vmem:[#allocation9 + $0x618] sm:$0xff] }
 0x263   :  { %4330 = vmatpush1.bf16.msra.mxu0 %v5965_v12  ;;  %v999_v12 = vld [vmem:[#allocation9 + $0x490] sm:$0xff] }
 0x264   :  { %4502 = vmatpush1.bf16.msra.mxu1 %v5967_v27  ;;  %4331 = vmatprep.subr.bf16.mxu0 %v5974_v50  ;;  %v1003_v27 = vld [vmem:[#allocation9 + $0x4b0] sm:$0xff]  ;;  %v9003_v50 = vld [vmem:[#allocation41_spill] sm:$0xff] }
 0x265   :  { %4503 = vmatprep.subr.bf16.mxu1 %v5976_v34  ;;  %v6032_v34 = vcombine.high %v992_v2, %v996_v31  ;;  %v6037_v44 = vcombine.low %v999_v12, %v1003_v27  ;;  %v1051_v62 = vld [vmem:[#allocation9 + $0x630] sm:$0xff] }
 0x267   :  { %4332 = vmatpush1.bf16.msra.mxu0 %v5973_v47  ;;  %v6031_v47 = vcombine.low %v992_v2, %v996_v31  ;;  %v6079_v31 = vcombine.low %v1040_v10, %v1044_v3 }
 0x268   :  { %4504 = vmatpush1.bf16.msra.mxu1 %v5975_v59  ;;  %4333 = vmatprep.subr.bf16.mxu0 %v5982_v17  ;;  %v6038_v59 = vcombine.high %v999_v12, %v1003_v27  ;;  %v6040_v17 = vcombine.high %v1000_v33, %v1004_v32  ;;  %v1055_v12 = vld [vmem:[#allocation9 + $0x650] sm:$0xff] }
 0x269   :  { %4505 = vmatprep.subr.bf16.mxu1 %v5984_v42  ;;  %v1007_v42 = vld [vmem:[#allocation9 + $0x4d0] sm:$0xff] }
 0x26a   :  { %v6045_v18 = vcombine.low %v1007_v42, %v1011_v45  ;;  %v1059_v27 = vld [vmem:[#allocation9 + $0x670] sm:$0xff] }
 0x26b   :  { %4334 = vmatpush1.bf16.msra.mxu0 %v5981_v30  ;;  %v6039_v30 = vcombine.low %v1000_v33, %v1004_v32 }
 0x26c   :  { %4506 = vmatpush1.bf16.msra.mxu1 %v5983_v40  ;;  %4335 = vmatprep.subr.bf16.mxu0 %v5990_v5  ;;  %v6046_v40 = vcombine.high %v1007_v42, %v1011_v45  ;;  %v6048_v5 = vcombine.high %v1008_v7, %v1012_v24  ;;  %v1068_v42 = vld [vmem:[#allocation9 + $0x6b8] sm:$0xff]  ;;  %v6093_v45 = vcombine.low %v1055_v12, %v1059_v27 }
 0x26d   :  { %4507 = vmatprep.subr.bf16.mxu1 %v5992_v0  ;;  %v1015_v0 = vld [vmem:[#allocation9 + $0x510] sm:$0xff] }
 0x26e   :  { %v6053_v35 = vcombine.low %v1015_v0, %v1019_v1 }
 0x26f   :  { %4336 = vmatpush1.bf16.msra.mxu0 %v5989_v19  ;;  %v6047_v19 = vcombine.low %v1008_v7, %v1012_v24 }
 0x270   :  { %4508 = vmatpush1.bf16.msra.mxu1 %v5991_v23  ;;  %4337 = vmatprep.subr.bf16.mxu0 %v5998_v58  ;;  %v6054_v23 = vcombine.high %v1015_v0, %v1019_v1  ;;  %v6056_v58 = vcombine.high %v1016_v4, %v1020_v20  ;;  %v1076_v0 = vld [vmem:[#allocation9 + $0x6f8] sm:$0xff] }
 0x271   :  { %4509 = vmatprep.subr.bf16.mxu1 %v6000_v26  ;;  %v1023_v26 = vld [vmem:[#allocation9 + $0x550] sm:$0xff] }
 0x272   :  { %v6061_v29 = vcombine.low %v1023_v26, %v1027_v8 }
 0x273   :  { %4338 = vmatpush1.bf16.msra.mxu0 %v5997_v15  ;;  %v6055_v15 = vcombine.low %v1016_v4, %v1020_v20 }
 0x274   :  { %4510 = vmatpush1.bf16.msra.mxu1 %v5999_v46  ;;  %4339 = vmatprep.subr.bf16.mxu0 %v6006_v13  ;;  %v6062_v46 = vcombine.high %v1023_v26, %v1027_v8  ;;  %v6064_v13 = vcombine.high %v1024_v38, %v1028_v52  ;;  %v1084_v26 = vld [vmem:[#allocation9 + $0x738] sm:$0xff] }
 0x275   :  { %4511 = vmatprep.subr.bf16.mxu1 %v6008_v11  ;;  %v1031_v11 = vld [vmem:[#allocation9 + $0x590] sm:$0xff] }
 0x276   :  { %v6069_v55 = vcombine.low %v1031_v11, %v1035_v39 }
 0x277   :  { %4340 = vmatpush1.bf16.msra.mxu0 %v6005_v36  ;;  %v6063_v36 = vcombine.low %v1024_v38, %v1028_v52 }
 0x278   :  { %4512 = vmatpush1.bf16.msra.mxu1 %v6007_v56  ;;  %4341 = vmatprep.subr.bf16.mxu0 %v6014_v14  ;;  %v6070_v56 = vcombine.high %v1031_v11, %v1035_v39  ;;  %v6072_v14 = vcombine.high %v1032_v6, %v1036_v37  ;;  %v1092_v11 = vld [vmem:[#allocation9 + $0x778] sm:$0xff] }
 0x279   :  { %4513 = vmatprep.subr.bf16.mxu1 %v6016_v21  ;;  %v1039_v21 = vld [vmem:[#allocation9 + $0x5d0] sm:$0xff] }
 0x27a   :  { %v6077_v2 = vcombine.low %v1039_v21, %v1043_v41 }
 0x27b   :  { %4342 = vmatpush1.bf16.msra.mxu0 %v6013_v51  ;;  %v6071_v51 = vcombine.low %v1032_v6, %v1036_v37 }
 0x27c   :  { %4514 = vmatpush1.bf16.msra.mxu1 %v6015_v53  ;;  %4354 = vmatprep.subr.bf16.mxu0 %v6022_v49  ;;  %v6078_v53 = vcombine.high %v1039_v21, %v1043_v41  ;;  %v6080_v49 = vcombine.high %v1040_v10, %v1044_v3  ;;  %v1100_v21 = vld [vmem:[#allocation9 + $0x7b8] sm:$0xff] }
 0x27d   :  { %4526 = vmatprep.subr.bf16.mxu1 %v6024_v22  ;;  %v1047_v22 = vld [vmem:[#allocation9 + $0x610] sm:$0xff] }
 0x27e   :  { %4344 = vmatmul.mubr.bf16.vlgmr.msra.gmra.mrb[12].mxu0 %v9003_v50  ;;  %v6085_v33 = vcombine.low %v1047_v22, %v1051_v62 }
 0x27f   :  { %4516 = vmatmul.mubr.bf16.vlgmr.msra.gmra.mrb[12].mxu1 %v9003_v50  ;;  %4355 = vmatpush1.bf16.msra.mxu0 %v6021_v61  ;;  %v1052_v61 = vld [vmem:[#allocation9 + $0x638] sm:$0xff] }
 0x280   :  { %4386 = vmatprep.mubr.bf16.mxu0 %v9004_v43  ;;  %4527 = vmatpush1.bf16.msra.mxu1 %v6023_v25  ;;  %v6086_v25 = vcombine.high %v1047_v22, %v1051_v62  ;;  %v1056_v50 = vld [vmem:[#allocation9 + $0x658] sm:$0xff]  ;;  %v6087_v32 = vcombine.low %v1048_v16, %v1052_v61 }
 0x281   :  { %4558 = vmatprep.mubr.bf16.mxu1 %v9004_v43  ;;  %4356 = vmatprep.subr.bf16.mxu0 %v6030_v57  ;;  %v6088_v57 = vcombine.high %v1048_v16, %v1052_v61  ;;  %v1108_v22 = vld [vmem:[#allocation9 + $0x7f8] sm:$0xff] }
 0x282   :  { %4528 = vmatprep.subr.bf16.mxu1 %v6032_v34  ;;  %v1060_v34 = vld [vmem:[#allocation9 + $0x678] sm:$0xff] }
 0x283   :  { %4357 = vmatpush1.bf16.msra.mxu0 %v6029_v9  ;;  %v6094_v9 = vcombine.high %v1055_v12, %v1059_v27  ;;  %v6096_v43 = vcombine.high %v1056_v50, %v1060_v34  ;;  %v6095_v7 = vcombine.low %v1056_v50, %v1060_v34  ;;  %v1116_v12 = vld [vmem:[#allocation9 + $0x838] sm:$0xff] }
 0x284   :  { %4529 = vmatpush1.bf16.msra.mxu1 %v6031_v47  ;;  %4358 = vmatprep.subr.bf16.mxu0 %v6038_v59  ;;  %v1063_v47 = vld [vmem:[#allocation9 + $0x690] sm:$0xff] }
 0x285   :  { %4530 = vmatprep.subr.bf16.mxu1 %v6040_v17  ;;  %v1067_v59 = vld [vmem:[#allocation9 + $0x6b0] sm:$0xff]  ;;  %v1064_v17 = vld [vmem:[#allocation9 + $0x698] sm:$0xff] }
 0x286   :  { %v6102_v24 = vcombine.high %v1063_v47, %v1067_v59  ;;  %v6101_v1 = vcombine.low %v1063_v47, %v1067_v59  ;;  %v6103_v4 = vcombine.low %v1064_v17, %v1068_v42  ;;  %v1120_v47 = vld [vmem:[#allocation9 + $0x858] sm:$0xff] }
 0x287   :  { %4359 = vmatpush1.bf16.msra.mxu0 %v6037_v44  ;;  %v6104_v44 = vcombine.high %v1064_v17, %v1068_v42  ;;  %v1124_v59 = vld [vmem:[#allocation9 + $0x878] sm:$0xff] }
 0x288   :  { %4531 = vmatpush1.bf16.msra.mxu1 %v6039_v30  ;;  %4360 = vmatprep.subr.bf16.mxu0 %v6046_v40  ;;  %v1071_v30 = vld [vmem:[#allocation9 + $0x6d0] sm:$0xff] }
 0x289   :  { %4532 = vmatprep.subr.bf16.mxu1 %v6048_v5  ;;  %v1075_v40 = vld [vmem:[#allocation9 + $0x6f0] sm:$0xff]  ;;  %v1072_v5 = vld [vmem:[#allocation9 + $0x6d8] sm:$0xff] }
 0x28a   :  { %v6110_v20 = vcombine.high %v1071_v30, %v1075_v40  ;;  %v6109_v8 = vcombine.low %v1071_v30, %v1075_v40  ;;  %v6111_v38 = vcombine.low %v1072_v5, %v1076_v0  ;;  %v1132_v30 = vld [vmem:[#allocation9 + $0x8b8] sm:$0xff] }
 0x28b   :  { %4361 = vmatpush1.bf16.msra.mxu0 %v6045_v18  ;;  %v6112_v18 = vcombine.high %v1072_v5, %v1076_v0  ;;  %v6159_v5 = vcombine.low %v1120_v47, %v1124_v59 }
 0x28c   :  { %4533 = vmatpush1.bf16.msra.mxu1 %v6047_v19  ;;  %4362 = vmatprep.subr.bf16.mxu0 %v6054_v23  ;;  %v1079_v19 = vld [vmem:[#allocation9 + $0x710] sm:$0xff] }
 0x28d   :  { %4534 = vmatprep.subr.bf16.mxu1 %v6056_v58  ;;  %v1083_v23 = vld [vmem:[#allocation9 + $0x730] sm:$0xff]  ;;  %v1080_v58 = vld [vmem:[#allocation9 + $0x718] sm:$0xff] }
 0x28e   :  { %v6118_v52 = vcombine.high %v1079_v19, %v1083_v23  ;;  %v6117_v39 = vcombine.low %v1079_v19, %v1083_v23  ;;  %v6119_v6 = vcombine.low %v1080_v58, %v1084_v26  ;;  %v1140_v19 = vld [vmem:[#allocation9 + $0x8f8] sm:$0xff] }
 0x28f   :  { %4363 = vmatpush1.bf16.msra.mxu0 %v6053_v35  ;;  %v6120_v35 = vcombine.high %v1080_v58, %v1084_v26 }
 0x290   :  { %4535 = vmatpush1.bf16.msra.mxu1 %v6055_v15  ;;  %4364 = vmatprep.subr.bf16.mxu0 %v6062_v46  ;;  %v1087_v15 = vld [vmem:[#allocation9 + $0x750] sm:$0xff] }
 0x291   :  { %4536 = vmatprep.subr.bf16.mxu1 %v6064_v13  ;;  %v1091_v46 = vld [vmem:[#allocation9 + $0x770] sm:$0xff]  ;;  %v1088_v13 = vld [vmem:[#allocation9 + $0x758] sm:$0xff] }
 0x292   :  { %v6126_v37 = vcombine.high %v1087_v15, %v1091_v46  ;;  %v6125_v41 = vcombine.low %v1087_v15, %v1091_v46  ;;  %v6127_v10 = vcombine.low %v1088_v13, %v1092_v11 }
 0x293   :  { %4365 = vmatpush1.bf16.msra.mxu0 %v6061_v29  ;;  %v6128_v29 = vcombine.high %v1088_v13, %v1092_v11  ;;  %v1151_v11 = vld [vmem:[#allocation9 + $0x950] sm:$0xff] }
 0x294   :  { %4537 = vmatpush1.bf16.msra.mxu1 %v6063_v36  ;;  %4366 = vmatprep.subr.bf16.mxu0 %v6070_v56  ;;  %v1095_v36 = vld [vmem:[#allocation9 + $0x790] sm:$0xff] }
 0x295   :  { %4538 = vmatprep.subr.bf16.mxu1 %v6072_v14  ;;  %v1099_v56 = vld [vmem:[#allocation9 + $0x7b0] sm:$0xff]  ;;  %v1096_v14 = vld [vmem:[#allocation9 + $0x798] sm:$0xff] }
 0x296   :  { %v6134_v3 = vcombine.high %v1095_v36, %v1099_v56  ;;  %v6133_v62 = vcombine.low %v1095_v36, %v1099_v56  ;;  %v6135_v16 = vcombine.low %v1096_v14, %v1100_v21 }
 0x297   :  { %4367 = vmatpush1.bf16.msra.mxu0 %v6069_v55  ;;  %v6136_v55 = vcombine.high %v1096_v14, %v1100_v21  ;;  %v1159_v21 = vld [vmem:[#allocation9 + $0x990] sm:$0xff] }
 0x298   :  { %4539 = vmatpush1.bf16.msra.mxu1 %v6071_v51  ;;  %4368 = vmatprep.subr.bf16.mxu0 %v6078_v53  ;;  %v1103_v51 = vld [vmem:[#allocation9 + $0x7d0] sm:$0xff] }
 0x299   :  { %4540 = vmatprep.subr.bf16.mxu1 %v6080_v49  ;;  %v1107_v53 = vld [vmem:[#allocation9 + $0x7f0] sm:$0xff]  ;;  %v1104_v49 = vld [vmem:[#allocation9 + $0x7d8] sm:$0xff] }
 0x29a   :  { %v6142_v61 = vcombine.high %v1103_v51, %v1107_v53  ;;  %v6141_v27 = vcombine.low %v1103_v51, %v1107_v53  ;;  %v6143_v50 = vcombine.low %v1104_v49, %v1108_v22 }
 0x29b   :  { %4369 = vmatpush1.bf16.msra.mxu0 %v6077_v2  ;;  %v6144_v2 = vcombine.high %v1104_v49, %v1108_v22  ;;  %v1167_v22 = vld [vmem:[#allocation9 + $0x9d0] sm:$0xff] }
 0x29c   :  { %4541 = vmatpush1.bf16.msra.mxu1 %v6079_v31  ;;  %4370 = vmatprep.subr.bf16.mxu0 %v6086_v25  ;;  %v1111_v31 = vld [vmem:[#allocation9 + $0x810] sm:$0xff] }
 0x29d   :  { %4542 = vmatprep.subr.bf16.mxu1 %v6088_v57  ;;  %v1115_v25 = vld [vmem:[#allocation9 + $0x830] sm:$0xff]  ;;  %v1112_v57 = vld [vmem:[#allocation9 + $0x818] sm:$0xff] }
 0x29e   :  { %v6150_v34 = vcombine.high %v1111_v31, %v1115_v25  ;;  %v6151_v17 = vcombine.low %v1112_v57, %v1116_v12 }
 0x29f   :  { %4371 = vmatpush1.bf16.msra.mxu0 %v6085_v33  ;;  %v6152_v33 = vcombine.high %v1112_v57, %v1116_v12  ;;  %v1175_v12 = vld [vmem:[#allocation9 + $0xa10] sm:$0xff] }
 0x2a0   :  { %4543 = vmatpush1.bf16.msra.mxu1 %v6087_v32  ;;  %4372 = vmatprep.subr.bf16.mxu0 %v6094_v9  ;;  %v1119_v32 = vld [vmem:[#allocation9 + $0x850] sm:$0xff] }
 0x2a1   :  { %4544 = vmatprep.subr.bf16.mxu1 %v6096_v43  ;;  %v1123_v9 = vld [vmem:[#allocation9 + $0x870] sm:$0xff]  ;;  %v6149_v43 = vcombine.low %v1111_v31, %v1115_v25 }
 0x2a2   :  { %v6158_v42 = vcombine.high %v1119_v32, %v1123_v9  ;;  %v6157_v40 = vcombine.low %v1119_v32, %v1123_v9 }
 0x2a3   :  { %4373 = vmatpush1.bf16.msra.mxu0 %v6093_v45  ;;  %v1127_v45 = vld [vmem:[#allocation9 + $0x890] sm:$0xff] }
 0x2a4   :  { %4545 = vmatpush1.bf16.msra.mxu1 %v6095_v7  ;;  %4374 = vmatprep.subr.bf16.mxu0 %v6102_v24  ;;  %v1131_v7 = vld [vmem:[#allocation9 + $0x8b0] sm:$0xff]  ;;  %v6160_v24 = vcombine.high %v1120_v47, %v1124_v59 }
 0x2a5   :  { %4546 = vmatprep.subr.bf16.mxu1 %v6104_v44  ;;  %v1128_v44 = vld [vmem:[#allocation9 + $0x898] sm:$0xff]  ;;  %v6166_v0 = vcombine.high %v1127_v45, %v1131_v7  ;;  %v6165_v23 = vcombine.low %v1127_v45, %v1131_v7  ;;  %v1183_v47 = vld [vmem:[#allocation9 + $0xa50] sm:$0xff] }
 0x2a6   :  { %v1187_v59 = vld [vmem:[#allocation9 + $0xa70] sm:$0xff] }
 0x2a7   :  { %4375 = vmatpush1.bf16.msra.mxu0 %v6101_v1  ;;  %v6168_v1 = vcombine.high %v1128_v44, %v1132_v30 }
 0x2a8   :  { %4547 = vmatpush1.bf16.msra.mxu1 %v6103_v4  ;;  %4376 = vmatprep.subr.bf16.mxu0 %v6110_v20  ;;  %v1135_v4 = vld [vmem:[#allocation9 + $0x8d0] sm:$0xff] }
 0x2a9   :  { %4548 = vmatprep.subr.bf16.mxu1 %v6112_v18  ;;  %v1139_v20 = vld [vmem:[#allocation9 + $0x8f0] sm:$0xff]  ;;  %v1136_v18 = vld [vmem:[#allocation9 + $0x8d8] sm:$0xff] }
 0x2aa   :  { %v6174_v58 = vcombine.high %v1135_v4, %v1139_v20  ;;  %v6176_v26 = vcombine.high %v1136_v18, %v1140_v19  ;;  %v6175_v15 = vcombine.low %v1136_v18, %v1140_v19  ;;  %v1199_v19 = vld [vmem:[#allocation9 + $0xad0] sm:$0xff] }
 0x2ab   :  { %4377 = vmatpush1.bf16.msra.mxu0 %v6109_v8  ;;  %v1143_v8 = vld [vmem:[#allocation9 + $0x910] sm:$0xff] }
 0x2ac   :  { %4549 = vmatpush1.bf16.msra.mxu1 %v6111_v38  ;;  %4378 = vmatprep.subr.bf16.mxu0 %v6118_v52  ;;  %v1147_v38 = vld [vmem:[#allocation9 + $0x930] sm:$0xff]  ;;  %v1144_v52 = vld [vmem:[#allocation9 + $0x918] sm:$0xff] }
 0x2ad   :  { %4550 = vmatprep.subr.bf16.mxu1 %v6120_v35  ;;  %v1148_v35 = vld [vmem:[#allocation9 + $0x938] sm:$0xff]  ;;  %v6182_v46 = vcombine.high %v1143_v8, %v1147_v38 }
 0x2ae   :  { %v6184_v13 = vcombine.high %v1144_v52, %v1148_v35  ;;  %v6183_v36 = vcombine.low %v1144_v52, %v1148_v35  ;;  %v1207_v35 = vld [vmem:[#allocation9 + $0xb10] sm:$0xff] }
 0x2af   :  { %4379 = vmatpush1.bf16.msra.mxu0 %v6117_v39  ;;  %v1155_v39 = vld [vmem:[#allocation9 + $0x970] sm:$0xff] }
 0x2b0   :  { %4551 = vmatpush1.bf16.msra.mxu1 %v6119_v6  ;;  %4380 = vmatprep.subr.bf16.mxu0 %v6126_v37  ;;  %v1152_v6 = vld [vmem:[#allocation9 + $0x958] sm:$0xff]  ;;  %v6190_v56 = vcombine.high %v1151_v11, %v1155_v39 }
 0x2b1   :  { %4552 = vmatprep.subr.bf16.mxu1 %v6128_v29  ;;  %v1156_v37 = vld [vmem:[#allocation9 + $0x978] sm:$0xff]  ;;  %v6181_v29 = vcombine.low %v1143_v8, %v1147_v38 }
 0x2b2   :  { %v6192_v14 = vcombine.high %v1152_v6, %v1156_v37  ;;  %v6191_v51 = vcombine.low %v1152_v6, %v1156_v37  ;;  %v1215_v37 = vld [vmem:[#allocation9 + $0xb50] sm:$0xff] }
 0x2b3   :  { %4381 = vmatpush1.bf16.msra.mxu0 %v6125_v41  ;;  %v1163_v41 = vld [vmem:[#allocation9 + $0x9b0] sm:$0xff] }
 0x2b4   :  { %4553 = vmatpush1.bf16.msra.mxu1 %v6127_v10  ;;  %4382 = vmatprep.subr.bf16.mxu0 %v6134_v3  ;;  %v1160_v10 = vld [vmem:[#allocation9 + $0x998] sm:$0xff]  ;;  %v6198_v53 = vcombine.high %v1159_v21, %v1163_v41 }
 0x2b5   :  { %4554 = vmatprep.subr.bf16.mxu1 %v6136_v55  ;;  %v1164_v3 = vld [vmem:[#allocation9 + $0x9b8] sm:$0xff]  ;;  %v6189_v55 = vcombine.low %v1151_v11, %v1155_v39 }
 0x2b6   :  { %v6200_v49 = vcombine.high %v1160_v10, %v1164_v3  ;;  %v6199_v31 = vcombine.low %v1160_v10, %v1164_v3  ;;  %v1223_v3 = vld [vmem:[#allocation9 + $0xb90] sm:$0xff] }
 0x2b7   :  { %4383 = vmatpush1.bf16.msra.mxu0 %v6133_v62  ;;  %v1171_v62 = vld [vmem:[#allocation9 + $0x9f0] sm:$0xff] }
 0x2b8   :  { %4555 = vmatpush1.bf16.msra.mxu1 %v6135_v16  ;;  %4384 = vmatprep.subr.bf16.mxu0 %v6142_v61  ;;  %v1168_v16 = vld [vmem:[#allocation9 + $0x9d8] sm:$0xff]  ;;  %v6206_v25 = vcombine.high %v1167_v22, %v1171_v62 }
 0x2b9   :  { %4556 = vmatprep.subr.bf16.mxu1 %v6144_v2  ;;  %v1172_v61 = vld [vmem:[#allocation9 + $0x9f8] sm:$0xff]  ;;  %v6197_v2 = vcombine.low %v1159_v21, %v1163_v41 }
 0x2ba   :  { %v6208_v57 = vcombine.high %v1168_v16, %v1172_v61  ;;  %v6207_v32 = vcombine.low %v1168_v16, %v1172_v61  ;;  %v1231_v61 = vld [vmem:[#allocation9 + $0xbd0] sm:$0xff] }
 0x2bb   :  { %4385 = vmatpush1.bf16.msra.mxu0 %v6141_v27  ;;  %v1179_v27 = vld [vmem:[#allocation9 + $0xa30] sm:$0xff] }
 0x2bc   :  { %4557 = vmatpush1.bf16.msra.mxu1 %v6143_v50  ;;  %4397 = vmatprep.subr.bf16.mxu0 %v6150_v34  ;;  %v1176_v50 = vld [vmem:[#allocation9 + $0xa18] sm:$0xff]  ;;  %v6214_v9 = vcombine.high %v1175_v12, %v1179_v27  ;;  %v6213_v45 = vcombine.low %v1175_v12, %v1179_v27 }
 0x2bd   :  { %4569 = vmatprep.subr.bf16.mxu1 %v6152_v33  ;;  %v1180_v34 = vld [vmem:[#allocation9 + $0xa38] sm:$0xff]  ;;  %v6205_v33 = vcombine.low %v1167_v22, %v1171_v62 }
 0x2be   :  { %4387 = vmatmul.mubr.bf16.vlgmr.msra.gmra.mrb[12].mxu0 %v7511_v63  ;;  %v6215_v7 = vcombine.low %v1176_v50, %v1180_v34 }
 0x2bf   :  { %4559 = vmatmul.mubr.bf16.vlgmr.msra.gmra.mrb[12].mxu1 %v7511_v63  ;;  %4398 = vmatpush1.bf16.msra.mxu0 %v6149_v43  ;;  %v6167_v63 = vcombine.low %v1128_v44, %v1132_v30  ;;  %v6216_v43 = vcombine.high %v1176_v50, %v1180_v34  ;;  %v1191_v30 = vld [vmem:[#allocation9 + $0xa90] sm:$0xff] }
 0x2c0   :  { %4429 = vmatprep.mubr.bf16.mxu0 %v7936_v54  ;;  %4570 = vmatpush1.bf16.msra.mxu1 %v6151_v17  ;;  %v1184_v17 = vld [vmem:[#allocation9 + $0xa58] sm:$0xff]  ;;  %v1239_v34 = vld [vmem:[#allocation9 + $0xc10] sm:$0xff] }
 0x2c1   :  { %4601 = vmatprep.mubr.bf16.mxu1 %v7936_v54  ;;  %4399 = vmatprep.subr.bf16.mxu0 %v6158_v42  ;;  %v6173_v54 = vcombine.low %v1135_v4, %v1139_v20  ;;  %v1188_v42 = vld [vmem:[#allocation9 + $0xa78] sm:$0xff] }
 0x2c2   :  { %4571 = vmatprep.subr.bf16.mxu1 %v6160_v24  ;;  %v6222_v24 = vcombine.high %v1183_v47, %v1187_v59  ;;  %v6224_v44 = vcombine.high %v1184_v17, %v1188_v42  ;;  %v6223_v4 = vcombine.low %v1184_v17, %v1188_v42  ;;  %v1247_v42 = vld [vmem:[#allocation9 + $0xc50] sm:$0xff] }
 0x2c3   :  { %4400 = vmatpush1.bf16.msra.mxu0 %v6157_v40  ;;  %v1195_v40 = vld [vmem:[#allocation9 + $0xab0] sm:$0xff] }
 0x2c4   :  { %4572 = vmatpush1.bf16.msra.mxu1 %v6159_v5  ;;  %4401 = vmatprep.subr.bf16.mxu0 %v6166_v0  ;;  %v1192_v5 = vld [vmem:[#allocation9 + $0xa98] sm:$0xff]  ;;  %v6230_v20 = vcombine.high %v1191_v30, %v1195_v40 }
 0x2c5   :  { %4573 = vmatprep.subr.bf16.mxu1 %v6168_v1  ;;  %v1196_v0 = vld [vmem:[#allocation9 + $0xab8] sm:$0xff]  ;;  %v6221_v1 = vcombine.low %v1183_v47, %v1187_v59 }
 0x2c6   :  { %v6232_v18 = vcombine.high %v1192_v5, %v1196_v0  ;;  %v6231_v8 = vcombine.low %v1192_v5, %v1196_v0  ;;  %v1255_v5 = vld [vmem:[#allocation9 + $0xc90] sm:$0xff] }
 0x2c7   :  { %4402 = vmatpush1.bf16.msra.mxu0 %v6165_v23  ;;  %v1203_v23 = vld [vmem:[#allocation9 + $0xaf0] sm:$0xff] }
 0x2c8   :  { %4574 = vmatpush1.bf16.msra.mxu1 %v6167_v63  ;;  %4403 = vmatprep.subr.bf16.mxu0 %v6174_v58  ;;  %v1200_v63 = vld [vmem:[#allocation9 + $0xad8] sm:$0xff]  ;;  %v6238_v38 = vcombine.high %v1199_v19, %v1203_v23  ;;  %v1259_v0 = vld [vmem:[#allocation9 + $0xcb0] sm:$0xff] }
 0x2c9   :  { %4575 = vmatprep.subr.bf16.mxu1 %v6176_v26  ;;  %v1204_v58 = vld [vmem:[#allocation9 + $0xaf8] sm:$0xff]  ;;  %v6229_v26 = vcombine.low %v1191_v30, %v1195_v40 }
 0x2ca   :  { %v6240_v52 = vcombine.high %v1200_v63, %v1204_v58  ;;  %v6239_v11 = vcombine.low %v1200_v63, %v1204_v58  ;;  %v1263_v58 = vld [vmem:[#allocation9 + $0xcd0] sm:$0xff] }
 0x2cb   :  { %4404 = vmatpush1.bf16.msra.mxu0 %v6173_v54  ;;  %v1211_v54 = vld [vmem:[#allocation9 + $0xb30] sm:$0xff] }
 0x2cc   :  { %4576 = vmatpush1.bf16.msra.mxu1 %v6175_v15  ;;  %4405 = vmatprep.subr.bf16.mxu0 %v6182_v46  ;;  %v1208_v15 = vld [vmem:[#allocation9 + $0xb18] sm:$0xff]  ;;  %v6246_v39 = vcombine.high %v1207_v35, %v1211_v54 }
 0x2cd   :  { %4577 = vmatprep.subr.bf16.mxu1 %v6184_v13  ;;  %v1212_v46 = vld [vmem:[#allocation9 + $0xb38] sm:$0xff]  ;;  %v6237_v13 = vcombine.low %v1199_v19, %v1203_v23  ;;  %v6294_v23 = vcombine.high %v1255_v5, %v1259_v0 }
 0x2ce   :  { %v6248_v6 = vcombine.high %v1208_v15, %v1212_v46  ;;  %v6247_v21 = vcombine.low %v1208_v15, %v1212_v46  ;;  %v1271_v15 = vld [vmem:[#allocation9 + $0xd10] sm:$0xff] }
 0x2cf   :  { %4406 = vmatpush1.bf16.msra.mxu0 %v6181_v29  ;;  %v1219_v29 = vld [vmem:[#allocation9 + $0xb70] sm:$0xff] }
 0x2d0   :  { %4578 = vmatpush1.bf16.msra.mxu1 %v6183_v36  ;;  %4407 = vmatprep.subr.bf16.mxu0 %v6190_v56  ;;  %v1216_v36 = vld [vmem:[#allocation9 + $0xb58] sm:$0xff]  ;;  %v6254_v41 = vcombine.high %v1215_v37, %v1219_v29  ;;  %v1275_v46 = vld [vmem:[#allocation9 + $0xd30] sm:$0xff] }
 0x2d1   :  { %4579 = vmatprep.subr.bf16.mxu1 %v6192_v14  ;;  %v1220_v56 = vld [vmem:[#allocation9 + $0xb78] sm:$0xff]  ;;  %v6245_v14 = vcombine.low %v1207_v35, %v1211_v54 }
 0x2d2   :  { %v6256_v10 = vcombine.high %v1216_v36, %v1220_v56  ;;  %v6255_v22 = vcombine.low %v1216_v36, %v1220_v56  ;;  %v1283_v36 = vld [vmem:[#allocation9 + $0xd70] sm:$0xff]  ;;  %v1280_v56 = vld [vmem:[#allocation9 + $0xd58] sm:$0xff] }
 0x2d3   :  { %4408 = vmatpush1.bf16.msra.mxu0 %v6189_v55  ;;  %v1227_v55 = vld [vmem:[#allocation9 + $0xbb0] sm:$0xff] }
 0x2d4   :  { %4580 = vmatpush1.bf16.msra.mxu1 %v6191_v51  ;;  %4409 = vmatprep.subr.bf16.mxu0 %v6198_v53  ;;  %v1224_v51 = vld [vmem:[#allocation9 + $0xb98] sm:$0xff]  ;;  %v6262_v62 = vcombine.high %v1223_v3, %v1227_v55 }
 0x2d5   :  { %4581 = vmatprep.subr.bf16.mxu1 %v6200_v49  ;;  %v1228_v53 = vld [vmem:[#allocation9 + $0xbb8] sm:$0xff]  ;;  %v6253_v49 = vcombine.low %v1215_v37, %v1219_v29  ;;  %v1279_v29 = vld [vmem:[#allocation9 + $0xd50] sm:$0xff] }
 0x2d6   :  { %v6264_v16 = vcombine.high %v1224_v51, %v1228_v53  ;;  %v6263_v12 = vcombine.low %v1224_v51, %v1228_v53  ;;  %v7999_v51 = vld [vmem:[#allocation9 + $0xd90] sm:$0xff] }
 0x2d7   :  { %4410 = vmatpush1.bf16.msra.mxu0 %v6197_v2  ;;  %v1235_v2 = vld [vmem:[#allocation9 + $0xbf0] sm:$0xff] }
 0x2d8   :  { %4582 = vmatpush1.bf16.msra.mxu1 %v6199_v31  ;;  %4411 = vmatprep.subr.bf16.mxu0 %v6206_v25  ;;  %v1232_v31 = vld [vmem:[#allocation9 + $0xbd8] sm:$0xff]  ;;  %v6270_v27 = vcombine.high %v1231_v61, %v1235_v2  ;;  %v8001_v53 = vld [vmem:[#allocation9 + $0xdb0] sm:$0xff] }
 0x2d9   :  { %4583 = vmatprep.subr.bf16.mxu1 %v6208_v57  ;;  %v1236_v25 = vld [vmem:[#allocation9 + $0xbf8] sm:$0xff]  ;;  %v6261_v57 = vcombine.low %v1223_v3, %v1227_v55  ;;  %v6318_v3 = vcombine.high %v1279_v29, %v1283_v36 }
 0x2da   :  { %v6272_v50 = vcombine.high %v1232_v31, %v1236_v25  ;;  %v6271_v47 = vcombine.low %v1232_v31, %v1236_v25  ;;  %v8013_v31 = vld [vmem:[#allocation9 + $0xdb8] sm:$0xff] }
 0x2db   :  { %4412 = vmatpush1.bf16.msra.mxu0 %v6205_v33  ;;  %v1243_v33 = vld [vmem:[#allocation9 + $0xc30] sm:$0xff] }
 0x2dc   :  { %4584 = vmatpush1.bf16.msra.mxu1 %v6207_v32  ;;  %4413 = vmatprep.subr.bf16.mxu0 %v6214_v9  ;;  %v1240_v32 = vld [vmem:[#allocation9 + $0xc18] sm:$0xff]  ;;  %v6278_v59 = vcombine.high %v1239_v34, %v1243_v33 }
 0x2dd   :  { %4585 = vmatprep.subr.bf16.mxu1 %v6216_v43  ;;  %v1244_v9 = vld [vmem:[#allocation9 + $0xc38] sm:$0xff]  ;;  %v6269_v43 = vcombine.low %v1231_v61, %v1235_v2 }
 0x2de   :  { %v6280_v17 = vcombine.high %v1240_v32, %v1244_v9  ;;  %v6279_v30 = vcombine.low %v1240_v32, %v1244_v9  ;;  %v8011_v2 = vld [vmem:[#allocation9 + $0xd98] sm:$0xff]  ;;  %v6326_v9 = vcombine.high %v7999_v51, %v8001_v53 }
 0x2df   :  { %4414 = vmatpush1.bf16.msra.mxu0 %v6213_v45  ;;  %v1251_v45 = vld [vmem:[#allocation9 + $0xc70] sm:$0xff] }
 0x2e0   :  { %4586 = vmatpush1.bf16.msra.mxu1 %v6215_v7  ;;  %4415 = vmatprep.subr.bf16.mxu0 %v6222_v24  ;;  %v6277_v7 = vcombine.low %v1239_v34, %v1243_v33  ;;  %v1248_v24 = vld [vmem:[#allocation9 + $0xc58] sm:$0xff]  ;;  %v6286_v40 = vcombine.high %v1247_v42, %v1251_v45  ;;  %v8023_v34 = vld [vmem:[#allocation9 + $0xdd0] sm:$0xff] }
 0x2e1   :  { %4587 = vmatprep.subr.bf16.mxu1 %v6224_v44  ;;  %v1252_v44 = vld [vmem:[#allocation9 + $0xc78] sm:$0xff]  ;;  %v8025_v33 = vld [vmem:[#allocation9 + $0xdf0] sm:$0xff] }
 0x2e2   :  { %v6287_v19 = vcombine.low %v1248_v24, %v1252_v44 }
 0x2e3   :  { %4416 = vmatpush1.bf16.msra.mxu0 %v6221_v1  ;;  %v6288_v1 = vcombine.high %v1248_v24, %v1252_v44  ;;  %v8039_v24 = vld [vmem:[#allocation9 + $0xe30] sm:$0xff] }
 0x2e4   :  { %4588 = vmatpush1.bf16.msra.mxu1 %v6223_v4  ;;  %4417 = vmatprep.subr.bf16.mxu0 %v6230_v20  ;;  %v1256_v4 = vld [vmem:[#allocation9 + $0xc98] sm:$0xff] }
 0x2e5   :  { %4589 = vmatprep.subr.bf16.mxu1 %v6232_v18  ;;  %v1260_v20 = vld [vmem:[#allocation9 + $0xcb8] sm:$0xff]  ;;  %v6285_v18 = vcombine.low %v1247_v42, %v1251_v45  ;;  %v6325_v42 = vcombine.low %v7999_v51, %v8001_v53  ;;  %v6328_v45 = vcombine.high %v8011_v2, %v8013_v31 }
 0x2e6   :  { %v6296_v63 = vcombine.high %v1256_v4, %v1260_v20 }
 0x2e7   :  { %4418 = vmatpush1.bf16.msra.mxu0 %v6229_v26  ;;  %v1267_v26 = vld [vmem:[#allocation9 + $0xcf0] sm:$0xff] }
 0x2e8   :  { %4590 = vmatpush1.bf16.msra.mxu1 %v6231_v8  ;;  %4419 = vmatprep.subr.bf16.mxu0 %v6238_v38  ;;  %v1264_v8 = vld [vmem:[#allocation9 + $0xcd8] sm:$0xff]  ;;  %v6302_v35 = vcombine.high %v1263_v58, %v1267_v26 }
 0x2e9   :  { %4591 = vmatprep.subr.bf16.mxu1 %v6240_v52  ;;  %v1268_v38 = vld [vmem:[#allocation9 + $0xcf8] sm:$0xff]  ;;  %v6293_v52 = vcombine.low %v1255_v5, %v1259_v0  ;;  %v6327_v0 = vcombine.low %v8011_v2, %v8013_v31 }
 0x2ea   :  { %v6304_v54 = vcombine.high %v1264_v8, %v1268_v38  ;;  %v8131_v2 = vld [vmem:[#allocation9 + $0xef8] sm:$0xff] }
 0x2eb   :  { %4420 = vmatpush1.bf16.msra.mxu0 %v6237_v13  ;;  %v1272_v13 = vld [vmem:[#allocation9 + $0xd18] sm:$0xff] }
 0x2ec   :  { %4592 = vmatpush1.bf16.msra.mxu1 %v6239_v11  ;;  %4421 = vmatprep.subr.bf16.mxu0 %v6246_v39  ;;  %v1276_v11 = vld [vmem:[#allocation9 + $0xd38] sm:$0xff]  ;;  %v6303_v39 = vcombine.low %v1264_v8, %v1268_v38  ;;  %v8071_v38 = vld [vmem:[#allocation9 + $0xe70] sm:$0xff] }
 0x2ed   :  { %4593 = vmatprep.subr.bf16.mxu1 %v6248_v6  ;;  %v6310_v6 = vcombine.high %v1271_v15, %v1275_v46  ;;  %v6312_v37 = vcombine.high %v1272_v13, %v1276_v11 }
 0x2ef   :  { %4422 = vmatpush1.bf16.msra.mxu0 %v6245_v14  ;;  %v1284_v14 = vld [vmem:[#allocation9 + $0xd78] sm:$0xff] }
 0x2f0   :  { %4594 = vmatpush1.bf16.msra.mxu1 %v6247_v21  ;;  %4423 = vmatprep.subr.bf16.mxu0 %v6254_v41  ;;  %v6309_v21 = vcombine.low %v1271_v15, %v1275_v46  ;;  %v1365_v41 = vld [vmem:[#allocation11] sm:$0xff]  ;;  %v6320_v55 = vcombine.high %v1280_v56, %v1284_v14  ;;  %v6319_v32 = vcombine.low %v1280_v56, %v1284_v14 }
 0x2f1   :  { %4595 = vmatprep.subr.bf16.mxu1 %v6256_v10  ;;  %v6311_v10 = vcombine.low %v1272_v13, %v1276_v11  ;;  %v8087_v13 = vld [vmem:[#allocation9 + $0xe90] sm:$0xff] }
 0x2f2   :  { %v8089_v11 = vld [vmem:[#allocation9 + $0xeb0] sm:$0xff] }
 0x2f3   :  { %4424 = vmatpush1.bf16.msra.mxu0 %v6253_v49  ;;  %v9005_v49 = vld [vmem:[#allocation20_spill] sm:$0xff] }
 0x2f4   :  { %4596 = vmatpush1.bf16.msra.mxu1 %v6255_v22  ;;  %4425 = vmatprep.subr.bf16.mxu0 %v6262_v62  ;;  %v9006_v22 = vsub.s32 0, %v9005_v49  ;;  %v9008_v25 = vsub.s32 1, %v9005_v49 }
 0x2f5   :  { %4597 = vmatprep.subr.bf16.mxu1 %v6264_v16  ;;  %v9007_v16 = vsub.s32 2, %v9005_v49 }
 0x2f6   :  { %v8005_v62 = vrot.slane %v1365_v41, %v9006_v22  ;;  %v8167_v22 = vld [vmem:[#allocation9 + $0xf70] sm:$0xff] }
 0x2f7   :  { %4426 = vmatpush1.bf16.msra.mxu0 %v6261_v57  ;;  %v8009_v61 = vrot.slane %v1365_v41, %v9007_v16  ;;  %v8017_v57 = vrot.slane %v1365_v41, %v9008_v25  ;;  %v8129_v16 = vld [vmem:[#allocation9 + $0xed8] sm:$0xff] }
 0x2f8   :  { %4598 = vmatpush1.bf16.msra.mxu1 %v6263_v12  ;;  %4427 = vmatprep.subr.bf16.mxu0 %v6270_v27  ;;  %v9009_v12 = vsub.s32 3, %v9005_v49 }
 0x2f9   :  { %4599 = vmatprep.subr.bf16.mxu1 %v6272_v50  ;;  %v6317_v50 = vcombine.low %v1279_v29, %v1283_v36  ;;  %v8101_v29 = vld [vmem:[#allocation9 + $0xe98] sm:$0xff] }
 0x2fa   :  { %v8021_v27 = vrot.slane %v1365_v41, %v9009_v12  ;;  %v8103_v36 = vld [vmem:[#allocation9 + $0xeb8] sm:$0xff] }
 0x2fb   :  { %4428 = vmatpush1.bf16.msra.mxu0 %v6269_v43  ;;  %v8029_v43 = vld [vmem:[#allocation9 + $0xdd8] sm:$0xff] }
 0x2fc   :  { %4600 = vmatpush1.bf16.msra.mxu1 %v6271_v47  ;;  %4440 = vmatprep.subr.bf16.mxu0 %v6278_v59  ;;  %v8031_v47 = vld [vmem:[#allocation9 + $0xdf8] sm:$0xff] }
 0x2fd   :  { %4612 = vmatprep.subr.bf16.mxu1 %v6280_v17  ;;  %v6335_v8 = vcombine.low %v8029_v43, %v8031_v47  ;;  %v6336_v15 = vcombine.high %v8029_v43, %v8031_v47 }
 0x2fe   :  { %4430 = vmatmul.mubr.bf16.vlgmr.msra.gmra.mrb[12].mxu0 %v7894_v48 }
 0x2ff   :  { %4602 = vmatmul.mubr.bf16.vlgmr.msra.gmra.mrb[12].mxu1 %v7894_v48  ;;  %4441 = vmatpush1.bf16.msra.mxu0 %v6277_v7  ;;  %v6295_v48 = vcombine.low %v1256_v4, %v1260_v20  ;;  %v8037_v7 = vld [vmem:[#allocation9 + $0xe10] sm:$0xff]  ;;  %v8051_v4 = vld [vmem:[#allocation9 + $0xe18] sm:$0xff] }
 0x300   :  { %4472 = vmatprep.mubr.bf16.mxu0 %v7977_v28  ;;  %4613 = vmatpush1.bf16.msra.mxu1 %v6279_v30  ;;  %v8053_v20 = vld [vmem:[#allocation9 + $0xe38] sm:$0xff]  ;;  %v6342_v46 = vcombine.high %v8037_v7, %v8039_v24 }
 0x301   :  { %4644 = vmatprep.mubr.bf16.mxu1 %v7977_v28  ;;  %4442 = vmatprep.subr.bf16.mxu0 %v6286_v40  ;;  %v6301_v28 = vcombine.low %v1263_v58, %v1267_v26  ;;  %v6333_v26 = vcombine.low %v8023_v34, %v8025_v33 }
 0x302   :  { %4614 = vmatprep.subr.bf16.mxu1 %v6288_v1  ;;  %v6334_v1 = vcombine.high %v8023_v34, %v8025_v33  ;;  %v8139_v34 = vld [vmem:[#allocation9 + $0xf10] sm:$0xff] }
 0x303   :  { %4443 = vmatpush1.bf16.msra.mxu0 %v6285_v18  ;;  %v8055_v18 = vld [vmem:[#allocation9 + $0xe50] sm:$0xff] }
 0x304   :  { %4615 = vmatpush1.bf16.msra.mxu1 %v6287_v19  ;;  %4444 = vmatprep.subr.bf16.mxu0 %v6294_v23  ;;  %v6350_v41 = vcombine.high %v8055_v18, %v8071_v38  ;;  %v8141_v33 = vld [vmem:[#allocation9 + $0xf30] sm:$0xff] }
 0x305   :  { %4616 = vmatprep.subr.bf16.mxu1 %v6296_v63 }
 0x307   :  { %4445 = vmatpush1.bf16.msra.mxu0 %v6293_v52  ;;  %v8073_v52 = vld [vmem:[#allocation9 + $0xe58] sm:$0xff] }
 0x308   :  { %4617 = vmatpush1.bf16.msra.mxu1 %v6295_v48  ;;  %4446 = vmatprep.subr.bf16.mxu0 %v6302_v35  ;;  %v8075_v48 = vld [vmem:[#allocation9 + $0xe78] sm:$0xff] }
 0x309   :  { %4618 = vmatprep.subr.bf16.mxu1 %v6304_v54  ;;  %v6352_v12 = vcombine.high %v8073_v52, %v8075_v48 }
 0x30b   :  { %4447 = vmatpush1.bf16.msra.mxu0 %v6301_v28 }
 0x30c   :  { %4619 = vmatpush1.bf16.msra.mxu1 %v6303_v39  ;;  %4448 = vmatprep.subr.bf16.mxu0 %v6310_v6  ;;  %v6341_v6 = vcombine.low %v8037_v7, %v8039_v24  ;;  %v8227_v7 = vld [vmem:[#allocation9 + $0xfb8] sm:$0xff] }
 0x30d   :  { %4620 = vmatprep.subr.bf16.mxu1 %v6312_v37  ;;  %v6343_v37 = vcombine.low %v8051_v4, %v8053_v20 }
 0x30f   :  { %4449 = vmatpush1.bf16.msra.mxu0 %v6309_v21  ;;  %v6344_v21 = vcombine.high %v8051_v4, %v8053_v20  ;;  %v8238_v4 = vld [vmem:[#allocation9 + $0xfd0] sm:$0xff] }
 0x310   :  { %4621 = vmatpush1.bf16.msra.mxu1 %v6311_v10  ;;  %4450 = vmatprep.subr.bf16.mxu0 %v6318_v3  ;;  %v8115_v10 = vld [vmem:[#allocation9 + $0xed0] sm:$0xff] }
 0x311   :  { %v4130_v59 = vpop.f32.mrb[8].mxu0  ;;  %4622 = vmatprep.subr.bf16.mxu1 %v6320_v55  ;;  %v8117_v3 = vld [vmem:[#allocation9 + $0xef0] sm:$0xff] }
 0x312   :  { %v4302_v17 = vpop.f32.mrb[8].mxu1  ;;  %v8042_v44 = vadd.f32 %v4130_v59, %v8005_v62  ;;  %v4132_v40 = vpop.f32.mrb[9].mxu0  ;;  %v8178_v59 = vld [vmem:[#allocation9 + $0xf58] sm:$0xff]  ;;  %v9018_v49 = vcombine.low %v8115_v10, %v8117_v3 }
 0x313   :  { %v8045_v30 = vadd.f32 %v4302_v17, %v8009_v61  ;;  %v4304_v5 = vpop.f32.mrb[9].mxu1  ;;  %v8058_v19 = vadd.f32 %v4132_v40, %v8017_v57  ;;  %v8063_v63 = vpop.f32.mrb[10].mxu0  ;;  %4451 = vmatpush1.bf16.msra.mxu0 %v6317_v50  ;;  %v9011_v17 = vcombine.low %v8073_v52, %v8075_v48 }
 0x314   :  { %v8061_v23 = vadd.f32 %v4304_v5, %v8021_v27  ;;  %v8065_v58 = vpop.f32.mrb[10].mxu1  ;;  %v8078_v35 = vmul.f32 0.70710677, %v8042_v44  ;;  %4623 = vmatpush1.bf16.msra.mxu1 %v6319_v32  ;;  %4452 = vmatprep.subr.bf16.mxu0 %v6326_v9 }
 0x315   :  { %v8081_v54 = vmul.f32 0.70710677, %v8045_v30  ;;  %v8092_v28 = vmul.f32 0.70710677, %v8058_v19  ;;  %4624 = vmatprep.subr.bf16.mxu1 %v6328_v45  ;;  %v8152_v45 = vld [vmem:[#allocation9 + $0xf38] sm:$0xff]  ;;  %v4308_v50 = vpop.f32.mrb[11].mxu1 }
 0x316   :  { %v8095_v39 = vmul.f32 0.70710677, %v8061_v23  ;;  %v8106_v56 = vand.u32 2147483647, %v8078_v35  ;;  %vm4975_vm1 = vcmp.ge.f32.partialorder %v8078_v35, 0.0  ;;  %v6653_v35 = vld [vmem:[%s8857_s5 + $0xd8] sm:$0xff]  }
 0x317   :  { %v8109_v14 = vand.u32 2147483647, %v8081_v54  ;;  %v8120_v55 = vand.u32 2147483647, %v8092_v28  ;;  %4453 = vmatpush1.bf16.msra.mxu0 %v6325_v42  ;;  %v8150_v42 = vld [vmem:[#allocation9 + $0xf18] sm:$0xff]  ;;  %vm4977_vm2 = vcmp.ge.f32.partialorder %v8081_v54, 0.0 }
 0x318   :  { %v8123_v51 = vand.u32 2147483647, %v8095_v39  ;;  %v4687_v31 = vmul.f32 0.3275911, %v8106_v56  ;;  %4625 = vmatpush1.bf16.msra.mxu1 %v6327_v0  ;;  %4454 = vmatprep.subr.bf16.mxu0 %v6334_v1  ;;  %v4136_v1 = vpop.f32.mrb[11].mxu0  ;;  %vm4976_vm3 = vcmp.ge.f32.partialorder %v8092_v28, 0.0 }
 0x319   :  { %v4689_v25 = vmul.f32 0.3275911, %v8109_v14  ;;  %v4688_v32 = vmul.f32 0.3275911, %v8120_v55  ;;  %4626 = vmatprep.subr.bf16.mxu1 %v6336_v15  ;;  %v4881_v24 = vsub.f32 0.0, %v8109_v14  ;;  %v4880_v20 = vsub.f32 0.0, %v8120_v55 }
 0x31a   :  { %v4703_v40 = vadd.f32 1.0, %v4687_v31  ;;  %v4690_v0 = vmul.f32 0.3275911, %v8123_v51  ;;  %v8180_v31 = vld [vmem:[#allocation9 + $0xf78] sm:$0xff]  ;;  %v9012_v15 = vcombine.high %v8087_v13, %v8089_v11  ;;  %vm4978_vm7 = vcmp.ge.f32.partialorder %v8095_v39, 0.0 }
 0x31b   :  { %v4705_v5 = vadd.f32 1.0, %v4689_v25  ;;  %4455 = vmatpush1.bf16.msra.mxu0 %v6333_v26  ;;  %v8165_v25 = vld [vmem:[#allocation9 + $0xf50] sm:$0xff]  ;;  %v4704_v53 = vadd.f32 1.0, %v4688_v32  ;;  %v8171_v26 = vadd.f32 %v8063_v63, %v8005_v62  ;;  %v8184_v32 = vadd.f32 %v8065_v58, %v8009_v61  ;;  %v6664_v39 = vld [vmem:[%s8857_s5 + $0x70] sm:$0xff]  }
 0x31c   :  { %6768 = vrcp.f32 %v4703_v40  ;;  %4627 = vmatpush1.bf16.msra.mxu1 %v6335_v8  ;;  %4456 = vmatprep.subr.bf16.mxu0 %v6342_v46  ;;  %v4706_v47 = vadd.f32 1.0, %v4690_v0  ;;  %v8194_v8 = vadd.f32 %v4136_v1, %v8017_v57  ;;  %v8198_v40 = vld [vmem:[#allocation9 + $0xf90] sm:$0xff]  ;;  %v8214_v0 = vld [vmem:[#allocation9 + $0xf98] sm:$0xff]  ;;  %v4879_v1 = vsub.f32 0.0, %v8106_v56 }
 0x31d   :  { %6770 = vrcp.f32 %v4705_v5  ;;  %4628 = vmatprep.subr.bf16.mxu1 %v6344_v21  ;;  %v8191_v63 = vmul.f32 0.70710677, %v8171_v26  ;;  %v8200_v61 = vld [vmem:[#allocation9 + $0xfb0] sm:$0xff]  ;;  %v8203_v58 = vmul.f32 0.70710677, %v8184_v32  ;;  %v4882_v5 = vsub.f32 0.0, %v8123_v51 }
 0x31e   :  { %6772 = vrcp.f32 %v4704_v53  ;;  %v8219_v62 = vmul.f32 0.70710677, %v8194_v8  ;;  %v8234_v53 = vadd.f32 %v4308_v50, %v8021_v27  ;;  %v8244_v21 = vld [vmem:[#allocation9 + $0xff0] sm:$0xff]  ;;  %v4895_v57 = vmul.f32 %v4879_v1, %v8106_v56 }
 0x31f   :  { %4457 = vmatpush1.bf16.msra.mxu0 %v6341_v6  ;;  %v4679_v46 = vand.u32 2147483647, %v8191_v63  ;;  %v8231_v6 = vand.u32 2147483647, %v8203_v58  ;;  %6774 = vrcp.f32 %v4706_v47  ;;  %v9013_v56 = vcombine.high %v8101_v29, %v8103_v36 }
 0x320   :  { %4629 = vmatpush1.bf16.msra.mxu1 %v6343_v37  ;;  %4458 = vmatprep.subr.bf16.mxu0 %v6350_v41  ;;  %v8242_v41 = vand.u32 2147483647, %v8219_v62  ;;  %v8267_v47 = vmul.f32 0.70710677, %v8234_v53  ;;  %v9015_v50 = vcombine.low %v8101_v29, %v8103_v36  ;;  %vm4983_vm4 = vcmp.ge.f32.partialorder %v8191_v63, 0.0  ;;  %v6657_v63 = vld [vmem:[%s8857_s5 + $0xe0] sm:$0xff]  }
 0x321   :  { %4630 = vmatprep.subr.bf16.mxu1 %v6352_v12  ;;  %v4695_v37 = vmul.f32 0.3275911, %v4679_v46  ;;  %v4697_v27 = vmul.f32 0.3275911, %v8231_v6  ;;  %v9010_v12 = vcombine.low %v8055_v18, %v8071_v38  ;;  %v4897_v38 = vmul.f32 %v4881_v24, %v8109_v14  ;;  %v8279_v14 = vld [vmem:[#allocation9 + $0xff8] sm:$0xff] }
 0x322   :  { %v4696_v43 = vmul.f32 0.3275911, %v8242_v41  ;;  %v8286_v52 = vand.u32 2147483647, %v8267_v47  ;;  %vm4985_vm5 = vcmp.ge.f32.partialorder %v8203_v58, 0.0  ;;  %v6658_v58 = vld [vmem:[%s8857_s5 + $0x20] sm:$0xff]  }
 0x323   :  { %4459 = vmatpush1.bf16.msra.mxu0 %v9010_v12  ;;  %v4711_v9 = vadd.f32 1.0, %v4695_v37  ;;  %v4713_v12 = vadd.f32 1.0, %v4697_v27  ;;  %v8277_v37 = vld [vmem:[#allocation9 + $0xfd8] sm:$0xff]  ;;  %v4915_v18 = vmul.f32 1.442695, %v4897_v38  ;;  %vm4984_vm6 = vcmp.ge.f32.partialorder %v8219_v62, 0.0 }
 0x324   :  { %4631 = vmatpush1.bf16.msra.mxu1 %v9011_v17  ;;  %4460 = vmatprep.subr.bf16.mxu0 %v9012_v15  ;;  %v4896_v17 = vmul.f32 %v4880_v20, %v8120_v55  ;;  %v4887_v15 = vsub.f32 0.0, %v4679_v46  ;;  %v4712_v1 = vadd.f32 1.0, %v4696_v43  ;;  %v9014_v55 = vcombine.low %v8087_v13, %v8089_v11  ;;  %v6661_v62 = vld [vmem:[%s8857_s5 + $0xe8] sm:$0xff]  }
 0x325   :  { %4632 = vmatprep.subr.bf16.mxu1 %v9013_v56  ;;  %6776 = vrcp.f32 %v4711_v9  ;;  %v4898_v56 = vmul.f32 %v4882_v5, %v8123_v51  ;;  %v4911_v9 = vmul.f32 1.442695, %v4895_v57  ;;  %v4889_v20 = vsub.f32 0.0, %v8231_v6 }
 0x326   :  { %v8274_v48 = vpop.eup %6768  ;;  %6778 = vrcp.f32 %v4713_v12  ;;  %v9016_v51 = vcombine.high %v8115_v10, %v8117_v3  ;;  %v4698_v13 = vmul.f32 0.3275911, %v8286_v52  ;;  %v9017_v11 = vcombine.high %v8129_v16, %v8131_v2 }
 0x327   :  { %v8281_v24 = vpop.eup %6770  ;;  %v4735_v27 = vmul.f32 1.0614054, %v8274_v48  ;;  %4461 = vmatpush1.bf16.msra.mxu0 %v9014_v55  ;;  %v4903_v55 = vmul.f32 %v4887_v15, %v4679_v46  ;;  %6780 = vrcp.f32 %v4712_v1  ;;  %v4917_v38 = vmul.f32 1.442695, %v4898_v56 }
 0x328   :  { %v4737_v43 = vmul.f32 1.0614054, %v8281_v24  ;;  %4633 = vmatpush1.bf16.msra.mxu1 %v9015_v50  ;;  %4462 = vmatprep.subr.bf16.mxu0 %v9016_v51  ;;  %v8307_v29 = vpop.eup %6772  ;;  %v4913_v50 = vmul.f32 1.442695, %v4896_v17  ;;  %v4714_v5 = vadd.f32 1.0, %v4698_v13  ;;  %6782 = vpow2.f32 %v4911_v9 }
 0x329   :  { %v4751_v12 = vadd.f32 -1.4531521, %v4735_v27  ;;  %4634 = vmatprep.subr.bf16.mxu1 %v9017_v11  ;;  %v4736_v27 = vmul.f32 1.0614054, %v8307_v29  ;;  %v8314_v11 = vpop.eup %6774  ;;  %v4888_v46 = vsub.f32 0.0, %v8242_v41  ;;  %v9019_v17 = vcombine.low %v8129_v16, %v8131_v2 }
 0x32a   :  { %v4753_v36 = vadd.f32 -1.4531521, %v4737_v43  ;;  %v4905_v43 = vmul.f32 %v4889_v20, %v8231_v6  ;;  %v9020_v15 = vcombine.high %v8139_v34, %v8141_v33  ;;  %6784 = vrcp.f32 %v4714_v5 }
 0x32b   :  { %v4767_v51 = vmul.f32 %v8274_v48, %v4751_v12  ;;  %4463 = vmatpush1.bf16.msra.mxu0 %v9018_v49  ;;  %v4752_v10 = vadd.f32 -1.4531521, %v4736_v27  ;;  %v4738_v49 = vmul.f32 1.0614054, %v8314_v11  ;;  %v9021_v3 = vcombine.high %v8150_v42, %v8152_v45 }
 0x32c   :  { %v4769_v57 = vmul.f32 %v8281_v24, %v4753_v36  ;;  %4635 = vmatpush1.bf16.msra.mxu1 %v9019_v17  ;;  %4464 = vmatprep.subr.bf16.mxu0 %v9020_v15  ;;  %6786 = vpow2.f32 %v4915_v18  ;;  %v4927_v56 = vmul.f32 1.442695, %v4903_v55  ;;  %v6400_v16 = vcombine.high %v8277_v37, %v8279_v14 }
 0x32d   :  { %v4783_v1 = vadd.f32 1.4214138, %v4767_v51  ;;  %4636 = vmatprep.subr.bf16.mxu1 %v9021_v3  ;;  %v4768_v9 = vmul.f32 %v8307_v29, %v4752_v10  ;;  %6788 = vpow2.f32 %v4913_v50  ;;  %v4754_v20 = vadd.f32 -1.4531521, %v4738_v49 }
 0x32e   :  { %v4785_v6 = vadd.f32 1.4214138, %v4769_v57  ;;  %v9022_v12 = vcombine.low %v8139_v34, %v8141_v33  ;;  %6790 = vpow2.f32 %v4917_v38  ;;  %v4931_v18 = vmul.f32 1.442695, %v4905_v43 }
 0x32f   :  { %v4799_v2 = vmul.f32 %v8274_v48, %v4783_v1  ;;  %v8336_v5 = vpop.eup %6776  ;;  %v4904_v57 = vmul.f32 %v4888_v46, %v8242_v41  ;;  %v9023_v36 = vcombine.low %v8150_v42, %v8152_v45  ;;  %v9024_v50 = vcombine.high %v8165_v25, %v8167_v22 }
 0x330   :  { %4465 = vmatpush1.bf16.msra.mxu0 %v9022_v12  ;;  %v4801_v13 = vmul.f32 %v8281_v24, %v4785_v6  ;;  %v8346_v55 = vpop.eup %6778  ;;  %v4784_v33 = vadd.f32 1.4214138, %v4768_v9  ;;  %v4770_v51 = vmul.f32 %v8314_v11, %v4754_v20  ;;  %v4743_v27 = vmul.f32 1.0614054, %v8336_v5 }
 0x331   :  { %4637 = vmatpush1.bf16.msra.mxu1 %v9023_v36  ;;  %4466 = vmatprep.subr.bf16.mxu0 %v9024_v50  ;;  %v4815_v34 = vadd.f32 -0.28449672, %v4799_v2  ;;  %v9025_v38 = vcombine.high %v8178_v59, %v8180_v31  ;;  %6792 = vpow2.f32 %v4927_v56  ;;  %v4745_v42 = vmul.f32 1.0614054, %v8346_v55  ;;  %v8360_v10 = vpop.eup %6780 }
 0x332   :  { %v4817_v41 = vadd.f32 -0.28449672, %v4801_v13  ;;  %v4890_v45 = vsub.f32 0.0, %v8286_v52  ;;  %v4800_v46 = vmul.f32 %v8307_v29, %v4784_v33  ;;  %v4786_v17 = vadd.f32 1.4214138, %v4770_v51  ;;  %v6783_v13 = vpop.eup %6782 }
 0x333   :  { %4638 = vmatprep.subr.bf16.mxu1 %v9025_v38  ;;  %v4831_v43 = vmul.f32 %v8274_v48, %v4815_v34  ;;  %v4759_v15 = vadd.f32 -1.4531521, %v4743_v27  ;;  %v9026_v1 = vcombine.low %v8165_v25, %v8167_v22  ;;  %v4761_v3 = vadd.f32 -1.4531521, %v4745_v42  ;;  %v6640_v38 = vld [vmem:[%s8857_s5 + $0x40] sm:$0xff]  }
 0x334   :  { %v4833_v49 = vmul.f32 %v8281_v24, %v4817_v41  ;;  %6794 = vpow2.f32 %v4931_v18  ;;  %v4929_v6 = vmul.f32 1.442695, %v4904_v57  ;;  %v9027_v56 = vcombine.low %v8178_v59, %v8180_v31  ;;  %v8377_v36 = vpop.eup %6784 }
 0x335   :  { %4467 = vmatpush1.bf16.msra.mxu0 %v9026_v1  ;;  %v9028_v2 = vcombine.high %v8198_v40, %v8200_v61  ;;  %v4847_v9 = vadd.f32 0.2548296, %v4831_v43  ;;  %v4816_v20 = vadd.f32 -0.28449672, %v4800_v46  ;;  %v4802_v22 = vmul.f32 %v8314_v11, %v4786_v17 }
 0x336   :  { %4639 = vmatpush1.bf16.msra.mxu1 %v9027_v56  ;;  %v4775_v25 = vmul.f32 %v8336_v5, %v4759_v15  ;;  %v9029_v12 = vcombine.high %v8214_v0, %v8227_v7  ;;  %v4849_v18 = vadd.f32 0.2548296, %v4833_v49  ;;  %v4777_v57 = vmul.f32 %v8346_v55, %v4761_v3  ;;  %v6787_v41 = vpop.eup %6786 }
 0x337   :  { %4468 = vmatprep.subr.bf16.mxu0 %v9028_v2  ;;  %v4744_v59 = vmul.f32 1.0614054, %v8360_v10  ;;  %v4906_v31 = vmul.f32 %v4890_v45, %v8286_v52  ;;  %v4863_v50 = vmul.f32 %v8274_v48, %v4847_v9  ;;  %v4832_v34 = vmul.f32 %v8307_v29, %v4816_v20 }
 0x338   :  { %4640 = vmatprep.subr.bf16.mxu1 %v9029_v12  ;;  %v4818_v33 = vadd.f32 -0.28449672, %v4802_v22  ;;  %v4791_v51 = vadd.f32 1.4214138, %v4775_v25  ;;  %v9030_v27 = vcombine.low %v8198_v40, %v8200_v61  ;;  %v4865_v42 = vmul.f32 %v8281_v24, %v4849_v18  ;;  %v6789_v40 = vpop.eup %6788 }
 0x339   :  { %v4793_v52 = vadd.f32 1.4214138, %v4777_v57  ;;  %v4760_v45 = vadd.f32 -1.4531521, %v4744_v59  ;;  %v4746_v43 = vmul.f32 1.0614054, %v8377_v36  ;;  %v9031_v48 = vcombine.low %v8214_v0, %v8227_v7  ;;  %v6791_v7 = vpop.eup %6790 }
 0x33a   :  { %4469 = vmatpush1.bf16.msra.mxu0 %v9030_v27  ;;  %v9032_v46 = vcombine.high %v8238_v4, %v8244_v21  ;;  %v8395_v61 = vmul.f32 %v6783_v13, %v4863_v50  ;;  %v4848_v17 = vadd.f32 0.2548296, %v4832_v34  ;;  %v4834_v15 = vmul.f32 %v8314_v11, %v4818_v33  ;;  %v6641_v0 = vld [vmem:[%s8857_s5 + $0xc0] sm:$0xff]  }
 0x33b   :  { %4641 = vmatpush1.bf16.msra.mxu1 %v9031_v48  ;;  %v4807_v24 = vmul.f32 %v8336_v5, %v4791_v51  ;;  %v8405_v1 = vmul.f32 %v6787_v41, %v4865_v42  ;;  %v4809_v49 = vmul.f32 %v8346_v55, %v4793_v52  ;;  %v4776_v3 = vmul.f32 %v8360_v10, %v4760_v45  ;;  %v6793_v25 = vpop.eup %6792  ;;  %v6647_v42 = vld [vmem:[%s8857_s5 + $0x88] sm:$0xff]  }
 0x33c   :  { %4470 = vmatprep.subr.bf16.mxu0 %v9032_v46  ;;  %4642 = vmatprep.subr.bf16.mxu1 %v6400_v16  ;;  %v4762_v56 = vadd.f32 -1.4531521, %v4746_v43  ;;  %v4864_v2 = vmul.f32 %v8307_v29, %v4848_v17  ;;  %v4850_v9 = vadd.f32 0.2548296, %v4834_v15  ;;  %v9033_v22 = vcombine.low %v8238_v4, %v8244_v21  ;;  %v6642_v16 = vld [vmem:[%s8857_s5] sm:$0xff]   ;;  %v6644_v4 = vld [vmem:[%s8857_s5 + $0x48] sm:$0xff]  }
 0x33d   :  { %v4823_v20 = vadd.f32 -0.28449672, %v4807_v24  ;;  %v4825_v12 = vadd.f32 -0.28449672, %v4809_v49  ;;  %v4792_v13 = vadd.f32 1.4214138, %v4776_v3  ;;  %6796 = vpow2.f32 %v4929_v6 }
 0x33e   :  { %4471 = vmatpush1.bf16.msra.mxu0 %v9033_v22  ;;  %v4778_v18 = vmul.f32 %v8377_v36, %v4762_v56  ;;  %v9034_v57 = vcombine.low %v8277_v37, %v8279_v14  ;;  %v6643_v21 = vld [vmem:[%s8857_s5 + $0x80] sm:$0xff]   ;;  %v4959_v29 = vsub.f32 1.0, %v8395_v61  ;;  %v4961_v59 = vsub.f32 1.0, %v8405_v1  ;;  %v6645_v37 = vld [vmem:[%s8857_s5 + $0xc8] sm:$0xff]   ;;  %v6795_v14 = vpop.eup %6794  ;;  %v6650_v49 = vld [vmem:[%s8857_s5 + $0x10] sm:$0xff]  }
 0x33f   :  { %6466 = vmatprep.subr.bf16.mxu0 %v6640_v38  ;;  %v4839_v6 = vmul.f32 %v8336_v5, %v4823_v20  ;;  %v4933_v50 = vmul.f32 1.442695, %v4906_v31  ;;  %v8432_v34 = vmul.f32 %v6789_v40, %v4864_v2  ;;  %v4841_v33 = vmul.f32 %v8346_v55, %v4825_v12  ;;  %v6646_v31 = vld [vmem:[%s8857_s5 + $0x8] sm:$0xff]   ;;  %v6649_v40 = vld [vmem:[%s8857_s5 + $0xd0] sm:$0xff]  }
 0x340   :  { %4643 = vmatpush1.bf16.msra.mxu1 %v9034_v57  ;;  %v4808_v51 = vmul.f32 %v8360_v10, %v4792_v13  ;;  %v4794_v27 = vadd.f32 1.4214138, %v4778_v18  ;;  %v4866_v38 = vmul.f32 %v8314_v11, %v4850_v9  ;;  %v8446_v52 = vmul.f32 0.5, %v8042_v44  ;;  %v6654_v57 = vld [vmem:[%s8857_s5 + $0x18] sm:$0xff]  }
 0x341   :  { %6488 = vmatprep.subr.bf16.mxu1 %v6641_v0  ;;  %4473 = vmatmul.mubr.bf16.vlgmr.msra.gmra.mrb[12].mxu0 %v7973_v60  ;;  %v4855_v41 = vadd.f32 0.2548296, %v4839_v6  ;;  %v4857_v45 = vadd.f32 0.2548296, %v4841_v33  ;;  %v4991_v11 = vsub.f32 0.0, %v4959_v29  ;;  %v4993_v48 = vsub.f32 0.0, %v4961_v59 }
 0x342   :  { %6467 = vmatpush3.bf16.msra.mxu0 %v6642_v16  ;;  %v4824_v43 = vadd.f32 -0.28449672, %v4808_v51  ;;  %6798 = vpow2.f32 %v4933_v50  ;;  %v4960_v44 = vsub.f32 1.0, %v8432_v34  ;;  %v4810_v15 = vmul.f32 %v8377_v36, %v4794_v27 }
 0x343   :  { %4645 = vmatmul.mubr.bf16.vlgmr.msra.gmra.mrb[12].mxu1 %v7973_v60  ;;  %6468 = vmatprep.subr.bf16.mxu0 %v6644_v4  ;;  %v6648_v60 = vld [vmem:[%s8857_s5 + $0x50] sm:$0xff]   ;;  %v4871_v46 = vmul.f32 %v8336_v5, %v4855_v41  ;;  %v4873_v61 = vmul.f32 %v8346_v55, %v4857_v45  ;;  %v8460_v24 = vmul.f32 0.5, %v8045_v30  ;;  %v8463_v0 = vmul.f32 0.5, %v8058_v19  ;;  %v6652_v19 = vld [vmem:[%s8857_s5 + $0x58] sm:$0xff]  }
 0x344   :  { %6489 = vmatpush3.bf16.msra.mxu1 %v6643_v21  ;;  %v4840_v17 = vmul.f32 %v8360_v10, %v4824_v43  ;;  %v8465_v5 = vmul.f32 %v6791_v7, %v4866_v38  ;;  %v6651_v55 = vld [vmem:[%s8857_s5 + $0x90] sm:$0xff]   ;;  %v4826_v56 = vadd.f32 -0.28449672, %v4810_v15  ;;  %v5007_v7 = vsel %vm4975_vm1, %v4959_v29, %v4991_v11 }
 0x345   :  { %6490 = vmatprep.subr.bf16.mxu1 %v6645_v37  ;;  %v4951_v1 = vmul.f32 %v6793_v25, %v4871_v46  ;;  %v4953_v3 = vmul.f32 %v6795_v14, %v4873_v61  ;;  %v5009_v20 = vsel %vm4977_vm2, %v4961_v59, %v4993_v48  ;;  %v4992_v22 = vsub.f32 0.0, %v4960_v44 }
 0x346   :  { %6469 = vmatpush3.bf16.msra.mxu0 %v6646_v31  ;;  %v4856_v30 = vadd.f32 0.2548296, %v4840_v17  ;;  %v4962_v12 = vsub.f32 1.0, %v8465_v5  ;;  %v5031_v18 = vmul.f32 0.5, %v8171_v26  ;;  %v4842_v54 = vmul.f32 %v8377_v36, %v4826_v56  ;;  %v6656_v26 = vld [vmem:[%s8857_s5 + $0x60] sm:$0xff]   ;;  %v6663_v5 = vld [vmem:[%s8857_s5 + $0xa8] sm:$0xff]  }
 0x347   :  { %6470 = vmatprep.subr.bf16.mxu0 %v6648_v60  ;;  %v4967_v2 = vsub.f32 1.0, %v4951_v1  ;;  %v6797_v9 = vpop.eup %6796  ;;  %v4969_v16 = vsub.f32 1.0, %v4953_v3  ;;  %v5039_v21 = vadd.f32 1.0, %v5007_v7  ;;  %v5041_v59 = vadd.f32 1.0, %v5009_v20 }
 0x348   :  { %6491 = vmatpush3.bf16.msra.mxu1 %v6647_v42  ;;  %v4872_v25 = vmul.f32 %v8360_v10, %v4856_v30  ;;  %v6655_v10 = vld [vmem:[%s8857_s5 + $0x98] sm:$0xff]   ;;  %v4858_v50 = vadd.f32 0.2548296, %v4842_v54  ;;  %v5008_v37 = vsel %vm4976_vm3, %v4960_v44, %v4992_v22  ;;  %v4994_v27 = vsub.f32 0.0, %v4962_v12  ;;  %v6676_v54 = vld [vmem:[%s8857_s5 + $0x148] sm:$0xff]  }
 0x349   :  { %6492 = vmatprep.subr.bf16.mxu1 %v6649_v40  ;;  %v4999_v13 = vsub.f32 0.0, %v4967_v2  ;;  %v5001_v4 = vsub.f32 0.0, %v4969_v16  ;;  %v5033_v38 = vmul.f32 0.5, %v8184_v32  ;;  %v5055_v42 = vmul.f32 %v5039_v21, %v8446_v52  ;;  %v6659_v32 = vld [vmem:[%s8857_s5 + $0xa0] sm:$0xff]   ;;  %v6678_v21 = vld [vmem:[%s8857_s5 + $0x108] sm:$0xff]  }
 0x34a   :  { %6471 = vmatpush3.bf16.msra.mxu0 %v6650_v49  ;;  %v4952_v29 = vmul.f32 %v6797_v9, %v4872_v25  ;;  %v4874_v31 = vmul.f32 %v8377_v36, %v4858_v50  ;;  %v6660_v36 = vld [vmem:[%s8857_s5 + $0x68] sm:$0xff]   ;;  %v5057_v43 = vmul.f32 %v5041_v59, %v8460_v24  ;;  %v5040_v60 = vadd.f32 1.0, %v5008_v37  ;;  %v6669_v9 = vld [vmem:[%s8857_s5 + $0xf8] sm:$0xff]   ;;  %v6672_v25 = vld [vmem:[%s8857_s5 + $0x140] sm:$0xff]  }
 0x34b   :  { %6472 = vmatprep.subr.bf16.mxu0 %v6652_v19  ;;  %v5015_v6 = vsel %vm4983_vm4, %v4967_v2, %v4999_v13  ;;  %v5017_v34 = vsel %vm4985_vm5, %v4969_v16, %v5001_v4  ;;  %v5032_v40 = vmul.f32 0.5, %v8194_v8  ;;  %v5010_v44 = vsel %vm4978_vm7, %v4962_v12, %v4994_v27  ;;  %v6662_v24 = vld [vmem:[%s8857_s5 + $0x28] sm:$0xff]   ;;  %v6666_v19 = vld [vmem:[%s8857_s5 + $0x30] sm:$0xff]   ;;  %v6671_v16 = vld [vmem:[%s8857_s5 + $0xb8] sm:$0xff]  }
 0x34c   :  { %6493 = vmatpush3.bf16.msra.mxu1 %v6651_v55  ;;  %v5047_v14 = vadd.f32 1.0, %v5015_v6  ;;  %v4968_v33 = vsub.f32 1.0, %v4952_v29  ;;  %v6799_v51 = vpop.eup %6798  ;;  %v5049_v41 = vadd.f32 1.0, %v5017_v34  ;;  %v5056_v8 = vmul.f32 %v5040_v60, %v8463_v0  ;;  %v6665_v55 = vld [vmem:[%s8857_s5 + $0xf0] sm:$0xff]   ;;  %v6673_v12 = vld [vmem:[%s8857_s5 + $0x1c0] sm:$0xff]   ;;  %v6679_v4 = vld [vmem:[%s8857_s5 + $0x188] sm:$0xff]  }
 0x34d   :  { %6494 = vmatprep.subr.bf16.mxu1 %v6653_v35  ;;  %v4954_v48 = vmul.f32 %v6799_v51, %v4874_v31  ;;  %v5042_v3 = vadd.f32 1.0, %v5010_v44  ;;  %vm4986_vm8 = vcmp.ge.f32.partialorder %v8267_v47, 0.0  ;;  %v5026_v7 = vmul.f32 0.5, %v8061_v23  ;;  %v6667_v35 = vld [vmem:[%s8857_s5 + $0xb0] sm:$0xff]   ;;  %v6668_v47 = vld [vmem:[%s8857_s5 + $0x78] sm:$0xff]   ;;  %v6674_v13 = vld [vmem:[%s8857_s5 + $0x100] sm:$0xff]  }
 0x34e   :  { %6473 = vmatpush3.bf16.msra.mxu0 %v6654_v57  ;;  %v5063_v45 = vmul.f32 %v5047_v14, %v5031_v18  ;;  %v5000_v28 = vsub.f32 0.0, %v4968_v33  ;;  %v5065_v11 = vmul.f32 %v5049_v41, %v5033_v38  ;;  %v5034_v0 = vmul.f32 0.5, %v8234_v53  ;;  %v6670_v53 = vld [vmem:[%s8857_s5 + $0x38] sm:$0xff]   ;;  %v6675_v18 = vld [vmem:[%s8857_s5 + $0x180] sm:$0xff]   ;;  %v6677_v57 = vld [vmem:[%s8857_s5 + $0x1c8] sm:$0xff]  }
 0x34f   :  { %6474 = vmatprep.subr.bf16.mxu0 %v6656_v26  ;;  %v4970_v15 = vsub.f32 1.0, %v4954_v48  ;;  %v5058_v23 = vmul.f32 %v5042_v3, %v5026_v7  ;;  %v6680_v29 = vld [vmem:[%s8857_s5 + $0x150] sm:$0xff]   ;;  %v6684_v6 = vld [vmem:[%s8857_s5 + $0x158] sm:$0xff]   ;;  %v6688_v14 = vld [vmem:[%s8857_s5 + $0x160] sm:$0xff]   ;;  %vm5773_vm1 = vcmask 7168  }
 0x350   :  { %6495 = vmatpush3.bf16.msra.mxu1 %v6655_v10  ;;  %v5071_v52 = vpack.c.bf16 %v5063_v45, %v5055_v42  ;;  %v5016_v46 = vsel %vm4984_vm6, %v4968_v33, %v5000_v28  ;;  %v5073_v61 = vpack.c.bf16 %v5065_v11, %v5057_v43  ;;  %v6681_v10 = vld [vmem:[%s8857_s5 + $0x1d0] sm:$0xff]   ;;  %v6685_v50 = vld [vmem:[%s8857_s5 + $0x1d8] sm:$0xff]   ;;  %v6689_v34 = vld [vmem:[%s8857_s5 + $0x1e0] sm:$0xff]  }
 0x351   :  { %6496 = vmatprep.subr.bf16.mxu1 %v6657_v63  ;;  %v5048_v17 = vadd.f32 1.0, %v5016_v46  ;;  %v5002_v49 = vsub.f32 0.0, %v4970_v15  ;;  %v6682_v26 = vld [vmem:[%s8857_s5 + $0x110] sm:$0xff]   ;;  %v6686_v63 = vld [vmem:[%s8857_s5 + $0x118] sm:$0xff]   ;;  %v6690_v33 = vld [vmem:[%s8857_s5 + $0x120] sm:$0xff]  }
 0x352   :  { %6475 = vmatpush3.bf16.msra.mxu0 %v6658_v58  ;;  %v6683_v59 = vld [vmem:[%s8857_s5 + $0x190] sm:$0xff]   ;;  %v6687_v37 = vld [vmem:[%s8857_s5 + $0x198] sm:$0xff]   ;;  %v6691_v51 = vld [vmem:[%s8857_s5 + $0x1a0] sm:$0xff]  }
 0x353   :  { %6476 = vmatprep.subr.bf16.mxu0 %v6660_v36  ;;  %v5064_v1 = vmul.f32 %v5048_v17, %v5032_v40  ;;  %v5018_v30 = vsel %vm4986_vm8, %v4970_v15, %v5002_v49  ;;  %v6692_v27 = vld [vmem:[%s8857_s5 + $0x168] sm:$0xff]   ;;  %v6696_v58 = vld [vmem:[%s8857_s5 + $0x170] sm:$0xff]   ;;  %v6701_v36 = vld [vmem:[%s8857_s5 + $0x1f8] sm:$0xff]  }
 0x354   :  { %6497 = vmatpush3.bf16.msra.mxu1 %v6659_v32  ;;  %v5050_v2 = vadd.f32 1.0, %v5018_v30  ;;  %v6693_v38 = vld [vmem:[%s8857_s5 + $0x1e8] sm:$0xff]   ;;  %v6697_v42 = vld [vmem:[%s8857_s5 + $0x1f0] sm:$0xff]   ;;  %v6700_v32 = vld [vmem:[%s8857_s5 + $0x178] sm:$0xff]  }
 0x355   :  { %6498 = vmatprep.subr.bf16.mxu1 %v6661_v62  ;;  %v5072_v56 = vpack.c.bf16 %v5064_v1, %v5056_v8  ;;  %v6694_v41 = vld [vmem:[%s8857_s5 + $0x128] sm:$0xff]   ;;  %v6698_v45 = vld [vmem:[%s8857_s5 + $0x130] sm:$0xff]   ;;  %v6702_v43 = vld [vmem:[%s8857_s5 + $0x138] sm:$0xff]  }
 0x356   :  { %6477 = vmatpush3.bf16.msra.mxu0 %v6662_v24  ;;  %v5066_v20 = vmul.f32 %v5050_v2, %v5034_v0  ;;  %v6695_v31 = vld [vmem:[%s8857_s5 + $0x1a8] sm:$0xff]   ;;  %v6699_v28 = vld [vmem:[%s8857_s5 + $0x1b0] sm:$0xff]   ;;  %v6703_v60 = vld [vmem:[%s8857_s5 + $0x1b8] sm:$0xff]  }
 0x357   :  { %6478 = vmatprep.subr.bf16.mxu0 %v6664_v39  ;;  %5630 = vmatprep.mubr.bf16.mxu0 %v5072_v56  ;;  %v6842_v11 = vld [vmem:[#allocation11] sm:$0xff]  ;;  %v9035_v48 = vld [vmem:[#allocation20_spill] sm:$0xff] }
 0x358   :  { %6499 = vmatpush3.bf16.msra.mxu1 %v6663_v5  ;;  %v5074_v22 = vpack.c.bf16 %v5066_v20, %v5058_v23  ;;  %v9036_v62 = vsub.s32 4, %v9035_v48  ;;  %v9037_v46 = vsub.s32 6, %v9035_v48  ;;  %v9038_v44 = vsub.s32 5, %v9035_v48 }
 0x359   :  { %6500 = vmatprep.subr.bf16.mxu1 %v6665_v55  ;;  %v9039_v17 = vsub.s32 7, %v9035_v48 }
 0x35a   :  { %6479 = vmatpush3.bf16.msra.mxu0 %v6666_v19  ;;  %5671 = vmatprep.mubr.bf16.mxu1 %v5074_v22  ;;  %v1394_v40 = vrot.slane %v6842_v11, %v9037_v46 }
 0x35b   :  { %6480 = vmatprep.subr.bf16.mxu0 %v6668_v47  ;;  %v1398_v15 = vrot.slane %v6842_v11, %v9039_v17 }
 0x35c   :  { %6501 = vmatpush3.bf16.msra.mxu1 %v6667_v35 }
 0x35d   :  { %6502 = vmatprep.subr.bf16.mxu1 %v6669_v9 }
 0x35e   :  { %6481 = vmatpush3.bf16.msra.mxu0 %v6670_v53 }
 0x35f   :  { %6510 = vmatprep.subr.bf16.mxu0 %v6672_v25 }
 0x360   :  { %6503 = vmatpush3.bf16.msra.mxu1 %v6671_v16 }
 0x361   :  { %5631 = vmatmul.mubr.bf16.vlgmr.msra.gmra.mrb[16].mxu0 %v5071_v52  ;;  %6532 = vmatprep.subr.bf16.mxu1 %v6673_v12  ;;  %v1386_v52 = vrot.slane %v6842_v11, %v9036_v62 }
 0x362   :  { %6511 = vmatpush3.bf16.msra.mxu0 %v6674_v13 }
 0x363   :  { %5672 = vmatmul.mubr.bf16.vlgmr.msra.gmra.mrb[16].mxu1 %v5073_v61  ;;  %6512 = vmatprep.subr.bf16.mxu0 %v6676_v54  ;;  %v1390_v61 = vrot.slane %v6842_v11, %v9038_v44 }
 0x364   :  { %6533 = vmatpush3.bf16.msra.mxu1 %v6675_v18 }
 0x365   :  { %6534 = vmatprep.subr.bf16.mxu1 %v6677_v57 }
 0x366   :  { %6513 = vmatpush3.bf16.msra.mxu0 %v6678_v21 }
 0x367   :  { %6514 = vmatprep.subr.bf16.mxu0 %v6680_v29 }
 0x368   :  { %6535 = vmatpush3.bf16.msra.mxu1 %v6679_v4 }
 0x369   :  { %6536 = vmatprep.subr.bf16.mxu1 %v6681_v10 }
 0x36a   :  { %6515 = vmatpush3.bf16.msra.mxu0 %v6682_v26 }
 0x36b   :  { %6516 = vmatprep.subr.bf16.mxu0 %v6684_v6 }
 0x36c   :  { %6537 = vmatpush3.bf16.msra.mxu1 %v6683_v59 }
 0x36d   :  { %6538 = vmatprep.subr.bf16.mxu1 %v6685_v50 }
 0x36e   :  { %6517 = vmatpush3.bf16.msra.mxu0 %v6686_v63 }
 0x36f   :  { %6518 = vmatprep.subr.bf16.mxu0 %v6688_v14 }
 0x370   :  { %6539 = vmatpush3.bf16.msra.mxu1 %v6687_v37 }
 0x371   :  { %6540 = vmatprep.subr.bf16.mxu1 %v6689_v34 }
 0x372   :  { %6519 = vmatpush3.bf16.msra.mxu0 %v6690_v33 }
 0x373   :  { %6520 = vmatprep.subr.bf16.mxu0 %v6692_v27 }
 0x374   :  { %6541 = vmatpush3.bf16.msra.mxu1 %v6691_v51 }
 0x375   :  { %6542 = vmatprep.subr.bf16.mxu1 %v6693_v38 }
 0x376   :  { %6521 = vmatpush3.bf16.msra.mxu0 %v6694_v41 }
 0x377   :  { %6522 = vmatprep.subr.bf16.mxu0 %v6696_v58 }
 0x378   :  { %6543 = vmatpush3.bf16.msra.mxu1 %v6695_v31 }
 0x379   :  { %6544 = vmatprep.subr.bf16.mxu1 %v6697_v42 }
 0x37a   :  { %6523 = vmatpush3.bf16.msra.mxu0 %v6698_v45 }
 0x37b   :  { %6524 = vmatprep.subr.bf16.mxu0 %v6700_v32 }
 0x37c   :  { %6545 = vmatpush3.bf16.msra.mxu1 %v6699_v28 }
 0x37d   :  { %6546 = vmatprep.subr.bf16.mxu1 %v6701_v36 }
 0x37e   :  { %6525 = vmatpush3.bf16.msra.mxu0 %v6702_v43 }
 0x380   :  { %6547 = vmatpush3.bf16.msra.mxu1 %v6703_v60 }
 0x414   :  { %v4474_v24 = vpop.f32.mrb[12].mxu0 }
 0x415   :  { %v8659_v5 = vadd.f32 %v4474_v24, %v1386_v52  ;;  %v4476_v8 = vpop.f32.mrb[13].mxu0 }
 0x416   :  { %v4646_v39 = vpop.f32.mrb[12].mxu1  ;;  %v8663_v49 = vadd.f32 %v4476_v8, %v1390_v61  ;;  %v4478_v3 = vpop.f32.mrb[14].mxu0 }
 0x417   :  { %v8661_v1 = vadd.f32 %v4646_v39, %v1394_v40  ;;  %v4648_v55 = vpop.f32.mrb[13].mxu1  ;;  %v8666_v30 = vmul.f32 0.70710677, %v8659_v5  ;;  %v4480_v7 = vpop.f32.mrb[15].mxu0  ;;  %v8683_v25 = vadd.f32 %v4478_v3, %v1386_v52  ;;  %v8717_v8 = vmul.f32 0.5, %v8659_v5 }
 0x418   :  { %v8668_v56 = vadd.f32 %v4648_v55, %v1398_v15  ;;  %v4650_v19 = vpop.f32.mrb[14].mxu1  ;;  %v8674_v2 = vmul.f32 0.70710677, %v8663_v49  ;;  %v8691_v59 = vadd.f32 %v4480_v7, %v1390_v61 }
 0x419   :  { %v8671_v0 = vmul.f32 0.70710677, %v8661_v1  ;;  %v4675_v35 = vand.u32 2147483647, %v8666_v30  ;;  %v4652_v18 = vpop.f32.mrb[15].mxu1  ;;  %v8688_v10 = vadd.f32 %v4650_v19, %v1394_v40  ;;  %vm4979_vm9 = vcmp.ge.f32.partialorder %v8666_v30, 0.0 }
 0x41a   :  { %v8678_v47 = vmul.f32 0.70710677, %v8668_v56  ;;  %v4676_v23 = vand.u32 2147483647, %v8674_v2  ;;  %v8686_v21 = vmul.f32 0.70710677, %v8683_v25  ;;  %v8696_v50 = vadd.f32 %v4652_v18, %v1398_v15 }
 0x41b   :  { %v4677_v9 = vand.u32 2147483647, %v8671_v0  ;;  %v4691_v20 = vmul.f32 0.3275911, %v4675_v35  ;;  %v4883_v4 = vsub.f32 0.0, %v4675_v35  ;;  %vm4981_vm10 = vcmp.ge.f32.partialorder %v8671_v0, 0.0 }
 0x41c   :  { %v4678_v53 = vand.u32 2147483647, %v8678_v47  ;;  %v4692_v16 = vmul.f32 0.3275911, %v4676_v23  ;;  %v4683_v26 = vand.u32 2147483647, %v8686_v21 }
 0x41d   :  { %v4693_v22 = vmul.f32 0.3275911, %v4677_v9  ;;  %v4707_v12 = vadd.f32 1.0, %v4691_v20  ;;  %v8694_v6 = vmul.f32 0.70710677, %v8688_v10  ;;  %v4885_v63 = vsub.f32 0.0, %v4677_v9 }
 0x41e   :  { %v4694_v13 = vmul.f32 0.3275911, %v4678_v53  ;;  %v4708_v57 = vadd.f32 1.0, %v4692_v16  ;;  %v4884_v37 = vsub.f32 0.0, %v4676_v23  ;;  %v4699_v14 = vmul.f32 0.3275911, %v4683_v26 }
 0x41f   :  { %v4709_v54 = vadd.f32 1.0, %v4693_v22  ;;  %6800 = vrcp.f32 %v4707_v12  ;;  %v8699_v34 = vmul.f32 0.70710677, %v8691_v59  ;;  %v4899_v33 = vmul.f32 %v4883_v4, %v4675_v35 }
 0x420   :  { %v4710_v29 = vadd.f32 1.0, %v4694_v13  ;;  %v4685_v51 = vand.u32 2147483647, %v8694_v6  ;;  %v4886_v27 = vsub.f32 0.0, %v4678_v53  ;;  %v4715_v38 = vadd.f32 1.0, %v4699_v14 }
 0x421   :  { %6802 = vrcp.f32 %v4709_v54  ;;  %v4891_v41 = vsub.f32 0.0, %v4683_v26  ;;  %v4684_v31 = vand.u32 2147483647, %v8699_v34  ;;  %v8704_v45 = vmul.f32 0.70710677, %v8696_v50 }
 0x422   :  { %6804 = vrcp.f32 %v4708_v57  ;;  %v4701_v58 = vmul.f32 0.3275911, %v4685_v51  ;;  %v4893_v42 = vsub.f32 0.0, %v4685_v51  ;;  %v4901_v28 = vmul.f32 %v4885_v63, %v4677_v9 }
 0x423   :  { %6806 = vrcp.f32 %v4710_v29  ;;  %v4900_v32 = vmul.f32 %v4884_v37, %v4676_v23  ;;  %v4700_v36 = vmul.f32 0.3275911, %v4684_v31  ;;  %v4919_v60 = vmul.f32 1.442695, %v4899_v33 }
 0x424   :  { %6808 = vrcp.f32 %v4715_v38  ;;  %v4717_v11 = vadd.f32 1.0, %v4701_v58  ;;  %v4892_v48 = vsub.f32 0.0, %v4684_v31  ;;  %v8709_v62 = vand.u32 2147483647, %v8704_v45 }
 0x425   :  { %v4902_v40 = vmul.f32 %v4886_v27, %v4678_v53  ;;  %v4907_v44 = vmul.f32 %v4891_v41, %v4683_v26  ;;  %v4716_v61 = vadd.f32 1.0, %v4700_v36  ;;  %v4909_v15 = vmul.f32 %v4893_v42, %v4685_v51 }
 0x426   :  { %6810 = vrcp.f32 %v4717_v11  ;;  %v4702_v24 = vmul.f32 0.3275911, %v8709_v62  ;;  %v4923_v55 = vmul.f32 1.442695, %v4901_v28  ;;  %v4921_v7 = vmul.f32 1.442695, %v4900_v32 }
 0x427   :  { %6812 = vrcp.f32 %v4716_v61  ;;  %v4908_v35 = vmul.f32 %v4892_v48, %v4684_v31  ;;  %v4925_v53 = vmul.f32 1.442695, %v4902_v40  ;;  %v4935_v5 = vmul.f32 1.442695, %v4907_v44 }
 0x428   :  { %v4718_v9 = vadd.f32 1.0, %v4702_v24  ;;  %6814 = vpow2.f32 %v4919_v60  ;;  %v4939_v12 = vmul.f32 1.442695, %v4909_v15  ;;  %v8728_v4 = vmul.f32 0.5, %v8661_v1 }
 0x429   :  { %v8706_v43 = vpop.eup %6800  ;;  %v4937_v29 = vmul.f32 1.442695, %v4908_v35  ;;  %v4894_v27 = vsub.f32 0.0, %v8709_v62  ;;  %vm4980_vm11 = vcmp.ge.f32.partialorder %v8674_v2, 0.0  ;;  %vm4987_vm12 = vcmp.ge.f32.partialorder %v8686_v21, 0.0 }
 0x42a   :  { %v4739_v46 = vmul.f32 1.0614054, %v8706_v43  ;;  %6816 = vrcp.f32 %v4718_v9  ;;  %vm4989_vm13 = vcmp.ge.f32.partialorder %v8694_v6, 0.0  ;;  %vm4988_vm14 = vcmp.ge.f32.partialorder %v8699_v34, 0.0 }
 0x42b   :  { %v8711_v52 = vpop.eup %6802  ;;  %6818 = vpow2.f32 %v4923_v55  ;;  %v5037_v21 = vmul.f32 0.5, %v8688_v10  ;;  %vm4982_vm15 = vcmp.ge.f32.partialorder %v8678_v47, 0.0  ;;  %vm4990_vm0 = vcmp.ge.f32.partialorder %v8704_v45, 0.0 }
 0x42c   :  { %v4741_v17 = vmul.f32 1.0614054, %v8711_v52  ;;  %v4755_v39 = vadd.f32 -1.4531521, %v4739_v46  ;;  %v8719_v3 = vpop.eup %6804  ;;  %6820 = vpow2.f32 %v4921_v7 }
 0x42d   :  { %v4740_v20 = vmul.f32 1.0614054, %v8719_v3  ;;  %v8723_v22 = vpop.eup %6806  ;;  %6822 = vpow2.f32 %v4925_v53 }
 0x42e   :  { %v4757_v19 = vadd.f32 -1.4531521, %v4741_v17  ;;  %v4771_v23 = vmul.f32 %v8706_v43, %v4755_v39  ;;  %v4742_v54 = vmul.f32 1.0614054, %v8723_v22  ;;  %v8730_v26 = vpop.eup %6808  ;;  %6824 = vpow2.f32 %v4935_v5 }
 0x42f   :  { %v4756_v18 = vadd.f32 -1.4531521, %v4740_v20  ;;  %v4747_v51 = vmul.f32 1.0614054, %v8730_v26  ;;  %6826 = vpow2.f32 %v4939_v12 }
 0x430   :  { %v4773_v16 = vmul.f32 %v8711_v52, %v4757_v19  ;;  %v4787_v13 = vadd.f32 1.4214138, %v4771_v23  ;;  %v4758_v14 = vadd.f32 -1.4531521, %v4742_v54  ;;  %v8738_v58 = vpop.eup %6810  ;;  %6828 = vpow2.f32 %v4937_v29 }
 0x431   :  { %v4772_v37 = vmul.f32 %v8719_v3, %v4756_v18  ;;  %v4763_v28 = vadd.f32 -1.4531521, %v4747_v51  ;;  %v8742_v60 = vpop.eup %6812  ;;  %v4749_v40 = vmul.f32 1.0614054, %v8738_v58 }
 0x432   :  { %v4789_v57 = vadd.f32 1.4214138, %v4773_v16  ;;  %v4803_v63 = vmul.f32 %v8706_v43, %v4787_v13  ;;  %v4774_v41 = vmul.f32 %v8723_v22, %v4758_v14  ;;  %v4748_v24 = vmul.f32 1.0614054, %v8742_v60  ;;  %v6815_v7 = vpop.eup %6814 }
 0x433   :  { %v4788_v1 = vadd.f32 1.4214138, %v4772_v37  ;;  %v4779_v15 = vmul.f32 %v8730_v26, %v4763_v28  ;;  %v4765_v20 = vadd.f32 -1.4531521, %v4749_v40  ;;  %v4910_v13 = vmul.f32 %v4894_v27, %v8709_v62 }
 0x434   :  { %v4805_v33 = vmul.f32 %v8711_v52, %v4789_v57  ;;  %v4819_v38 = vadd.f32 -0.28449672, %v4803_v63  ;;  %v6482_v31 = vpop.f32.mrb[16].mxu0  ;;  %v4790_v46 = vadd.f32 1.4214138, %v4774_v41  ;;  %v8759_v53 = vpop.eup %6816 }
 0x435   :  { %v6483_v36 = vpop.f32.mrb[17].mxu0  ;;  %v4804_v48 = vmul.f32 %v8719_v3, %v4788_v1  ;;  %v4795_v5 = vadd.f32 1.4214138, %v4779_v15  ;;  %v4764_v12 = vadd.f32 -1.4531521, %v4748_v24  ;;  %v6819_v18 = vpop.eup %6818  ;;  %v4781_v63 = vmul.f32 %v8738_v58, %v4765_v20 }
 0x436   :  { %v4821_v42 = vadd.f32 -0.28449672, %v4805_v33  ;;  %v8740_v32 = vpop.f32.mrb[16].mxu1  ;;  %v4835_v11 = vmul.f32 %v8706_v43, %v4819_v38  ;;  %v8747_v61 = vpop.f32.mrb[18].mxu0  ;;  %v8752_v39 = vadd.f32 %v6483_v36, %v6482_v31  ;;  %v4806_v23 = vmul.f32 %v8723_v22, %v4790_v46 }
 0x437   :  { %v6505_v44 = vpop.f32.mrb[17].mxu1  ;;  %v8756_v19 = vpop.f32.mrb[19].mxu0  ;;  %v4820_v9 = vadd.f32 -0.28449672, %v4804_v48  ;;  %v4811_v51 = vmul.f32 %v8730_v26, %v4795_v5  ;;  %v4780_v38 = vmul.f32 %v8742_v60, %v4764_v12  ;;  %v4750_v1 = vmul.f32 1.0614054, %v8759_v53 }
 0x438   :  { %v4837_v17 = vmul.f32 %v8711_v52, %v4821_v42  ;;  %v8754_v55 = vpop.f32.mrb[18].mxu1  ;;  %v4851_v35 = vadd.f32 0.2548296, %v4835_v11  ;;  %v4822_v29 = vadd.f32 -0.28449672, %v4806_v23  ;;  %v6821_v14 = vpop.eup %6820 }
 0x439   :  { %v4836_v57 = vmul.f32 %v8719_v3, %v4820_v9  ;;  %v8765_v37 = vpop.f32.mrb[19].mxu1  ;;  %v6823_v62 = vpop.eup %6822  ;;  %v4797_v31 = vadd.f32 1.4214138, %v4781_v63  ;;  %v4827_v36 = vadd.f32 -0.28449672, %v4811_v51 }
 0x43a   :  { %v4853_v16 = vadd.f32 0.2548296, %v4837_v17  ;;  %v4867_v54 = vmul.f32 %v8706_v43, %v4851_v35  ;;  %v4838_v43 = vmul.f32 %v8723_v22, %v4822_v29  ;;  %v6825_v42 = vpop.eup %6824  ;;  %v4796_v11 = vadd.f32 1.4214138, %v4780_v38 }
 0x43b   :  { %v4852_v41 = vadd.f32 0.2548296, %v4836_v57  ;;  %v4766_v48 = vadd.f32 -1.4531521, %v4750_v1  ;;  %v6827_v46 = vpop.eup %6826  ;;  %v4813_v15 = vmul.f32 %v8738_v58, %v4797_v31  ;;  %v4843_v35 = vmul.f32 %v8730_v26, %v4827_v36 }
 0x43c   :  { %v4869_v33 = vmul.f32 %v8711_v52, %v4853_v16  ;;  %v4947_v27 = vmul.f32 %v6815_v7, %v4867_v54  ;;  %v4854_v17 = vadd.f32 0.2548296, %v4838_v43  ;;  %v6829_v24 = vpop.eup %6828  ;;  %v8776_v7 = vmul.f32 0.5, %v8663_v49 }
 0x43d   :  { %v4868_v52 = vmul.f32 %v8719_v3, %v4852_v41  ;;  %v4812_v9 = vmul.f32 %v8742_v60, %v4796_v11  ;;  %v4829_v16 = vadd.f32 -0.28449672, %v4813_v15  ;;  %v4859_v5 = vadd.f32 0.2548296, %v4843_v35 }
 0x43e   :  { %v4949_v28 = vmul.f32 %v6819_v18, %v4869_v33  ;;  %v4963_v40 = vsub.f32 1.0, %v4947_v27  ;;  %v4782_v12 = vmul.f32 %v8759_v53, %v4766_v48  ;;  %v6401_v18 = vld [vmem:[#allocation2] ss:$0 sm:$0xff]  ;;  %v6506_v54 = vadd.f32 %v6505_v44, %v8740_v32 }
 0x43f   :  { %v4948_v20 = vmul.f32 %v6821_v14, %v4868_v52  ;;  %v4828_v3 = vadd.f32 -0.28449672, %v4812_v9  ;;  %v4870_v49 = vmul.f32 %v8723_v22, %v4854_v17  ;;  %v4845_v29 = vmul.f32 %v8738_v58, %v4829_v16 }
 0x440   :  { %v4965_v23 = vsub.f32 1.0, %v4949_v28  ;;  %v4995_v57 = vsub.f32 0.0, %v4963_v40  ;;  %v4941_v63 = vmul.f32 1.442695, %v4910_v13  ;;  %v4875_v51 = vmul.f32 %v8730_v26, %v4859_v5 }
 0x441   :  { %v4964_v33 = vsub.f32 1.0, %v4948_v20  ;;  %v4844_v14 = vmul.f32 %v8742_v60, %v4828_v3  ;;  %v5035_v38 = vmul.f32 0.5, %v8683_v25  ;;  %v4861_v1 = vadd.f32 0.2548296, %v4845_v29 }
 0x442   :  { %v5633_v32 = vadd.f32 %v8752_v39, %v6401_v18  ;;  %v4997_v44 = vsub.f32 0.0, %v4965_v23  ;;  %v4955_v27 = vmul.f32 %v6825_v42, %v4875_v51  ;;  %v4798_v41 = vadd.f32 1.4214138, %v4782_v12 }
 0x443   :  { %v4860_v22 = vadd.f32 0.2548296, %v4844_v14  ;;  %v5011_v13 = vsel %vm4979_vm9, %v4963_v40, %v4995_v57  ;;  %v4950_v43 = vmul.f32 %v6823_v62, %v4870_v49  ;;  %v4877_v31 = vmul.f32 %v8738_v58, %v4861_v1 }
 0x444   :  { %6830 = vpow2.f32 %v4941_v63  ;;  %v4996_v26 = vsub.f32 0.0, %v4964_v33  ;;  %v4971_v28 = vsub.f32 1.0, %v4955_v27  ;;  %v4814_v25 = vmul.f32 %v8759_v53, %v4798_v41 }
 0x445   :  { %v4876_v36 = vmul.f32 %v8742_v60, %v4860_v22  ;;  %v4957_v11 = vmul.f32 %v6827_v46, %v4877_v31  ;;  %v8797_v39 = vadd.f32 %v6506_v54, %v5633_v32  ;;  %v6487_v42 = vadd.f32 %v8756_v19, %v8747_v61 }
 0x446   :  { %v5043_v30 = vadd.f32 1.0, %v5011_v13  ;;  %v5013_v62 = vsel %vm4981_vm10, %v4965_v23, %v4997_v44  ;;  %v5003_v58 = vsub.f32 0.0, %v4971_v28  ;;  %v4830_v52 = vadd.f32 -0.28449672, %v4814_v25 }
 0x447   :  { %v4956_v48 = vmul.f32 %v6829_v24, %v4876_v36  ;;  %v4973_v40 = vsub.f32 1.0, %v4957_v11  ;;  %v5636_v17 = vadd.f32 %v6487_v42, %v6401_v18  ;;  %v6509_v60 = vadd.f32 %v8765_v37, %v8754_v55 }
 0x448   :  { %v5012_v46 = vsel %vm4980_vm11, %v4964_v33, %v4996_v26  ;;  %v4966_v15 = vsub.f32 1.0, %v4950_v43  ;;  %v5019_v35 = vsel %vm4987_vm12, %v4971_v28, %v5003_v58  ;;  %v4846_v0 = vmul.f32 %v8759_v53, %v4830_v52 }
 0x449   :  { %v4972_v61 = vsub.f32 1.0, %v4956_v48  ;;  %v5051_v19 = vadd.f32 1.0, %v5019_v35  ;;  %v5005_v9 = vsub.f32 0.0, %v4973_v40  ;;  %v5677_v23 = vadd.f32 %v6509_v60, %v5636_v17 }
 0x44a   :  { %v5059_v24 = vmul.f32 %v5043_v30, %v8717_v8  ;;  %v5045_v20 = vadd.f32 1.0, %v5013_v62  ;;  %v5044_v55 = vadd.f32 1.0, %v5012_v46  ;;  %v4862_v5 = vadd.f32 0.2548296, %v4846_v0 }
 0x44b   :  { %v5004_v16 = vsub.f32 0.0, %v4972_v61  ;;  %v5067_v37 = vmul.f32 %v5051_v19, %v5035_v38  ;;  %v5021_v2 = vsel %vm4989_vm13, %v4973_v40, %v5005_v9  ;;  %v5036_v18 = vmul.f32 0.5, %v8691_v59 }
 0x44c   :  { %v5053_v3 = vadd.f32 1.0, %v5021_v2  ;;  %v4998_v57 = vsub.f32 0.0, %v4966_v15  ;;  %v4878_v29 = vmul.f32 %v8759_v53, %v4862_v5  ;;  %v5061_v34 = vmul.f32 %v5045_v20, %v8728_v4 }
 0x44d   :  { %v5020_v12 = vsel %vm4988_vm14, %v4972_v61, %v5004_v16  ;;  %v5075_v49 = vpack.c.bf16 %v5067_v37, %v5059_v24  ;;  %v5060_v33 = vmul.f32 %v5044_v55, %v8776_v7  ;;  %v5030_v4 = vmul.f32 0.5, %v8668_v56 }
 0x44e   :  { %v6831_v54 = vpop.eup %6830  ;;  %v5052_v8 = vadd.f32 1.0, %v5020_v12  ;;  %v5069_v63 = vmul.f32 %v5053_v3, %v5037_v21  ;;  %v5014_v14 = vsel %vm4982_vm15, %v4966_v15, %v4998_v57  ;;  %v5038_v44 = vmul.f32 0.5, %v8696_v50 }
 0x44f   :  { %v4958_v51 = vmul.f32 %v6831_v54, %v4878_v29  ;;  %v5046_v32 = vadd.f32 1.0, %v5014_v14 }
 0x450   :  { %v5068_v6 = vmul.f32 %v5052_v8, %v5036_v18  ;;  %v5077_v10 = vpack.c.bf16 %v5069_v63, %v5061_v34 }
 0x451   :  { %v4974_v38 = vsub.f32 1.0, %v4958_v51  ;;  %v5062_v27 = vmul.f32 %v5046_v32, %v5030_v4 }
 0x452   :  { %v5076_v1 = vpack.c.bf16 %v5068_v6, %v5060_v33 }
 0x453   :  { %v5006_v59 = vsub.f32 0.0, %v4974_v38 }
 0x454   :  { %5712 = vmatprep.mubr.bf16.mxu0 %v5076_v1 }
 0x455   :  { %5713 = vmatmul.mubr.bf16.vlgmr.msra.gmra.mrb[20].mxu0 %v5075_v49  ;;  %v5022_v53 = vsel %vm4990_vm0, %v4974_v38, %v5006_v59 }
 0x456   :  { %v5054_v7 = vadd.f32 1.0, %v5022_v53 }
 0x458   :  { %v5070_v22 = vmul.f32 %v5054_v7, %v5038_v44 }
 0x45a   :  { %v5078_v41 = vpack.c.bf16 %v5070_v22, %v5062_v27 }
 0x45c   :  { %5753 = vmatprep.mubr.bf16.mxu1 %v5078_v41 }
 0x45d   :  { %5754 = vmatmul.mubr.bf16.vlgmr.msra.gmra.mrb[20].mxu1 %v5077_v10 }
 0x528   :  { %v6526_v47 = vpop.f32.mrb[20].mxu0 }
 0x529   :  { %v6527_v13 = vpop.f32.mrb[21].mxu0 }
 0x52a   :  { %v6528_v43 = vadd.f32 %v6527_v13, %v6526_v47  ;;  %v6529_v31 = vpop.f32.mrb[22].mxu0 }
 0x52b   :  { %v6530_v26 = vpop.f32.mrb[23].mxu0 }
 0x52c   :  { %v5715_v28 = vadd.f32 %v6528_v43, %v8797_v39  ;;  %v6531_v45 = vadd.f32 %v6530_v26, %v6529_v31 }
 0x52e   :  { %v5718_v36 = vadd.f32 %v6531_v45, %v5677_v23 }
 0x530   :  { %v6548_v25 = vpop.f32.mrb[20].mxu1 }
 0x531   :  { %v6549_v11 = vpop.f32.mrb[21].mxu1 }
 0x532   :  { %v6550_v56 = vadd.f32 %v6549_v11, %v6548_v25  ;;  %v6551_v42 = vpop.f32.mrb[22].mxu1 }
 0x533   :  { %v6552_v50 = vpop.f32.mrb[23].mxu1 }
 0x534   :  { %v6553_v30 = vadd.f32 %v6552_v50, %v6551_v42  ;;  %v5756_v62 = vadd.f32 %v6550_v56, %v5715_v28 }
 0x536   :  { %v5759_v58 = vadd.f32 %v6553_v30, %v5718_v36  ;;  %v5810_v48 = vsel %vm5773_vm1, %v5756_v62, 0.0  ;;  %v5763_v40 = vsub.f32 0.0, %v5756_v62 }
 0x537   :  { %5811 = vadd.xlane.f32.xlu1 %v5810_v48 }
 0x538   :  { %v5785_v52 = vand.u32 2147483647, %v5759_v58  ;;  %v5820_v17 = vmul.f32 1.442695, %v5759_v58  ;;  %v5765_v60 = vand.u32 2147483647, %v5763_v40 }
 0x539   :  { %v5764_v55 = vmax.f32 %v5763_v40, 0.0  ;;  %v5784_v21 = vmax.f32 %v5759_v58, 0.0 }
 0x53a   :  { %v5786_v46 = vsub.f32 0.0, %v5785_v52  ;;  %6832 = vpow2.f32 %v5820_v17  ;;  %v5766_v39 = vsub.f32 0.0, %v5765_v60 }
 0x53c   :  { %v5787_v15 = vmul.f32 1.442695, %v5786_v46  ;;  %v5767_v35 = vmul.f32 1.442695, %v5766_v39 }
 0x53e   :  { %6834 = vpow2.f32 %v5787_v15 }
 0x53f   :  { %6836 = vpow2.f32 %v5767_v35 }
 0x544   :  { %v6833_v61 = vpop.eup %6832 }
 0x545   :  { %v5822_v19 = vsel %vm5773_vm1, %v6833_v61, 0.0 }
 0x546   :  { %5823 = vadd.xlane.f32.xlu1 %v5822_v19 }
 0x548   :  { %v6835_v9 = vpop.eup %6834 }
 0x549   :  { %v6837_v0 = vpop.eup %6836  ;;  %v5789_v23 = vadd.f32 1.0, %v6835_v9 }
 0x54a   :  { %v5769_v24 = vadd.f32 1.0, %v6837_v0 }
 0x54b   :  { %6838 = vlog2.f32 %v5789_v23 }
 0x54c   :  { %6840 = vlog2.f32 %v5769_v24 }
 0x555   :  { %v6839_v20 = vpop.eup %6838 }
 0x556   :  { %v6841_v16 = vpop.eup %6840  ;;  %v5791_v2 = vmul.f32 0.6931472, %v6839_v20 }
 0x557   :  { %v5771_v37 = vmul.f32 0.6931472, %v6841_v16 }
 0x558   :  { %v5792_v12 = vadd.f32 %v5791_v2, %v5784_v21 }
 0x559   :  { %v5772_v5 = vadd.f32 %v5771_v37, %v5764_v55 }
 0x55a   :  { %v5793_v18 = vsel %vm5773_vm1, %v5792_v12, 0.0 }
 0x55b   :  { %v5774_v3 = vsel %vm5773_vm1, %v5772_v5, 0.0 }
 0x55c   :  { %5775 = vadd.xlane.f32.xlu0 %v5774_v3 }
 0x560   :  { %5794 = vadd.xlane.f32.xlu0 %v5793_v18 }
 0x5c4   :  { %v5812_v54 = vpop.xlane.xlu1 %5811 }
 0x5c5   :  { %v5813_v49 = vrot.slane %v5812_v54, 4 }
 0x5c7   :  { %v5814_v29 = vadd.f32 %v5813_v49, %v5812_v54 }
 0x5c9   :  { %v5815_v51 = vrot.slane %v5814_v29, 2 }
 0x5cb   :  { %v5816_v53 = vadd.f32 %v5815_v51, %v5814_v29 }
 0x5cd   :  { %v5817_v41 = vrot.slane %v5816_v53, 1 }
 0x5cf   :  { %v5818_v31 = vadd.f32 %v5817_v41, %v5816_v53 }
 0x5d3   :  { %v5824_v57 = vpop.xlane.xlu1 %5823 }
 0x5d4   :  { %v5825_v8 = vrot.slane %v5824_v57, 4 }
 0x5d6   :  { %v5826_v63 = vadd.f32 %v5825_v8, %v5824_v57 }
 0x5d8   :  { %v5827_v14 = vrot.slane %v5826_v63, 2 }
 0x5da   :  { %v5828_v4 = vadd.f32 %v5827_v14, %v5826_v63 }
 0x5dc   :  { %v5829_v13 = vrot.slane %v5828_v4, 1 }
 0x5de   :  { %v5830_v26 = vadd.f32 %v5829_v13, %v5828_v4 }
 0x5e9   :  { %v5776_v34 = vpop.xlane.xlu0 %5775 }
 0x5ea   :  { %v5777_v33 = vrot.slane %v5776_v34, 4 }
 0x5ec   :  { %v5778_v6 = vadd.f32 %v5777_v33, %v5776_v34 }
 0x5ed   :  { %v5795_v10 = vpop.xlane.xlu0 %5794 }
 0x5ee   :  { %v5779_v38 = vrot.slane %v5778_v6, 2  ;;  %v5796_v1 = vrot.slane %v5795_v10, 4 }
 0x5f0   :  { %v5797_v59 = vadd.f32 %v5796_v1, %v5795_v10  ;;  %v5780_v32 = vadd.f32 %v5779_v38, %v5778_v6 }
 0x5f2   :  { %v5798_v44 = vrot.slane %v5797_v59, 2  ;;  %v5781_v7 = vrot.slane %v5780_v32, 1 }
 0x5f4   :  { %v5799_v27 = vadd.f32 %v5798_v44, %v5797_v59  ;;  %v5782_v22 = vadd.f32 %v5781_v7, %v5780_v32 }
 0x5f6   :  { %6618 = vpush %v5782_v22  ;;  %v5800_v47 = vrot.slane %v5799_v27, 1 }
 0x5f8   :  { %v5801_v43 = vadd.f32 %v5800_v47, %v5799_v27 }
 0x5fa   :  { %6620 = vpush %v5801_v43 }
 0x5fb   :  { %6622 = vpush %v5818_v31 }
 0x5fc   :  { %6624 = vpush %v5830_v26 }
 0x627   :  { %s6619_s5 = spop %6618 }
 0x62b   :  { %s6621_s23 = spop %6620 }
 0x62c   :  { %s5803_s10 = sadd.f32 %s6621_s23, %s6619_s5  ;;  %s6623_s11 = spop %6622 }
 0x62d   :  { %s6625_s12 = spop %6624 }
 0x62e   :  { %s5804_s13 = ssub.f32 0.0, %s5803_s10 }
 0x62f   :  { %s5832_s14 = ssub.f32 %s6623_s11, %s6625_s12 }
 0x630   :  { %s5805_s15 = smul.f32 0.125, %s5804_s13 }
 0x631   :  { %s5833_s19 = smul.f32 0.125, %s5832_s14 }
 0x632   :  { %v5806_v28 = vstv %s5805_s15 }
 0x633   :  { %v5834_v45 = vstv %s5833_s19  ;;  %5808 = vst [vmem:[#allocation12] sm:$0xff] %v5806_v28 }
 0x634   :  { %5836 = vst [vmem:[#allocation13] sm:$0xff] %v5834_v45 }
 0x635   :  { %6964 = shalt.err (!%p6961_p2)
}
 0x636   :  { %s6965_s20 = scalar_lea.hbm %s8859_s7, 128 }
 0x637   :  { %p6966_p3 = scmp.ne.s32.totalorder %s8859_s7, %s6965_s20  ;;  %p6969_p4 = scmp.lt.u32.totalorder %s6965_s20, %s8859_s7 }
 0x639   :  { %p6971_p5 = pnand %p6969_p4, %p6966_p3 }
 0x63b   :  { %6974 = shalt.err (!%p6971_p5)
}
 0x63c   :  { %5846 = dma.vmem_to_hbm [thread:$0]  %s5844_s18, 128, %s8859_s7, [#allocation5]  }
 0x63d   :  { %s6975_s28 = scalar_lea.vmem %s5854_s3, 128  ;;  %p6980_p7 = scmp.lt.s32.totalorder %s5854_s3, %s5854_s3 }
 0x63e   :  { %p6976_p6 = scmp.ne.s32.totalorder %s5854_s3, %s6975_s28  ;;  %p6981_p8 = scmp.lt.s32.totalorder %s6975_s28, %s6975_s28 }
 0x640   :  { %p6982_p9 = por %p6981_p8, %p6980_p7 }
 0x642   :  { %p6983_p10 = pnand %p6982_p9, %p6976_p6 }
 0x644   :  { %6986 = shalt.err (!%p6983_p10)
}
 0x645   :  { %s6987_s1 = scalar_lea.hbm %s8860_s8, 128 }
 0x646   :  { %p6988_p11 = scmp.ne.s32.totalorder %s8860_s8, %s6987_s1  ;;  %p6991_p12 = scmp.lt.u32.totalorder %s6987_s1, %s8860_s8 }
 0x648   :  { %p6993_p13 = pnand %p6991_p12, %p6988_p11 }
 0x64a   :  { %6996 = shalt.err (!%p6993_p13)
}
 0x64b   :  { %5856 = dma.vmem_to_hbm [thread:$0]  %s5854_s3, 128, %s8860_s8, [#allocation14]  }
 0x64c   :  { %7003 = dma.done.wait [#allocation5], 128  }
 0x64d   :  { %7004 = vsyncadd [#allocation5], 4294967168 }
 0x64e   :  { %7005 = dma.done.wait [#allocation14], 128  }
 0x64f   :  { %7006 = vsyncadd [#allocation14], 4294967168 }
 0x650   :  { %5863 = vsyncpa [#allocation4], 1 }
 0x651   :  { %5864 = vsyncpa [#allocation7], 1 }
 0x652   :  { %5865 = vsyncpa [#allocation10], 1 }
 0x653   :  { %5866 = vsyncpa [#allocation5], 1 }
 0x654   :  { %5867 = vsyncpa [#allocation14], 1 }

</bundles_post_ra>
